<compile_context>
chip_gen: v7x
topology: tpu7x:2x2x1
jax: 0.10.0
libtpu: 0.0.40
codegen_flags: <defaults>
</compile_context>

<pallas_src>
import math

import jax
import jax.numpy as jnp
import numpy as np
from jax.experimental import pallas as pl
from jax.experimental.pallas import tpu as pltpu

LAYER_1 = 1600
LAYER_2 = 320
BN_EPS = 1e-5

_BF16_WEIGHTS = ("w1", "w2", "w4", "w5")  # large weights stored bf16 in HBM


def _bn_train(h, gamma, beta):
    """Training-mode BatchNorm1d, single-pass batch stats (biased var), f32 math.

    var = E[h^2] - mean^2 (marginally less stable than the centered form, but
    h is a zero-ish-mean matmul output so there is no catastrophic cancellation
    at these magnitudes / tolerances).
    """
    inv_n = 1.0 / h.shape[0]
    mu = jnp.sum(h, axis=0, keepdims=True) * inv_n
    ex2 = jnp.sum(h * h, axis=0, keepdims=True) * inv_n
    var = ex2 - mu * mu
    scale = jax.lax.rsqrt(var + BN_EPS) * gamma          # per-feature scale
    return h * scale + (beta - mu * scale)               # one FMA per element


def vae_fwd_kernel(
    # activations (per-VAE block; leading VAE axis squeezed away)
    x_ref, l_ref, eps_ref,
    # weights (w1/w2/w4/w5 bf16, fed straight to the MXU; wmv f32)
    w1_ref, w2_ref, wmv_ref, w4_ref, w5_ref,
    # packed small params
    s1600_ref,   # (4, 1600)   : [bn1_gamma, bn1_beta, bn4_gamma, bn4_beta]
    s320_ref,    # (Z+5, 320)  : [bn2_g, bn2_b, bn3_g, bn3_b, w3_z (Z rows), w3_l]
    brow_ref,    # (1, 2Z+Dp+2): [bm | bv | b5 | prelu_a1 | prelu_a2]
    # outputs
    lat_ref,     # (N, 3Z)     : [mean | log_var | z]
    rec_ref,     # (N, Dp)
):
    f32 = jnp.float32
    bf16 = jnp.bfloat16
    zdim = eps_ref.shape[1]
    dpad = x_ref.shape[1]

    bmv = brow_ref[:, 0:2 * zdim]                          # (1, 2Z)
    b5 = brow_ref[:, 2 * zdim:2 * zdim + dpad]             # (1, Dp)
    a1 = brow_ref[:, 2 * zdim + dpad:2 * zdim + dpad + 1]  # (1, 1) PReLU slope 1
    a2 = brow_ref[:, 2 * zdim + dpad + 1:2 * zdim + dpad + 2]

    # --- Encoder layer 1: Linear -> BN -> PReLU (bias folded away by BN) ---
    h = jnp.dot(x_ref[...].astype(bf16), w1_ref[...], preferred_element_type=f32)
    h = _bn_train(h, s1600_ref[0:1, :], s1600_ref[1:2, :])
    h = jnp.where(h > 0, h, a1 * h)

    # --- Encoder layer 2: Linear -> BN -> PReLU ---
    h = jnp.dot(h.astype(bf16), w2_ref[...], preferred_element_type=f32)
    h = _bn_train(h, s320_ref[0:1, :], s320_ref[1:2, :])
    h = jnp.where(h > 0, h, a2 * h)

    # --- Fused latent heads: one (320, 2Z) f32 matmul -> [mean | log_var] ---
    mv = jnp.dot(h, wmv_ref[...], preferred_element_type=f32) + bmv
    mean = mv[:, :zdim]
    log_var = mv[:, zdim:]

    # --- Reparameterization: z = mean + exp(log_var) * eps ---
    # (std = exp(log_var), matching Normal(mean, exp(log_var)).rsample())
    z = mean + jnp.exp(log_var) * eps_ref[...]
    lat_ref[...] = jnp.concatenate([mv, z], axis=1)        # single output store

    # --- Decoder layer 1 on cat([z, l], 1): K=Z matmul + rank-1 label term ---
    w3z = s320_ref[4:4 + zdim, :]                          # (Z, 320)
    w3l = s320_ref[4 + zdim:5 + zdim, :]                   # (1, 320)
    d = jnp.dot(z, w3z, preferred_element_type=f32) + l_ref[...] * w3l
    d = _bn_train(d, s320_ref[2:3, :], s320_ref[3:4, :])
    d = jnp.where(d > 0, d, 0.2 * d)                       # LeakyReLU(0.2)

    # --- Decoder layer 2 ---
    d = jnp.dot(d.astype(bf16), w4_ref[...], preferred_element_type=f32)
    d = _bn_train(d, s1600_ref[2:3, :], s1600_ref[3:4, :])
    d = jnp.where(d > 0, d, 0.2 * d)

    # --- Decoder output layer ---
    rec_ref[...] = (jnp.dot(d.astype(bf16), w5_ref[...], preferred_element_type=f32)
                    + b5)


def init_params(key, input_dim, z_dim, c=1):
    """Parameter init mirroring the PyTorch module's shapes.

    Linear weights are stored transposed as (in, out); biases as (1, out).
    Large weights (w1, w2, w4, w5) are stored in bfloat16 (native MXU path).
    """
    ks = iter(jax.random.split(key, 32))

    def linear(fan_in, fan_out):
        bound = 1.0 / math.sqrt(fan_in)
        w = jax.random.uniform(next(ks), (fan_in, fan_out), jnp.float32, -bound, bound)
        b = jax.random.uniform(next(ks), (1, fan_out), jnp.float32, -bound, bound)
        return w, b

    def bn(feat):
        w = jnp.ones((1, feat), jnp.float32) + 0.01 * jax.random.normal(next(ks), (1, feat))
        b = 0.01 * jax.random.normal(next(ks), (1, feat), jnp.float32)
        return w, b

    p = {}
    p["w1"], p["b1"] = linear(input_dim, LAYER_1)
    p["bn1w"], p["bn1b"] = bn(LAYER_1)
    p["a1"] = jnp.full((1, 1), 0.25, jnp.float32)          # PReLU default
    p["w2"], p["b2"] = linear(LAYER_1, LAYER_2)
    p["bn2w"], p["bn2b"] = bn(LAYER_2)
    p["a2"] = jnp.full((1, 1), 0.25, jnp.float32)
    p["wm"], p["bm"] = linear(LAYER_2, z_dim)
    p["wv"], p["bv"] = linear(LAYER_2, z_dim)
    p["w3"], p["b3"] = linear(z_dim + c, LAYER_2)
    p["bn3w"], p["bn3b"] = bn(LAYER_2)
    p["w4"], p["b4"] = linear(LAYER_2, LAYER_1)
    p["bn4w"], p["bn4b"] = bn(LAYER_1)
    p["w5"], p["b5"] = linear(LAYER_1, input_dim)
    for name in _BF16_WEIGHTS:
        p[name] = p[name].astype(jnp.bfloat16)
    return p


def _pack_vae(params, x, l, eps, d_pad):
    """Pad the feature dim to d_pad and pack small params into 3 slabs."""
    n, d = x.shape
    zdim = eps.shape[1]
    pad = d_pad - d
    x_p = jnp.pad(x, ((0, 0), (0, pad)))
    w1_p = jnp.pad(params["w1"], ((0, pad), (0, 0)))   # zero rows: exact no-op
    w5_p = jnp.pad(params["w5"], ((0, 0), (0, pad)))   # zero cols: padded rec = 0
    b5_p = jnp.pad(params["b5"], ((0, 0), (0, pad)))
    wmv = jnp.concatenate([params["wm"], params["wv"]], axis=1)         # (320, 2Z)
    bmv = jnp.concatenate([params["bm"], params["bv"]], axis=1)         # (1, 2Z)
    s1600 = jnp.concatenate([params["bn1w"], params["bn1b"],
                             params["bn4w"], params["bn4b"]], axis=0)   # (4, 1600)
    w3 = params["w3"]
    s320 = jnp.concatenate([params["bn2w"], params["bn2b"],
                            params["bn3w"], params["bn3b"],
                            w3[:zdim, :], w3[zdim:zdim + 1, :]], axis=0)  # (Z+5, 320)
    brow = jnp.concatenate([bmv, b5_p,
                            params["a1"].reshape(1, 1),
                            params["a2"].reshape(1, 1)], axis=1)        # (1, 2Z+Dp+2)
    # b1..b4 intentionally dropped: exact no-ops under training-mode BatchNorm.
    return dict(x=x_p, l=l, eps=eps, w1=w1_p, w2=params["w2"], wmv=wmv,
                w4=params["w4"], w5=w5_p, s1600=s1600, s320=s320, brow=brow)


_ARG_ORDER = ("x", "l", "eps", "w1", "w2", "wmv", "w4", "w5", "s1600", "s320", "brow")


def norm_aligned_vae_forward(params_x, params_y, x, y, dx, dy, eps_x, eps_y,
                             b=None, no_rec=False):
    """NormAlignedVAE.forward: both sub-VAEs fused into one grid=(2,) pallas_call."""
    # TODO(synk): the `b is not None` branch depends on the sub-VAE's (unspecified)
    # handling of `b`; the default path below matches forward(x, y, dx, dy).
    n, d_x = x.shape
    _, d_y = y.shape
    zdim = eps_x.shape[1]
    d_pad = max(d_x, d_y)

    px = _pack_vae(params_x, x, dx, eps_x, d_pad)
    py = _pack_vae(params_y, y, dy, eps_y, d_pad)
    args = tuple(jnp.stack([px[k], py[k]], axis=0) for k in _ARG_ORDER)

    def spec(arr):
        rest = arr.shape[1:]
        zeros = (0,) * len(rest)
        # Leading VAE axis blocked (and squeezed) per grid step; rest full-size.
        return pl.BlockSpec((None,) + rest, lambda i, _z=zeros: (i,) + _z)

    fn = pl.pallas_call(
        vae_fwd_kernel,
        grid=(2,),                                    # one grid step per sub-VAE
        out_shape=(
            jax.ShapeDtypeStruct((2, n, 3 * zdim), jnp.float32),  # [mean|log_var|z]
            jax.ShapeDtypeStruct((2, n, d_pad), jnp.float32),     # rec (padded)
        ),
        in_specs=[spec(a) for a in args],
        out_specs=(
            pl.BlockSpec((None, n, 3 * zdim), lambda i: (i, 0, 0)),
            pl.BlockSpec((None, n, d_pad), lambda i: (i, 0, 0)),
        ),
        compiler_params=pltpu.CompilerParams(
            # Two independent sub-VAEs -> both TensorCores on v7x; on v5e/v6e the
            # 2-step grid still pipelines VAE-y's weight DMA behind VAE-x compute.
            dimension_semantics=("parallel",),
            # Actual footprint ~5 MiB (double-buffered bf16 weights); 32 MiB fits
            # every generation incl. v7x's 64 MiB physical VMEM.
            vmem_limit_bytes=32 << 20,
        ),
    )
    lat, rec = fn(*args)

    def unpack(i, d):
        mean = lat[i, :, :zdim]
        log_var = lat[i, :, zdim:2 * zdim]
        z = lat[i, :, 2 * zdim:]
        return mean, log_var, z, rec[i, :, :d]

    out_x = unpack(0, d_x)
    out_y = unpack(1, d_y)
    if no_rec:
        # TODO(synk): no_rec still computes rec in-kernel; only the means are returned.
        return out_x[0], out_y[0]
    return out_x, out_y


def vae_reference(params, x, l, eps):
    """Pure-JAX reference replicating the PyTorch sub-VAE forward (including the
    pre-BN biases the kernel folds away and two-pass BN stats).  The big matmuls
    feed bf16 operands to the MXU with f32 accumulation, like the kernel."""
    f32 = jnp.float32

    def mm(a, w_bf16):
        return jnp.dot(a.astype(jnp.bfloat16), w_bf16, preferred_element_type=f32)

    def bn(h, w, b):
        mu = h.mean(axis=0, keepdims=True)
        var = ((h - mu) ** 2).mean(axis=0, keepdims=True)
        return (h - mu) * jax.lax.rsqrt(var + BN_EPS) * w + b

    h = mm(x, params["w1"]) + params["b1"]
    h = bn(h, params["bn1w"], params["bn1b"])
    h = jnp.where(h > 0, h, params["a1"][0, 0] * h)
    h = mm(h, params["w2"]) + params["b2"]
    h = bn(h, params["bn2w"], params["bn2b"])
    h = jnp.where(h > 0, h, params["a2"][0, 0] * h)
    mean = h @ params["wm"] + params["bm"]
    log_var = h @ params["wv"] + params["bv"]
    z = mean + jnp.exp(log_var) * eps
    z_c = jnp.concatenate([z, l], axis=1)
    d = z_c @ params["w3"] + params["b3"]
    d = bn(d, params["bn3w"], params["bn3b"])
    d = jnp.where(d > 0, d, 0.2 * d)
    d = mm(d, params["w4"]) + params["b4"]
    d = bn(d, params["bn4w"], params["bn4b"])
    d = jnp.where(d > 0, d, 0.2 * d)
    rec = mm(d, params["w5"]) + params["b5"]
    return mean, log_var, z, rec


if __name__ == "__main__":
    N = 8          # BatchNorm1d (training-mode batch stats) needs batch > 1
    DX, DY = 64, 48
    Z = 8

    key = jax.random.PRNGKey(0)
    kpx, kpy, kx, ky, kdx, kdy, kex, key_ = jax.random.split(key, 8)

    params_x = init_params(kpx, DX, Z, c=1)
    params_y = init_params(kpy, DY, Z, c=1)

    x = jax.random.normal(kx, (N, DX), jnp.float32)
    y = jax.random.normal(ky, (N, DY), jnp.float32)
    dx = jax.random.normal(kdx, (N, 1), jnp.float32)       # conditioning labels (c = 1)
    dy = jax.random.normal(kdy, (N, 1), jnp.float32)
    eps_x = jax.random.normal(kex, (N, Z), jnp.float32)    # reparameterization noise
    eps_y = jax.random.normal(key_, (N, Z), jnp.float32)

    out_x, out_y = norm_aligned_vae_forward(
        params_x, params_y, x, y, dx, dy, eps_x, eps_y)
    (out_x, out_y) = jax.block_until_ready((out_x, out_y))

    ref_x = vae_reference(params_x, x, dx, eps_x)
    ref_y = vae_reference(params_y, y, dy, eps_y)
    for got, want in zip(tuple(out_x) + tuple(out_y), tuple(ref_x) + tuple(ref_y)):
        np.testing.assert_allclose(np.asarray(got), np.asarray(want),
                                   rtol=2e-3, atol=2e-3)

    print("KERNEL_OK")
</pallas_src>

<mosaic_0001>
module attributes {stable_mosaic.version = 11 : i64} {
  func.func @vae_fwd_kernel(%arg0: i32, %arg1: memref<1x8x64xf32, #tpu.memory_space<vmem>>, %arg2: memref<1x8x1xf32, #tpu.memory_space<vmem>>, %arg3: memref<1x8x8xf32, #tpu.memory_space<vmem>>, %arg4: memref<1x64x1600xbf16, #tpu.memory_space<vmem>>, %arg5: memref<1x1600x320xbf16, #tpu.memory_space<vmem>>, %arg6: memref<1x320x16xf32, #tpu.memory_space<vmem>>, %arg7: memref<1x320x1600xbf16, #tpu.memory_space<vmem>>, %arg8: memref<1x1600x64xbf16, #tpu.memory_space<vmem>>, %arg9: memref<1x4x1600xf32, #tpu.memory_space<vmem>>, %arg10: memref<1x13x320xf32, #tpu.memory_space<vmem>>, %arg11: memref<1x1x82xf32, #tpu.memory_space<vmem>>, %arg12: memref<1x8x24xf32, #tpu.memory_space<vmem>>, %arg13: memref<1x8x64xf32, #tpu.memory_space<vmem>>) attributes {dimension_semantics = [#tpu.dimension_semantics<parallel>], iteration_bounds = array<i64: 2>, scalar_prefetch = 0 : i64, scratch_operands = 0 : i64, tpu.core_type = #tpu.core_type<tc>, window_params = [{transform_indices = @transform_0, window_bounds = array<i64: 1, 8, 64>}, {transform_indices = @transform_1, window_bounds = array<i64: 1, 8, 1>}, {transform_indices = @transform_2, window_bounds = array<i64: 1, 8, 8>}, {transform_indices = @transform_3, window_bounds = array<i64: 1, 64, 1600>}, {transform_indices = @transform_4, window_bounds = array<i64: 1, 1600, 320>}, {transform_indices = @transform_5, window_bounds = array<i64: 1, 320, 16>}, {transform_indices = @transform_6, window_bounds = array<i64: 1, 320, 1600>}, {transform_indices = @transform_7, window_bounds = array<i64: 1, 1600, 64>}, {transform_indices = @transform_8, window_bounds = array<i64: 1, 4, 1600>}, {transform_indices = @transform_9, window_bounds = array<i64: 1, 13, 320>}, {transform_indices = @transform_10, window_bounds = array<i64: 1, 1, 82>}, {transform_indices = @transform_11, window_bounds = array<i64: 1, 8, 24>}, {transform_indices = @transform_12, window_bounds = array<i64: 1, 8, 64>}]} {
    %c0 = arith.constant 0 : index
    %c0_0 = arith.constant 0 : index
    %c0_1 = arith.constant 0 : index
    %0 = vector.load %arg11[%c0, %c0_0, %c0_1] : memref<1x1x82xf32, #tpu.memory_space<vmem>>, vector<1x1x16xf32>
    %1 = vector.shape_cast %0 : vector<1x1x16xf32> to vector<1x16xf32>
    %c0_2 = arith.constant 0 : index
    %c0_3 = arith.constant 0 : index
    %c16 = arith.constant 16 : index
    %2 = vector.load %arg11[%c0_2, %c0_3, %c16] : memref<1x1x82xf32, #tpu.memory_space<vmem>>, vector<1x1x64xf32>
    %3 = vector.shape_cast %2 : vector<1x1x64xf32> to vector<1x64xf32>
    %c0_4 = arith.constant 0 : index
    %c0_5 = arith.constant 0 : index
    %c80 = arith.constant 80 : index
    %4 = vector.load %arg11[%c0_4, %c0_5, %c80] : memref<1x1x82xf32, #tpu.memory_space<vmem>>, vector<1x1x1xf32>
    %5 = vector.shape_cast %4 : vector<1x1x1xf32> to vector<1x1xf32>
    %c0_6 = arith.constant 0 : index
    %c0_7 = arith.constant 0 : index
    %c81 = arith.constant 81 : index
    %6 = vector.load %arg11[%c0_6, %c0_7, %c81] : memref<1x1x82xf32, #tpu.memory_space<vmem>>, vector<1x1x1xf32>
    %7 = vector.shape_cast %6 : vector<1x1x1xf32> to vector<1x1xf32>
    %c0_8 = arith.constant 0 : index
    %c0_9 = arith.constant 0 : index
    %c0_10 = arith.constant 0 : index
    %8 = vector.load %arg1[%c0_8, %c0_9, %c0_10] : memref<1x8x64xf32, #tpu.memory_space<vmem>>, vector<1x8x64xf32>
    %9 = vector.shape_cast %8 : vector<1x8x64xf32> to vector<8x64xf32>
    %10 = arith.truncf %9 : vector<8x64xf32> to vector<8x64xbf16>
    %c0_11 = arith.constant 0 : index
    %c0_12 = arith.constant 0 : index
    %c0_13 = arith.constant 0 : index
    %11 = vector.load %arg4[%c0_11, %c0_12, %c0_13] : memref<1x64x1600xbf16, #tpu.memory_space<vmem>>, vector<1x64x1600xbf16>
    %12 = vector.shape_cast %11 : vector<1x64x1600xbf16> to vector<64x1600xbf16>
    %cst = arith.constant dense<0.000000e+00> : vector<8x1600xf32>
    %13 = tpu.matmul %10, %12, %cst {dimension_numbers = #tpu.dot_dimension_numbers<[1], [0], [0], [1], [0, 0, 1, 1], [], []>} : vector<8x64xbf16>, vector<64x1600xbf16>, vector<8x1600xf32> -> vector<8x1600xf32>
    %c0_14 = arith.constant 0 : index
    %c0_15 = arith.constant 0 : index
    %c0_16 = arith.constant 0 : index
    %14 = vector.load %arg9[%c0_14, %c0_15, %c0_16] : memref<1x4x1600xf32, #tpu.memory_space<vmem>>, vector<1x1x1600xf32>
    %15 = vector.shape_cast %14 : vector<1x1x1600xf32> to vector<1x1600xf32>
    %c0_17 = arith.constant 0 : index
    %c1 = arith.constant 1 : index
    %c0_18 = arith.constant 0 : index
    %16 = vector.load %arg9[%c0_17, %c1, %c0_18] : memref<1x4x1600xf32, #tpu.memory_space<vmem>>, vector<1x1x1600xf32>
    %17 = vector.shape_cast %16 : vector<1x1x1600xf32> to vector<1x1600xf32>
    %cst_19 = arith.constant dense<0.000000e+00> : vector<1600xf32>
    %18 = vector.multi_reduction <add>, %13, %cst_19 [0] : vector<8x1600xf32> to vector<1600xf32>
    %19 = vector.shape_cast %18 : vector<1600xf32> to vector<1x1600xf32>
    %cst_20 = arith.constant 1.250000e-01 : f32
    %20 = vector.broadcast %cst_20 : f32 to vector<1x1600xf32>
    %21 = arith.mulf %19, %20 : vector<1x1600xf32>
    %22 = arith.mulf %13, %13 : vector<8x1600xf32>
    %cst_21 = arith.constant dense<0.000000e+00> : vector<1600xf32>
    %23 = vector.multi_reduction <add>, %22, %cst_21 [0] : vector<8x1600xf32> to vector<1600xf32>
    %24 = vector.shape_cast %23 : vector<1600xf32> to vector<1x1600xf32>
    %cst_22 = arith.constant 1.250000e-01 : f32
    %25 = vector.broadcast %cst_22 : f32 to vector<1x1600xf32>
    %26 = arith.mulf %24, %25 : vector<1x1600xf32>
    %27 = arith.mulf %21, %21 : vector<1x1600xf32>
    %28 = arith.subf %26, %27 : vector<1x1600xf32>
    %cst_23 = arith.constant 9.99999974E-6 : f32
    %29 = vector.broadcast %cst_23 : f32 to vector<1x1600xf32>
    %30 = arith.addf %28, %29 : vector<1x1600xf32>
    %31 = math.rsqrt %30 : vector<1x1600xf32>
    %32 = arith.mulf %31, %15 : vector<1x1600xf32>
    %33 = vector.broadcast %32 : vector<1x1600xf32> to vector<8x1600xf32>
    %34 = arith.mulf %13, %33 : vector<8x1600xf32>
    %35 = arith.mulf %21, %32 : vector<1x1600xf32>
    %36 = arith.subf %17, %35 : vector<1x1600xf32>
    %37 = vector.broadcast %36 : vector<1x1600xf32> to vector<8x1600xf32>
    %38 = arith.addf %34, %37 : vector<8x1600xf32>
    %cst_24 = arith.constant 0.000000e+00 : f32
    %39 = vector.broadcast %cst_24 : f32 to vector<8x1600xf32>
    %40 = arith.cmpf ogt, %38, %39 : vector<8x1600xf32>
    %41 = vector.broadcast %5 : vector<1x1xf32> to vector<8x1600xf32>
    %42 = arith.mulf %41, %38 : vector<8x1600xf32>
    %43 = arith.select %40, %38, %42 : vector<8x1600xi1>, vector<8x1600xf32>
    %44 = arith.truncf %43 : vector<8x1600xf32> to vector<8x1600xbf16>
    %c0_25 = arith.constant 0 : index
    %c0_26 = arith.constant 0 : index
    %c0_27 = arith.constant 0 : index
    %45 = vector.load %arg5[%c0_25, %c0_26, %c0_27] : memref<1x1600x320xbf16, #tpu.memory_space<vmem>>, vector<1x1600x320xbf16>
    %46 = vector.shape_cast %45 : vector<1x1600x320xbf16> to vector<1600x320xbf16>
    %cst_28 = arith.constant dense<0.000000e+00> : vector<8x320xf32>
    %47 = tpu.matmul %44, %46, %cst_28 {dimension_numbers = #tpu.dot_dimension_numbers<[1], [0], [0], [1], [0, 0, 1, 1], [], []>} : vector<8x1600xbf16>, vector<1600x320xbf16>, vector<8x320xf32> -> vector<8x320xf32>
    %c0_29 = arith.constant 0 : index
    %c0_30 = arith.constant 0 : index
    %c0_31 = arith.constant 0 : index
    %48 = vector.load %arg10[%c0_29, %c0_30, %c0_31] : memref<1x13x320xf32, #tpu.memory_space<vmem>>, vector<1x1x320xf32>
    %49 = vector.shape_cast %48 : vector<1x1x320xf32> to vector<1x320xf32>
    %c0_32 = arith.constant 0 : index
    %c1_33 = arith.constant 1 : index
    %c0_34 = arith.constant 0 : index
    %50 = vector.load %arg10[%c0_32, %c1_33, %c0_34] : memref<1x13x320xf32, #tpu.memory_space<vmem>>, vector<1x1x320xf32>
    %51 = vector.shape_cast %50 : vector<1x1x320xf32> to vector<1x320xf32>
    %cst_35 = arith.constant dense<0.000000e+00> : vector<320xf32>
    %52 = vector.multi_reduction <add>, %47, %cst_35 [0] : vector<8x320xf32> to vector<320xf32>
    %53 = vector.shape_cast %52 : vector<320xf32> to vector<1x320xf32>
    %cst_36 = arith.constant 1.250000e-01 : f32
    %54 = vector.broadcast %cst_36 : f32 to vector<1x320xf32>
    %55 = arith.mulf %53, %54 : vector<1x320xf32>
    %56 = arith.mulf %47, %47 : vector<8x320xf32>
    %cst_37 = arith.constant dense<0.000000e+00> : vector<320xf32>
    %57 = vector.multi_reduction <add>, %56, %cst_37 [0] : vector<8x320xf32> to vector<320xf32>
    %58 = vector.shape_cast %57 : vector<320xf32> to vector<1x320xf32>
    %cst_38 = arith.constant 1.250000e-01 : f32
    %59 = vector.broadcast %cst_38 : f32 to vector<1x320xf32>
    %60 = arith.mulf %58, %59 : vector<1x320xf32>
    %61 = arith.mulf %55, %55 : vector<1x320xf32>
    %62 = arith.subf %60, %61 : vector<1x320xf32>
    %cst_39 = arith.constant 9.99999974E-6 : f32
    %63 = vector.broadcast %cst_39 : f32 to vector<1x320xf32>
    %64 = arith.addf %62, %63 : vector<1x320xf32>
    %65 = math.rsqrt %64 : vector<1x320xf32>
    %66 = arith.mulf %65, %49 : vector<1x320xf32>
    %67 = vector.broadcast %66 : vector<1x320xf32> to vector<8x320xf32>
    %68 = arith.mulf %47, %67 : vector<8x320xf32>
    %69 = arith.mulf %55, %66 : vector<1x320xf32>
    %70 = arith.subf %51, %69 : vector<1x320xf32>
    %71 = vector.broadcast %70 : vector<1x320xf32> to vector<8x320xf32>
    %72 = arith.addf %68, %71 : vector<8x320xf32>
    %cst_40 = arith.constant 0.000000e+00 : f32
    %73 = vector.broadcast %cst_40 : f32 to vector<8x320xf32>
    %74 = arith.cmpf ogt, %72, %73 : vector<8x320xf32>
    %75 = vector.broadcast %7 : vector<1x1xf32> to vector<8x320xf32>
    %76 = arith.mulf %75, %72 : vector<8x320xf32>
    %77 = arith.select %74, %72, %76 : vector<8x320xi1>, vector<8x320xf32>
    %c0_41 = arith.constant 0 : index
    %c0_42 = arith.constant 0 : index
    %c0_43 = arith.constant 0 : index
    %78 = vector.load %arg6[%c0_41, %c0_42, %c0_43] : memref<1x320x16xf32, #tpu.memory_space<vmem>>, vector<1x320x16xf32>
    %79 = vector.shape_cast %78 : vector<1x320x16xf32> to vector<320x16xf32>
    %cst_44 = arith.constant dense<0.000000e+00> : vector<8x16xf32>
    %80 = tpu.matmul %77, %79, %cst_44 {dimension_numbers = #tpu.dot_dimension_numbers<[1], [0], [0], [1], [0, 0, 1, 1], [], []>} : vector<8x320xf32>, vector<320x16xf32>, vector<8x16xf32> -> vector<8x16xf32>
    %81 = vector.broadcast %1 : vector<1x16xf32> to vector<8x16xf32>
    %82 = arith.addf %80, %81 : vector<8x16xf32>
    %83 = vector.extract_strided_slice %82 {offsets = [0, 0], sizes = [8, 8], strides = [1, 1]} : vector<8x16xf32> to vector<8x8xf32>
    %84 = vector.extract_strided_slice %82 {offsets = [0, 8], sizes = [8, 8], strides = [1, 1]} : vector<8x16xf32> to vector<8x8xf32>
    %85 = math.exp %84 : vector<8x8xf32>
    %c0_45 = arith.constant 0 : index
    %c0_46 = arith.constant 0 : index
    %c0_47 = arith.constant 0 : index
    %86 = vector.load %arg3[%c0_45, %c0_46, %c0_47] : memref<1x8x8xf32, #tpu.memory_space<vmem>>, vector<1x8x8xf32>
    %87 = vector.shape_cast %86 : vector<1x8x8xf32> to vector<8x8xf32>
    %88 = arith.mulf %85, %87 : vector<8x8xf32>
    %89 = arith.addf %83, %88 : vector<8x8xf32>
    %90 = tpu.concatenate %82, %89 in 1 : vector<8x16xf32>, vector<8x8xf32> -> vector<8x24xf32>
    %c0_48 = arith.constant 0 : index
    %c0_49 = arith.constant 0 : index
    %c0_50 = arith.constant 0 : index
    %91 = vector.load %arg12[%c0_48, %c0_49, %c0_50] : memref<1x8x24xf32, #tpu.memory_space<vmem>>, vector<1x8x24xf32>
    %92 = vector.shape_cast %91 : vector<1x8x24xf32> to vector<8x24xf32>
    %93 = vector.shape_cast %90 : vector<8x24xf32> to vector<1x8x24xf32>
    tpu.vector_store %arg12[%c0_48, %c0_49, %c0_50], %93 {strides = array<i32>} : memref<1x8x24xf32, #tpu.memory_space<vmem>>, vector<1x8x24xf32>,
    %c0_51 = arith.constant 0 : index
    %c4 = arith.constant 4 : index
    %c0_52 = arith.constant 0 : index
    %94 = vector.load %arg10[%c0_51, %c4, %c0_52] : memref<1x13x320xf32, #tpu.memory_space<vmem>>, vector<1x8x320xf32>
    %95 = vector.shape_cast %94 : vector<1x8x320xf32> to vector<8x320xf32>
    %c0_53 = arith.constant 0 : index
    %c12 = arith.constant 12 : index
    %c0_54 = arith.constant 0 : index
    %96 = vector.load %arg10[%c0_53, %c12, %c0_54] : memref<1x13x320xf32, #tpu.memory_space<vmem>>, vector<1x1x320xf32>
    %97 = vector.shape_cast %96 : vector<1x1x320xf32> to vector<1x320xf32>
    %cst_55 = arith.constant dense<0.000000e+00> : vector<8x320xf32>
    %98 = tpu.matmul %89, %95, %cst_55 {dimension_numbers = #tpu.dot_dimension_numbers<[1], [0], [0], [1], [0, 0, 1, 1], [], []>} : vector<8x8xf32>, vector<8x320xf32>, vector<8x320xf32> -> vector<8x320xf32>
    %c0_56 = arith.constant 0 : index
    %c0_57 = arith.constant 0 : index
    %c0_58 = arith.constant 0 : index
    %99 = vector.load %arg2[%c0_56, %c0_57, %c0_58] : memref<1x8x1xf32, #tpu.memory_space<vmem>>, vector<1x8x1xf32>
    %100 = vector.shape_cast %99 : vector<1x8x1xf32> to vector<8x1xf32>
    %101 = vector.broadcast %100 : vector<8x1xf32> to vector<8x320xf32>
    %102 = vector.broadcast %97 : vector<1x320xf32> to vector<8x320xf32>
    %103 = arith.mulf %101, %102 : vector<8x320xf32>
    %104 = arith.addf %98, %103 : vector<8x320xf32>
    %c0_59 = arith.constant 0 : index
    %c2 = arith.constant 2 : index
    %c0_60 = arith.constant 0 : index
    %105 = vector.load %arg10[%c0_59, %c2, %c0_60] : memref<1x13x320xf32, #tpu.memory_space<vmem>>, vector<1x1x320xf32>
    %106 = vector.shape_cast %105 : vector<1x1x320xf32> to vector<1x320xf32>
    %c0_61 = arith.constant 0 : index
    %c3 = arith.constant 3 : index
    %c0_62 = arith.constant 0 : index
    %107 = vector.load %arg10[%c0_61, %c3, %c0_62] : memref<1x13x320xf32, #tpu.memory_space<vmem>>, vector<1x1x320xf32>
    %108 = vector.shape_cast %107 : vector<1x1x320xf32> to vector<1x320xf32>
    %cst_63 = arith.constant dense<0.000000e+00> : vector<320xf32>
    %109 = vector.multi_reduction <add>, %104, %cst_63 [0] : vector<8x320xf32> to vector<320xf32>
    %110 = vector.shape_cast %109 : vector<320xf32> to vector<1x320xf32>
    %cst_64 = arith.constant 1.250000e-01 : f32
    %111 = vector.broadcast %cst_64 : f32 to vector<1x320xf32>
    %112 = arith.mulf %110, %111 : vector<1x320xf32>
    %113 = arith.mulf %104, %104 : vector<8x320xf32>
    %cst_65 = arith.constant dense<0.000000e+00> : vector<320xf32>
    %114 = vector.multi_reduction <add>, %113, %cst_65 [0] : vector<8x320xf32> to vector<320xf32>
    %115 = vector.shape_cast %114 : vector<320xf32> to vector<1x320xf32>
    %cst_66 = arith.constant 1.250000e-01 : f32
    %116 = vector.broadcast %cst_66 : f32 to vector<1x320xf32>
    %117 = arith.mulf %115, %116 : vector<1x320xf32>
    %118 = arith.mulf %112, %112 : vector<1x320xf32>
    %119 = arith.subf %117, %118 : vector<1x320xf32>
    %cst_67 = arith.constant 9.99999974E-6 : f32
    %120 = vector.broadcast %cst_67 : f32 to vector<1x320xf32>
    %121 = arith.addf %119, %120 : vector<1x320xf32>
    %122 = math.rsqrt %121 : vector<1x320xf32>
    %123 = arith.mulf %122, %106 : vector<1x320xf32>
    %124 = vector.broadcast %123 : vector<1x320xf32> to vector<8x320xf32>
    %125 = arith.mulf %104, %124 : vector<8x320xf32>
    %126 = arith.mulf %112, %123 : vector<1x320xf32>
    %127 = arith.subf %108, %126 : vector<1x320xf32>
    %128 = vector.broadcast %127 : vector<1x320xf32> to vector<8x320xf32>
    %129 = arith.addf %125, %128 : vector<8x320xf32>
    %cst_68 = arith.constant 0.000000e+00 : f32
    %130 = vector.broadcast %cst_68 : f32 to vector<8x320xf32>
    %131 = arith.cmpf ogt, %129, %130 : vector<8x320xf32>
    %cst_69 = arith.constant 2.000000e-01 : f32
    %132 = vector.broadcast %cst_69 : f32 to vector<8x320xf32>
    %133 = arith.mulf %132, %129 : vector<8x320xf32>
    %134 = arith.select %131, %129, %133 : vector<8x320xi1>, vector<8x320xf32>
    %135 = arith.truncf %134 : vector<8x320xf32> to vector<8x320xbf16>
    %c0_70 = arith.constant 0 : index
    %c0_71 = arith.constant 0 : index
    %c0_72 = arith.constant 0 : index
    %136 = vector.load %arg7[%c0_70, %c0_71, %c0_72] : memref<1x320x1600xbf16, #tpu.memory_space<vmem>>, vector<1x320x1600xbf16>
    %137 = vector.shape_cast %136 : vector<1x320x1600xbf16> to vector<320x1600xbf16>
    %cst_73 = arith.constant dense<0.000000e+00> : vector<8x1600xf32>
    %138 = tpu.matmul %135, %137, %cst_73 {dimension_numbers = #tpu.dot_dimension_numbers<[1], [0], [0], [1], [0, 0, 1, 1], [], []>} : vector<8x320xbf16>, vector<320x1600xbf16>, vector<8x1600xf32> -> vector<8x1600xf32>
    %c0_74 = arith.constant 0 : index
    %c2_75 = arith.constant 2 : index
    %c0_76 = arith.constant 0 : index
    %139 = vector.load %arg9[%c0_74, %c2_75, %c0_76] : memref<1x4x1600xf32, #tpu.memory_space<vmem>>, vector<1x1x1600xf32>
    %140 = vector.shape_cast %139 : vector<1x1x1600xf32> to vector<1x1600xf32>
    %c0_77 = arith.constant 0 : index
    %c3_78 = arith.constant 3 : index
    %c0_79 = arith.constant 0 : index
    %141 = vector.load %arg9[%c0_77, %c3_78, %c0_79] : memref<1x4x1600xf32, #tpu.memory_space<vmem>>, vector<1x1x1600xf32>
    %142 = vector.shape_cast %141 : vector<1x1x1600xf32> to vector<1x1600xf32>
    %cst_80 = arith.constant dense<0.000000e+00> : vector<1600xf32>
    %143 = vector.multi_reduction <add>, %138, %cst_80 [0] : vector<8x1600xf32> to vector<1600xf32>
    %144 = vector.shape_cast %143 : vector<1600xf32> to vector<1x1600xf32>
    %cst_81 = arith.constant 1.250000e-01 : f32
    %145 = vector.broadcast %cst_81 : f32 to vector<1x1600xf32>
    %146 = arith.mulf %144, %145 : vector<1x1600xf32>
    %147 = arith.mulf %138, %138 : vector<8x1600xf32>
    %cst_82 = arith.constant dense<0.000000e+00> : vector<1600xf32>
    %148 = vector.multi_reduction <add>, %147, %cst_82 [0] : vector<8x1600xf32> to vector<1600xf32>
    %149 = vector.shape_cast %148 : vector<1600xf32> to vector<1x1600xf32>
    %cst_83 = arith.constant 1.250000e-01 : f32
    %150 = vector.broadcast %cst_83 : f32 to vector<1x1600xf32>
    %151 = arith.mulf %149, %150 : vector<1x1600xf32>
    %152 = arith.mulf %146, %146 : vector<1x1600xf32>
    %153 = arith.subf %151, %152 : vector<1x1600xf32>
    %cst_84 = arith.constant 9.99999974E-6 : f32
    %154 = vector.broadcast %cst_84 : f32 to vector<1x1600xf32>
    %155 = arith.addf %153, %154 : vector<1x1600xf32>
    %156 = math.rsqrt %155 : vector<1x1600xf32>
    %157 = arith.mulf %156, %140 : vector<1x1600xf32>
    %158 = vector.broadcast %157 : vector<1x1600xf32> to vector<8x1600xf32>
    %159 = arith.mulf %138, %158 : vector<8x1600xf32>
    %160 = arith.mulf %146, %157 : vector<1x1600xf32>
    %161 = arith.subf %142, %160 : vector<1x1600xf32>
    %162 = vector.broadcast %161 : vector<1x1600xf32> to vector<8x1600xf32>
    %163 = arith.addf %159, %162 : vector<8x1600xf32>
    %cst_85 = arith.constant 0.000000e+00 : f32
    %164 = vector.broadcast %cst_85 : f32 to vector<8x1600xf32>
    %165 = arith.cmpf ogt, %163, %164 : vector<8x1600xf32>
    %cst_86 = arith.constant 2.000000e-01 : f32
    %166 = vector.broadcast %cst_86 : f32 to vector<8x1600xf32>
    %167 = arith.mulf %166, %163 : vector<8x1600xf32>
    %168 = arith.select %165, %163, %167 : vector<8x1600xi1>, vector<8x1600xf32>
    %169 = arith.truncf %168 : vector<8x1600xf32> to vector<8x1600xbf16>
    %c0_87 = arith.constant 0 : index
    %c0_88 = arith.constant 0 : index
    %c0_89 = arith.constant 0 : index
    %170 = vector.load %arg8[%c0_87, %c0_88, %c0_89] : memref<1x1600x64xbf16, #tpu.memory_space<vmem>>, vector<1x1600x64xbf16>
    %171 = vector.shape_cast %170 : vector<1x1600x64xbf16> to vector<1600x64xbf16>
    %cst_90 = arith.constant dense<0.000000e+00> : vector<8x64xf32>
    %172 = tpu.matmul %169, %171, %cst_90 {dimension_numbers = #tpu.dot_dimension_numbers<[1], [0], [0], [1], [0, 0, 1, 1], [], []>} : vector<8x1600xbf16>, vector<1600x64xbf16>, vector<8x64xf32> -> vector<8x64xf32>
    %173 = vector.broadcast %3 : vector<1x64xf32> to vector<8x64xf32>
    %174 = arith.addf %172, %173 : vector<8x64xf32>
    %c0_91 = arith.constant 0 : index
    %c0_92 = arith.constant 0 : index
    %c0_93 = arith.constant 0 : index
    %175 = vector.load %arg13[%c0_91, %c0_92, %c0_93] : memref<1x8x64xf32, #tpu.memory_space<vmem>>, vector<1x8x64xf32>
    %176 = vector.shape_cast %175 : vector<1x8x64xf32> to vector<8x64xf32>
    %177 = vector.shape_cast %174 : vector<8x64xf32> to vector<1x8x64xf32>
    tpu.vector_store %arg13[%c0_91, %c0_92, %c0_93], %177 {strides = array<i32>} : memref<1x8x64xf32, #tpu.memory_space<vmem>>, vector<1x8x64xf32>,
    return
  }
  func.func @transform_0(%arg0: i32) -> (i32, i32, i32) {
    %c0_i32 = arith.constant 0 : i32
    %c0_i32_0 = arith.constant 0 : i32
    %c0_i32_1 = arith.constant 0 : i32
    return %arg0, %c0_i32, %c0_i32_0 : i32, i32, i32
  }
  func.func @transform_1(%arg0: i32) -> (i32, i32, i32) {
    %c0_i32 = arith.constant 0 : i32
    %c0_i32_0 = arith.constant 0 : i32
    %c0_i32_1 = arith.constant 0 : i32
    return %arg0, %c0_i32, %c0_i32_0 : i32, i32, i32
  }
  func.func @transform_2(%arg0: i32) -> (i32, i32, i32) {
    %c0_i32 = arith.constant 0 : i32
    %c0_i32_0 = arith.constant 0 : i32
    %c0_i32_1 = arith.constant 0 : i32
    return %arg0, %c0_i32, %c0_i32_0 : i32, i32, i32
  }
  func.func @transform_3(%arg0: i32) -> (i32, i32, i32) {
    %c0_i32 = arith.constant 0 : i32
    %c0_i32_0 = arith.constant 0 : i32
    %c0_i32_1 = arith.constant 0 : i32
    return %arg0, %c0_i32, %c0_i32_0 : i32, i32, i32
  }
  func.func @transform_4(%arg0: i32) -> (i32, i32, i32) {
    %c0_i32 = arith.constant 0 : i32
    %c0_i32_0 = arith.constant 0 : i32
    %c0_i32_1 = arith.constant 0 : i32
    return %arg0, %c0_i32, %c0_i32_0 : i32, i32, i32
  }
  func.func @transform_5(%arg0: i32) -> (i32, i32, i32) {
    %c0_i32 = arith.constant 0 : i32
    %c0_i32_0 = arith.constant 0 : i32
    %c0_i32_1 = arith.constant 0 : i32
    return %arg0, %c0_i32, %c0_i32_0 : i32, i32, i32
  }
  func.func @transform_6(%arg0: i32) -> (i32, i32, i32) {
    %c0_i32 = arith.constant 0 : i32
    %c0_i32_0 = arith.constant 0 : i32
    %c0_i32_1 = arith.constant 0 : i32
    return %arg0, %c0_i32, %c0_i32_0 : i32, i32, i32
  }
  func.func @transform_7(%arg0: i32) -> (i32, i32, i32) {
    %c0_i32 = arith.constant 0 : i32
    %c0_i32_0 = arith.constant 0 : i32
    %c0_i32_1 = arith.constant 0 : i32
    return %arg0, %c0_i32, %c0_i32_0 : i32, i32, i32
  }
  func.func @transform_8(%arg0: i32) -> (i32, i32, i32) {
    %c0_i32 = arith.constant 0 : i32
    %c0_i32_0 = arith.constant 0 : i32
    %c0_i32_1 = arith.constant 0 : i32
    return %arg0, %c0_i32, %c0_i32_0 : i32, i32, i32
  }
  func.func @transform_9(%arg0: i32) -> (i32, i32, i32) {
    %c0_i32 = arith.constant 0 : i32
    %c0_i32_0 = arith.constant 0 : i32
    %c0_i32_1 = arith.constant 0 : i32
    return %arg0, %c0_i32, %c0_i32_0 : i32, i32, i32
  }
  func.func @transform_10(%arg0: i32) -> (i32, i32, i32) {
    %c0_i32 = arith.constant 0 : i32
    %c0_i32_0 = arith.constant 0 : i32
    %c0_i32_1 = arith.constant 0 : i32
    return %arg0, %c0_i32, %c0_i32_0 : i32, i32, i32
  }
  func.func @transform_11(%arg0: i32) -> (i32, i32, i32) {
    %c0_i32 = arith.constant 0 : i32
    %c0_i32_0 = arith.constant 0 : i32
    %c0_i32_1 = arith.constant 0 : i32
    return %arg0, %c0_i32, %c0_i32_0 : i32, i32, i32
  }
  func.func @transform_12(%arg0: i32) -> (i32, i32, i32) {
    %c0_i32 = arith.constant 0 : i32
    %c0_i32_0 = arith.constant 0 : i32
    %c0_i32_1 = arith.constant 0 : i32
    return %arg0, %c0_i32, %c0_i32_0 : i32, i32, i32
  }
}

</mosaic_0001>

<bundles_post_ra>
// kernel: tpu_custom_call.1
= control target key start
LH: loop header
LB: loop body
LE: loop exit
PB: predicated region body
PF: predicated region fallthrough
CT: control target
= control target key end

     0   :  { %s13736_s0 = inlined_call_operand.vmem [shape: f32[2,8,64], index: 0, kind: input, shape index: {}]   ;;  %s13737_s1 = inlined_call_operand.vmem [shape: f32[2,8,1], index: 1, kind: input, shape index: {}]   ;;  %s13738_s2 = inlined_call_operand.vmem [shape: f32[2,8,8], index: 2, kind: input, shape index: {}]   ;;  %s13739_s3 = inlined_call_operand.vmem [shape: bf16[2,64,1600], index: 3, kind: input, shape index: {}]   ;;  %s13740_s4 = inlined_call_operand.vmem [shape: bf16[2,1600,320], index: 4, kind: input, shape index: {}]   ;;  %s13741_s5 = inlined_call_operand.vmem [shape: f32[2,320,16], index: 5, kind: input, shape index: {}]   ;;  %s13742_s6 = inlined_call_operand.vmem [shape: bf16[2,320,1600], index: 6, kind: input, shape index: {}]   ;;  %s13743_s7 = inlined_call_operand.vmem [shape: bf16[2,1600,64], index: 7, kind: input, shape index: {}]   ;;  %s13744_s8 = inlined_call_operand.vmem [shape: f32[2,4,1600], index: 8, kind: input, shape index: {}]   ;;  %s13745_s9 = inlined_call_operand.vmem [shape: f32[2,13,320], index: 9, kind: input, shape index: {}]   ;;  %s13746_s10 = inlined_call_operand.vmem [shape: f32[2,1,82], index: 10, kind: input, shape index: {}]   ;;  %s13747_s11 = inlined_call_operand.hbm [shape: f32[2,8,24], index: 11, kind: output, shape index: {0}]   ;;  %s13748_s12 = inlined_call_operand.hbm [shape: f32[2,8,64], index: 12, kind: output, shape index: {1}]  }
   0x1   :  { %13755 = sst [smem:[#allocation8_spill]] %s13736_s0 }
   0x2   :  { %13756 = sst [smem:[#allocation9_spill]] %s13737_s1 }
   0x3   :  { %13757 = sst [smem:[#allocation10_spill]] %s13739_s3 }
   0x4   :  { %18 = vsyncpa [#allocation3], 0 }
   0x5   :  { %20 = vsyncpa [#allocation3 + $0x1], 0 }
   0x6   :  { %21 = vsyncpa [#allocation5], 0 }
   0x7   :  { %23 = vsyncpa [#allocation5 + $0x1], 0  ;;  %s11871_s21 = smov 0   ;;  %s11873_s22 = smov 0  }
   0x8   :  { %s11875_s23 = smov 0   ;;  %s11877_s24 = smov 0  }
   0x9 LB: > { %s11892_s25 = sadd.s32 4294967295, %s11791_s24   ;;  %s9325_s26 = sadd.s32 4294967294, %s11791_s24   ;;  %s11791_s24 = sphi %s11877_s24, %s13771_s24   ;;  %s11787_s23 = sphi %s11875_s23, %s13770_s23   ;;  %s11783_s22 = sphi %s11873_s22, %s13769_s22   ;;  %s11779_s21 = sphi %s11871_s21, %s13768_s21  }
   0xa   : > { %s11896_s27 = sadd.s32 1, %s11791_s24   ;;  %s322_s28 = sadd.s32 1, %s11787_s23 }
   0xb   : > { %s319_s29 = ssub.s32 %s11791_s24, %s11896_s27  ;;  %p332_p0 = scmp.ne.s32.totalorder %s11787_s23, %s11783_s22 }
   0xc   : > { %p320_p1 = scmp.eq.s32.totalorder %s319_s29, 0  ;;  %p333_p2 = scmp.eq.s32.totalorder %s11892_s25, 1 }
   0xd   : > { %p338_p3 = scmp.ne.s32.totalorder %s11783_s22, %s11779_s21  ;;  %p339_p4 = scmp.eq.s32.totalorder %s9325_s26, 1 }
   0xe   : > { %s11907_s30 = scalar_select %p320_p1, %s11787_s23, %s322_s28  }
   0xf   : > { %p11909_p5 = por %p333_p2, %p332_p0  ;;  %p11913_p6 = por %p339_p4, %p338_p3 }
  0x10   : > { %p9328_p7 = scmp.ge.s32.totalorder %s11791_s24, 1  ;;  %p466_p8 = scmp.lt.s32.totalorder %s11791_s24, 3 }
  0x12   : > { %p467_p9 = pnand %p9328_p7, %p466_p8 }
  0x13   : > { %p558_p10 = scmp.lt.s32.totalorder (!%p467_p9), %s11892_s25, 1  ;;  %v13749_v0 = vmov (!%p467_p9), 0   ;;  %v11794_v1 = vmov (!%p467_p9), 80   ;;  %s13760_s3 = sld [smem:[#allocation10_spill]] (!%p467_p9)  ;;  %vm932_vm0 = vcmask (!%p467_p9), 523264   ;;  %v13751_v54 = vmov (!%p467_p9), 0.0  }
  0x14   : > { %470 = sbr.rel (%p467_p9) target bundleno = 2356 (0x934), region = 64  ;;  %968 = vmatprep.mubr.bf16.mxu0 (!%p467_p9), %v13749_v0  ;;  %1009 = vmatprep.mubr.bf16.mxu1 (!%p467_p9), %v13749_v0  ;;  %s13761_s0 = sld [smem:[#allocation8_spill]] (!%p467_p9)  ;;  %vm11796_vm1 = vmmov (!%p467_p9), 0  }
  0x15   : > { %10669 = vset.pattern.permute.xlu0 (!%p467_p9), %v11794_v1  ;;  %10671 = vset.pattern.permute.xlu1 (!%p467_p9), %v13749_v0  ;;  %s13763_s1 = sld [smem:[#allocation9_spill]] (!%p467_p9) }
  0x1b   : > { %s11923_s15 = scalar_select %p558_p10, %s11892_s25, 1 }
  0x1d   : > { %s10607_s16 = smul.u32 416, %s11923_s15  ;;  %s11940_s20 = sshll.u32 %s11923_s15, 3 }
  0x1e   : > { %s561_s29 = scalar_lea.vmem %s13761_s0, %s11940_s20  ;;  %s11989_s26 = scalar_lea.vmem %s13746_s10, %s11923_s15 }
  0x1f   : > { %s11930_s19 = scalar_lea.vmem %s13760_s3, %s10607_s16  ;;  %v610_v16 = vld [vmem:[%s561_s29] sm:$0xff]  ;;  %s10608_s16 = smul.u32 2400, %s11923_s15 }
  0x20   : > { %v10673_v2 = vld [vmem:[%s11930_s19 + $0x4] ss:$52 sps:$4 sm:$0xff]   ;;  %v10675_v3 = vld [vmem:[%s11930_s19 + $0xc] ss:$52 sps:$4 sm:$0xff]   ;;  %v10678_v5 = vld [vmem:[%s11930_s19 + $0x8] ss:$52 sps:$4 sm:$0xff]   ;;  %v11957_v21 = vpack.c.bf16 %v610_v16, %v610_v16 }
  0x21   : > { %936 = vmatprep.subr.bf16.mxu0 %v10673_v2  ;;  %v10677_v4 = vld [vmem:[%s11930_s19] ss:$52 sps:$4 sm:$0xff]   ;;  %977 = vmatprep.subr.bf16.mxu1 %v10675_v3  ;;  %v10683_v8 = vld [vmem:[%s11930_s19 + $0x68] ss:$52 sps:$4 sm:$0xff]   ;;  %v10684_v9 = vld [vmem:[%s11930_s19 + $0x70] ss:$52 sps:$4 sm:$0xff]   ;;  %s11997_s0 = scalar_lea.vmem %s13740_s4, %s10608_s16 }
  0x22   : > { %v10679_v6 = vld [vmem:[%s11930_s19 + $0x6c] ss:$52 sps:$4 sm:$0xff]   ;;  %937 = vmatpush1.bf16.msra.mxu0 %v10677_v4  ;;  %978 = vmatpush1.bf16.msra.mxu1 %v10678_v5  ;;  %v10681_v7 = vld [vmem:[%s11930_s19 + $0x74] ss:$52 sps:$4 sm:$0xff]   ;;  %v10687_v11 = vld [vmem:[%s11930_s19 + $0xdc] ss:$52 sps:$4 sm:$0xff]  }
  0x23   : > { %938 = vmatprep.subr.bf16.mxu0 %v10679_v6  ;;  %979 = vmatprep.subr.bf16.mxu1 %v10681_v7  ;;  %v10685_v10 = vld [vmem:[%s11930_s19 + $0xd4] ss:$52 sps:$4 sm:$0xff]   ;;  %v10689_v12 = vld [vmem:[%s11930_s19 + $0xd0] ss:$52 sps:$4 sm:$0xff]   ;;  %v10690_v13 = vld [vmem:[%s11930_s19 + $0xd8] ss:$52 sps:$4 sm:$0xff]  }
  0x24   : > { %v10691_v14 = vld [vmem:[%s11930_s19 + $0x13c] ss:$52 sps:$4 sm:$0xff]   ;;  %v10693_v15 = vld [vmem:[%s11930_s19 + $0x144] ss:$52 sps:$4 sm:$0xff]   ;;  %v10696_v18 = vld [vmem:[%s11930_s19 + $0x140] ss:$52 sps:$4 sm:$0xff]  }
  0x25   : > { %v10695_v17 = vld [vmem:[%s11930_s19 + $0x138] ss:$52 sps:$4 sm:$0xff]   ;;  %v10699_v19 = vld [vmem:[%s11930_s19 + $0x14] ss:$52 sps:$4 sm:$0xff]   ;;  %v10702_v20 = vld [vmem:[%s11930_s19 + $0x1c] ss:$52 sps:$4 sm:$0xff]  }
  0x26   : > { %939 = vmatpush1.bf16.msra.mxu0 %v10683_v8  ;;  %980 = vmatpush1.bf16.msra.mxu1 %v10684_v9  ;;  %v10697_v22 = vld [vmem:[%s11930_s19 + $0x10] ss:$52 sps:$4 sm:$0xff]   ;;  %v10700_v23 = vld [vmem:[%s11930_s19 + $0x18] ss:$52 sps:$4 sm:$0xff]   ;;  %v10706_v27 = vld [vmem:[%s11930_s19 + $0x80] ss:$52 sps:$4 sm:$0xff]  }
  0x27   : > { %940 = vmatprep.subr.bf16.mxu0 %v10685_v10  ;;  %981 = vmatprep.subr.bf16.mxu1 %v10687_v11  ;;  %v10705_v24 = vld [vmem:[%s11930_s19 + $0x7c] ss:$52 sps:$4 sm:$0xff]   ;;  %v10708_v25 = vld [vmem:[%s11930_s19 + $0x84] ss:$52 sps:$4 sm:$0xff]   ;;  %v10714_v29 = vld [vmem:[%s11930_s19 + $0xec] ss:$52 sps:$4 sm:$0xff]  }
  0x28   : > { %v10703_v26 = vld [vmem:[%s11930_s19 + $0x78] ss:$52 sps:$4 sm:$0xff]   ;;  %v10709_v30 = vld [vmem:[%s11930_s19 + $0xe0] ss:$52 sps:$4 sm:$0xff]   ;;  %v10712_v31 = vld [vmem:[%s11930_s19 + $0xe8] ss:$52 sps:$4 sm:$0xff]  }
  0x29   : > { %v10711_v28 = vld [vmem:[%s11930_s19 + $0xe4] ss:$52 sps:$4 sm:$0xff]   ;;  %v10717_v32 = vld [vmem:[%s11930_s19 + $0x14c] ss:$52 sps:$4 sm:$0xff]   ;;  %v10720_v33 = vld [vmem:[%s11930_s19 + $0x154] ss:$52 sps:$4 sm:$0xff]  }
  0x2a   : > { %941 = vmatpush1.bf16.msra.mxu0 %v10689_v12  ;;  %982 = vmatpush1.bf16.msra.mxu1 %v10690_v13  ;;  %v10715_v34 = vld [vmem:[%s11930_s19 + $0x148] ss:$52 sps:$4 sm:$0xff]   ;;  %v10718_v35 = vld [vmem:[%s11930_s19 + $0x150] ss:$52 sps:$4 sm:$0xff]   ;;  %v10735_v37 = vld [vmem:[%s11930_s19 + $0x2c] ss:$52 sps:$4 sm:$0xff]  }
  0x2b   : > { %942 = vmatprep.subr.bf16.mxu0 %v10691_v14  ;;  %983 = vmatprep.subr.bf16.mxu1 %v10693_v15  ;;  %v10723_v36 = vld [vmem:[%s11930_s19 + $0x24] ss:$52 sps:$4 sm:$0xff]   ;;  %v10721_v38 = vld [vmem:[%s11930_s19 + $0x20] ss:$52 sps:$4 sm:$0xff]   ;;  %v10733_v39 = vld [vmem:[%s11930_s19 + $0x28] ss:$52 sps:$4 sm:$0xff]  }
  0x2c   : > { %v10726_v40 = vld [vmem:[%s11930_s19 + $0x8c] ss:$52 sps:$4 sm:$0xff]   ;;  %v10724_v41 = vld [vmem:[%s11930_s19 + $0x88] ss:$52 sps:$4 sm:$0xff]   ;;  %v10736_v42 = vld [vmem:[%s11930_s19 + $0x90] ss:$52 sps:$4 sm:$0xff]  }
  0x2d   : > { %v10738_v43 = vld [vmem:[%s11930_s19 + $0x94] ss:$52 sps:$4 sm:$0xff]   ;;  %v10742_v45 = vld [vmem:[%s11930_s19 + $0xfc] ss:$52 sps:$4 sm:$0xff]   ;;  %v9403_v46 = vld [vmem:[%s11989_s26] ss:$0 sm:$0xff] }
  0x2e   : > { %943 = vmatpush1.bf16.msra.mxu0 %v10695_v17  ;;  %984 = vmatpush1.bf16.msra.mxu1 %v10696_v18  ;;  %v10729_v44 = vld [vmem:[%s11930_s19 + $0xf4] ss:$52 sps:$4 sm:$0xff]   ;;  %v10727_v47 = vld [vmem:[%s11930_s19 + $0xf0] ss:$52 sps:$4 sm:$0xff]   ;;  %v10740_v48 = vld [vmem:[%s11930_s19 + $0xf8] ss:$52 sps:$4 sm:$0xff]  }
  0x2f   : > { %1018 = vmatprep.subr.bf16.mxu0 %v10699_v19  ;;  %1059 = vmatprep.subr.bf16.mxu1 %v10702_v20  ;;  %v10732_v49 = vld [vmem:[%s11930_s19 + $0x15c] ss:$52 sps:$4 sm:$0xff]   ;;  %v10746_v50 = vld [vmem:[%s11930_s19 + $0x164] ss:$52 sps:$4 sm:$0xff]   ;;  %v10744_v52 = vld [vmem:[%s11930_s19 + $0x160] ss:$52 sps:$4 sm:$0xff]  }
  0x30   : > { %1840 = vperm.xlu0 %10669, %v9403_v46   ;;  %v10730_v51 = vld [vmem:[%s11930_s19 + $0x158] ss:$52 sps:$4 sm:$0xff]   ;;  %v10739_v53 = vld [vmem:[%s11930_s19 + $0x30] ss:$52 sps:$4 sm:$0xff]   ;;  %v10747_v56 = vld [vmem:[%s11930_s19 + $0x100] ss:$52 sps:$4 sm:$0xff]  }
  0x31   : > { %9393 = vmatmul.mubr.msk.bf16.vlgmr.msra.gmra.mrb[0].mxu0 %vm932_vm0, %v11957_v21  ;;  %9394 = vmatmul.mubr.msk.bf16.vlgmr.msra.gmra.mrb[0].mxu1 %vm932_vm0, %v11957_v21  ;;  %v10743_v55 = vld [vmem:[%s11930_s19 + $0x98] ss:$52 sps:$4 sm:$0xff]   ;;  %v10748_v57 = vld [vmem:[%s11930_s19 + $0x168] ss:$52 sps:$4 sm:$0xff]   ;;  %v10751_v58 = vld [vmem:[%s11997_s0 + $0x4] ss:$12 sps:$4 sm:$0xff]  }
  0x32   : > { %1019 = vmatpush1.bf16.msra.mxu0 %v10697_v22  ;;  %1060 = vmatpush1.bf16.msra.mxu1 %v10700_v23  ;;  %v10749_v59 = vld [vmem:[%s11997_s0] ss:$12 sps:$4 sm:$0xff]   ;;  %v10754_v60 = vld [vmem:[%s11997_s0 + $0x1c] ss:$12 sps:$4 sm:$0xff]   ;;  %v10752_v61 = vld [vmem:[%s11997_s0 + $0x18] ss:$12 sps:$4 sm:$0xff]  }
  0x33   : > { %1020 = vmatprep.subr.bf16.mxu0 %v10705_v24  ;;  %1061 = vmatprep.subr.bf16.mxu1 %v10708_v25  ;;  %v10757_v62 = vld [vmem:[%s11997_s0 + $0x34] ss:$12 sps:$4 sm:$0xff]   ;;  %v10755_v63 = vld [vmem:[%s11997_s0 + $0x30] ss:$12 sps:$4 sm:$0xff]   ;;  %v10760_v1 = vld [vmem:[%s11997_s0 + $0x4c] ss:$12 sps:$4 sm:$0xff]  }
  0x34   : > { %1050 = vmatprep.mubr.bf16.mxu0 %v13749_v0  ;;  %1091 = vmatprep.mubr.bf16.mxu1 %v13749_v0  ;;  %v10758_v2 = vld [vmem:[%s11997_s0 + $0x48] ss:$12 sps:$4 sm:$0xff]   ;;  %v10763_v3 = vld [vmem:[%s11997_s0 + $0x64] ss:$12 sps:$4 sm:$0xff]   ;;  %v10761_v4 = vld [vmem:[%s11997_s0 + $0x60] ss:$12 sps:$4 sm:$0xff]  }
  0x35   : > { %v10766_v5 = vld [vmem:[%s11997_s0 + $0x7c] ss:$12 sps:$4 sm:$0xff]   ;;  %v10764_v6 = vld [vmem:[%s11997_s0 + $0x78] ss:$12 sps:$4 sm:$0xff]   ;;  %v10769_v7 = vld [vmem:[%s11997_s0 + $0x94] ss:$12 sps:$4 sm:$0xff]  }
  0x36   : > { %1021 = vmatpush1.bf16.msra.mxu0 %v10703_v26  ;;  %1062 = vmatpush1.bf16.msra.mxu1 %v10706_v27  ;;  %v10767_v8 = vld [vmem:[%s11997_s0 + $0x90] ss:$12 sps:$4 sm:$0xff]   ;;  %v10772_v9 = vld [vmem:[%s11997_s0 + $0xac] ss:$12 sps:$4 sm:$0xff]   ;;  %v10770_v10 = vld [vmem:[%s11997_s0 + $0xa8] ss:$12 sps:$4 sm:$0xff]  }
  0x37   : > { %1022 = vmatprep.subr.bf16.mxu0 %v10711_v28  ;;  %1063 = vmatprep.subr.bf16.mxu1 %v10714_v29  ;;  %v10775_v11 = vld [vmem:[%s11997_s0 + $0xc4] ss:$12 sps:$4 sm:$0xff]   ;;  %v10776_v12 = vld [vmem:[%s11997_s0 + $0xc8] ss:$12 sps:$4 sm:$0xff]   ;;  %v10773_v13 = vld [vmem:[%s11997_s0 + $0xc0] ss:$12 sps:$4 sm:$0xff]  }
  0x38   : > { %v10777_v14 = vld [vmem:[%s11997_s0 + $0x8] ss:$12 sps:$4 sm:$0xff]   ;;  %v10781_v16 = vld [vmem:[%s11997_s0 + $0xe0] ss:$12 sps:$4 sm:$0xff]   ;;  %v10778_v17 = vld [vmem:[%s11997_s0 + $0xd8] ss:$12 sps:$4 sm:$0xff]  }
  0x39   : > { %v10780_v15 = vld [vmem:[%s11997_s0 + $0xdc] ss:$12 sps:$4 sm:$0xff]   ;;  %v10782_v18 = vld [vmem:[%s11997_s0 + $0x20] ss:$12 sps:$4 sm:$0xff]   ;;  %v10786_v20 = vld [vmem:[%s11997_s0 + $0xf8] ss:$12 sps:$4 sm:$0xff]  }
  0x3a   : > { %1023 = vmatpush1.bf16.msra.mxu0 %v10709_v30  ;;  %1064 = vmatpush1.bf16.msra.mxu1 %v10712_v31  ;;  %v10785_v19 = vld [vmem:[%s11997_s0 + $0xf4] ss:$12 sps:$4 sm:$0xff]   ;;  %v10787_v22 = vld [vmem:[%s11997_s0 + $0x38] ss:$12 sps:$4 sm:$0xff]   ;;  %v10791_v24 = vld [vmem:[%s11997_s0 + $0x110] ss:$12 sps:$4 sm:$0xff]  }
  0x3b   : > { %1024 = vmatprep.subr.bf16.mxu0 %v10717_v32  ;;  %1065 = vmatprep.subr.bf16.mxu1 %v10720_v33  ;;  %v10790_v23 = vld [vmem:[%s11997_s0 + $0x10c] ss:$12 sps:$4 sm:$0xff]   ;;  %v10788_v25 = vld [vmem:[%s11997_s0 + $0x108] ss:$12 sps:$4 sm:$0xff]   ;;  %v10792_v26 = vld [vmem:[%s11997_s0 + $0x50] ss:$12 sps:$4 sm:$0xff]  }
  0x3c   : > { %v10795_v27 = vld [vmem:[%s11997_s0 + $0x124] ss:$12 sps:$4 sm:$0xff]   ;;  %v10796_v28 = vld [vmem:[%s11997_s0 + $0x128] ss:$12 sps:$4 sm:$0xff]   ;;  %v10793_v29 = vld [vmem:[%s11997_s0 + $0x120] ss:$12 sps:$4 sm:$0xff]  }
  0x3d   : > { %v10797_v30 = vld [vmem:[%s11997_s0 + $0x68] ss:$12 sps:$4 sm:$0xff]   ;;  %v10801_v32 = vld [vmem:[%s11997_s0 + $0x140] ss:$12 sps:$4 sm:$0xff]   ;;  %v10798_v33 = vld [vmem:[%s11997_s0 + $0x138] ss:$12 sps:$4 sm:$0xff]  }
  0x3e   : > { %1025 = vmatpush1.bf16.msra.mxu0 %v10715_v34  ;;  %1066 = vmatpush1.bf16.msra.mxu1 %v10718_v35  ;;  %v10800_v31 = vld [vmem:[%s11997_s0 + $0x13c] ss:$12 sps:$4 sm:$0xff]   ;;  %v10802_v34 = vld [vmem:[%s11997_s0 + $0x80] ss:$12 sps:$4 sm:$0xff]   ;;  %s10610_s19 = smul.u32 2080, %s11923_s15  ;;  %s11800_s3 = smov 8  }
  0x3f   : > { %1100 = vmatprep.subr.bf16.mxu0 %v10723_v36  ;;  %1141 = vmatprep.subr.bf16.mxu1 %v10735_v37  ;;  %v10805_v35 = vld [vmem:[%s11997_s0 + $0x154] ss:$12 sps:$4 sm:$0xff]   ;;  %v10806_v36 = vld [vmem:[%s11997_s0 + $0x158] ss:$12 sps:$4 sm:$0xff]   ;;  %v10803_v37 = vld [vmem:[%s11997_s0 + $0x150] ss:$12 sps:$4 sm:$0xff]  }
  0x40   : > { %s12078_s18 = scalar_lea.vmem %s13742_s6, %s10610_s19  ;;  %s10612_s28 = smul.u32 52, %s11923_s15 }
  0x41   : > { %9395 = vmatmul.mubr.msk.bf16.vlgmr.msra.gmra.mrb[4].mxu0 %vm932_vm0, %v11957_v21  ;;  %9396 = vmatmul.mubr.msk.bf16.vlgmr.msra.gmra.mrb[4].mxu1 %vm932_vm0, %v11957_v21  ;;  %s10611_s17 = smul.u32 800, %s11923_s15 }
  0x42   : > { %1101 = vmatpush1.bf16.msra.mxu0 %v10721_v38  ;;  %1142 = vmatpush1.bf16.msra.mxu1 %v10733_v39  ;;  %v10807_v38 = vld [vmem:[%s11997_s0 + $0x98] ss:$12 sps:$4 sm:$0xff]   ;;  %s12092_s16 = scalar_lea.vmem %s13744_s8, %s10612_s28  ;;  %s569_s28 = scalar_lea.vmem %s13738_s2, %s11940_s20 }
  0x43   : > { %1102 = vmatprep.subr.bf16.mxu0 %v10726_v40  ;;  %1132 = vmatprep.mubr.bf16.mxu0 %v13749_v0  ;;  %v10810_v39 = vld [vmem:[%s11997_s0 + $0x16c] ss:$12 sps:$4 sm:$0xff]   ;;  %v10811_v40 = vld [vmem:[%s11997_s0 + $0x170] ss:$12 sps:$4 sm:$0xff]   ;;  %s12500_s19 = scalar_lea.vmem %s13743_s7, %s10611_s17  ;;  %s12946_s17 = sand.u32 1, %s11783_s22  }
  0x44   : > { %1143 = vmatprep.subr.bf16.mxu1 %v10738_v43  ;;  %1173 = vmatprep.mubr.bf16.mxu1 %v13749_v0  ;;  %v10815_v43 = vld [vmem:[%s11997_s0 + $0x184] ss:$12 sps:$4 sm:$0xff]  }
  0x46   : > { %1103 = vmatpush1.bf16.msra.mxu0 %v10724_v41  ;;  %1144 = vmatpush1.bf16.msra.mxu1 %v10736_v42  ;;  %v10808_v41 = vld [vmem:[%s11997_s0 + $0x168] ss:$12 sps:$4 sm:$0xff]   ;;  %v10812_v42 = vld [vmem:[%s11997_s0 + $0xb0] ss:$12 sps:$4 sm:$0xff]  }
  0x47   : > { %1104 = vmatprep.subr.bf16.mxu0 %v10729_v44  ;;  %1145 = vmatprep.subr.bf16.mxu1 %v10742_v45  ;;  %v10816_v44 = vld [vmem:[%s11997_s0 + $0x248] ss:$12 sps:$4 sm:$0xff]   ;;  %v1480_v45 = vlaneseq }
  0x49   : > { %v12087_v46 = vshrl.u32 %v1480_v45, 7 }
  0x4a   : > { %1105 = vmatpush1.bf16.msra.mxu0 %v10727_v47  ;;  %1146 = vmatpush1.bf16.msra.mxu1 %v10740_v48  ;;  %v12095_v47 = vld [vmem:[%s12092_s16] ss:$4 sm:$0xff] }
  0x4b   : > { %1106 = vmatprep.subr.bf16.mxu0 %v10732_v49  ;;  %1147 = vmatprep.subr.bf16.mxu1 %v10746_v50  ;;  %v12098_v48 = vsub.s32 0, %v12087_v46  ;;  %v12101_v49 = vsub.s32 2, %v12087_v46  ;;  %v11797_v50 = vmov 1966171168  }
  0x4e   : > { %1107 = vmatpush1.bf16.msra.mxu0 %v10730_v51  ;;  %1148 = vmatpush1.bf16.msra.mxu1 %v10744_v52  ;;  %v12103_v51 = vunpack.c.l.s4 %v11797_v50  ;;  %v12106_v52 = vsub.s32 1, %v12087_v46 }
  0x4f   : > { %10443 = vmatprep.subr.bf16.mxu0 %v13751_v54  ;;  %3885 = vmatprep.subr.bf16.mxu1 %v10751_v58  ;;  %v1491_v58 = vrot.slane %v12095_v47, %v12101_v49 }
  0x51   : > { %9397 = vmatmul.mubr.msk.bf16.vlgmr.msra.gmra.mrb[8].mxu0 %vm932_vm0, %v11957_v21  ;;  %9398 = vmatmul.mubr.msk.bf16.vlgmr.msra.gmra.mrb[8].mxu1 %vm932_vm0, %v11957_v21 }
  0x52   : > { %10444 = vmatpush3.bf16.msra.mxu0 %v10739_v53  ;;  %10451 = vmatprep.mubr.msk.bf16.mxu0 %vm11796_vm1, %v13751_v54  ;;  %v12109_v53 = vsub.s32 3, %v12087_v46 }
  0x53   : > { %10445 = vmatprep.subr.bf16.mxu0 %v13751_v54  ;;  %3886 = vmatpush1.bf16.msra.mxu1 %v10749_v59  ;;  %v1655_v59 = vunpack.c.0.s8 %v12103_v51 }
  0x54   : > { %3887 = vmatprep.subr.bf16.mxu1 %v10754_v60  ;;  %v1487_v60 = vrot.slane %v12095_v47, %v12106_v52 }
  0x56   : > { %10446 = vmatpush3.bf16.msra.mxu0 %v10743_v55  ;;  %v1483_v55 = vrot.slane %v12095_v47, %v12098_v48 }
  0x57   : > { %10447 = vmatprep.subr.bf16.mxu0 %v13751_v54  ;;  %3888 = vmatpush1.bf16.msra.mxu1 %v10752_v61  ;;  %v1495_v61 = vrot.slane %v12095_v47, %v12109_v53 }
  0x58   : > { %3889 = vmatprep.subr.bf16.mxu1 %v10757_v62 }
  0x5a   : > { %10448 = vmatpush3.bf16.msra.mxu0 %v10747_v56 }
  0x5b   : > { %10449 = vmatprep.subr.bf16.mxu0 %v13751_v54  ;;  %3890 = vmatpush1.bf16.msra.mxu1 %v10755_v63 }
  0x5c   : > { %3891 = vmatprep.subr.bf16.mxu1 %v10760_v1 }
  0x5e   : > { %10450 = vmatpush3.bf16.msra.mxu0 %v10748_v57 }
  0x5f   : > { %3892 = vmatpush1.bf16.msra.mxu1 %v10758_v2  ;;  %10096 = vmatprep.subr.bf16.mxu0 %v10776_v12 }
  0x60   : > { %3893 = vmatprep.subr.bf16.mxu1 %v10763_v3 }
  0x61   : > { %10452 = vmatmul.mubr.msk.bf16.vlgmr.msra.gmra.mrb[12].mxu0 %vm932_vm0, %v11957_v21  ;;  %v10783_v21 = vld [vmem:[%s11997_s0 + $0xf0] ss:$12 sps:$4 sm:$0xff]  }
  0x62   : > { %10097 = vmatpush3.bf16.msra.mxu0 %v10777_v14 }
  0x63   : > { %3894 = vmatpush1.bf16.msra.mxu1 %v10761_v4  ;;  %10098 = vmatprep.subr.bf16.mxu0 %v10781_v16 }
  0x64   : > { %3895 = vmatprep.subr.bf16.mxu1 %v10766_v5 }
  0x66   : > { %10099 = vmatpush3.bf16.msra.mxu0 %v10782_v18 }
  0x67   : > { %3896 = vmatpush1.bf16.msra.mxu1 %v10764_v6  ;;  %10100 = vmatprep.subr.bf16.mxu0 %v10786_v20 }
  0x68   : > { %3897 = vmatprep.subr.bf16.mxu1 %v10769_v7 }
  0x6a   : > { %10101 = vmatpush3.bf16.msra.mxu0 %v10787_v22 }
  0x6b   : > { %3898 = vmatpush1.bf16.msra.mxu1 %v10767_v8  ;;  %10102 = vmatprep.subr.bf16.mxu0 %v10791_v24 }
  0x6c   : > { %3899 = vmatprep.subr.bf16.mxu1 %v10772_v9 }
  0x6e   : > { %10103 = vmatpush3.bf16.msra.mxu0 %v10792_v26 }
  0x6f   : > { %3900 = vmatpush1.bf16.msra.mxu1 %v10770_v10  ;;  %10104 = vmatprep.subr.bf16.mxu0 %v10796_v28 }
  0x70   : > { %3901 = vmatprep.subr.bf16.mxu1 %v10775_v11 }
  0x72   : > { %10105 = vmatpush3.bf16.msra.mxu0 %v10797_v30 }
  0x73   : > { %3902 = vmatpush1.bf16.msra.mxu1 %v10773_v13  ;;  %10106 = vmatprep.subr.bf16.mxu0 %v10801_v32 }
  0x74   : > { %3903 = vmatprep.subr.bf16.mxu1 %v10780_v15 }
  0x76   : > { %10107 = vmatpush3.bf16.msra.mxu0 %v10802_v34 }
  0x77   : > { %3904 = vmatpush1.bf16.msra.mxu1 %v10778_v17  ;;  %10108 = vmatprep.subr.bf16.mxu0 %v10806_v36 }
  0x78   : > { %3905 = vmatprep.subr.bf16.mxu1 %v10785_v19 }
  0x7a   : > { %10109 = vmatpush3.bf16.msra.mxu0 %v10807_v38 }
  0x7b   : > { %3906 = vmatpush1.bf16.msra.mxu1 %v10783_v21  ;;  %10110 = vmatprep.subr.bf16.mxu0 %v10811_v40 }
  0x7c   : > { %3907 = vmatprep.subr.bf16.mxu1 %v10790_v23 }
  0x7e   : > { %10111 = vmatpush3.bf16.msra.mxu0 %v10812_v42 }
  0x7f   : > { %3908 = vmatpush1.bf16.msra.mxu1 %v10788_v25  ;;  %10118 = vmatprep.subr.bf16.mxu0 %v10816_v44 }
  0x80   : > { %3909 = vmatprep.subr.bf16.mxu1 %v10795_v27 }
  0x83   : > { %3910 = vmatpush1.bf16.msra.mxu1 %v10793_v29 }
  0x84   : > { %3911 = vmatprep.subr.bf16.mxu1 %v10800_v31 }
  0x87   : > { %3912 = vmatpush1.bf16.msra.mxu1 %v10798_v33 }
  0x88   : > { %3913 = vmatprep.subr.bf16.mxu1 %v10805_v35 }
  0x8b   : > { %3914 = vmatpush1.bf16.msra.mxu1 %v10803_v37 }
  0x8c   : > { %3915 = vmatprep.subr.bf16.mxu1 %v10810_v39 }
  0x8f   : > { %3916 = vmatpush1.bf16.msra.mxu1 %v10808_v41 }
  0x90   : > { %3926 = vmatprep.subr.bf16.mxu1 %v10815_v43 }
 0x104   : > { %v12113_v56 = vpop.f32.mrb[0].mxu0  ;;  %v12115_v57 = vpop.f32.mrb[0].mxu1 }
 0x105   : > { %v1229_v62 = vrot.slane %v12113_v56, 4  ;;  %v1321_v63 = vmul.f32 %v12113_v56, %v12113_v56  ;;  %v1241_v1 = vrot.slane %v12115_v57, 4  ;;  %v1323_v2 = vmul.f32 %v12115_v57, %v12115_v57  ;;  %v12130_v3 = vpop.f32.mrb[1].mxu0  ;;  %v12132_v4 = vpop.f32.mrb[1].mxu1 }
 0x106   : > { %v1235_v5 = vrot.slane %v12130_v3, 4  ;;  %v1322_v6 = vmul.f32 %v12130_v3, %v12130_v3  ;;  %v1247_v7 = vrot.slane %v12132_v4, 4  ;;  %v1324_v8 = vmul.f32 %v12132_v4, %v12132_v4  ;;  %v974_v9 = vpop.f32.mrb[2].mxu0  ;;  %v1015_v10 = vpop.f32.mrb[2].mxu1 }
 0x107   : > { %v1230_v11 = vadd.f32 %v1229_v62, %v12113_v56  ;;  %v1334_v12 = vrot.slane %v1321_v63, 4  ;;  %v1242_v13 = vadd.f32 %v1241_v1, %v12115_v57  ;;  %v1346_v14 = vrot.slane %v1323_v2, 4  ;;  %v975_v15 = vpop.f32.mrb[3].mxu0  ;;  %v1016_v16 = vpop.f32.mrb[3].mxu1 }
 0x108   : > { %v1236_v17 = vadd.f32 %v1235_v5, %v12130_v3  ;;  %v1340_v18 = vrot.slane %v1322_v6, 4  ;;  %v1248_v19 = vadd.f32 %v1247_v7, %v12132_v4  ;;  %v1352_v20 = vrot.slane %v1324_v8, 4 }
 0x109   : > { %v1231_v21 = vrot.slane %v1230_v11, 2  ;;  %v1335_v22 = vadd.f32 %v1334_v12, %v1321_v63  ;;  %v1243_v23 = vrot.slane %v1242_v13, 2  ;;  %v1347_v24 = vadd.f32 %v1346_v14, %v1323_v2 }
 0x10a   : > { %v1237_v25 = vrot.slane %v1236_v17, 2  ;;  %v1341_v26 = vadd.f32 %v1340_v18, %v1322_v6  ;;  %v1249_v27 = vrot.slane %v1248_v19, 2  ;;  %v1353_v28 = vadd.f32 %v1352_v20, %v1324_v8 }
 0x10b   : > { %v1232_v29 = vadd.f32 %v1231_v21, %v1230_v11  ;;  %v1336_v30 = vrot.slane %v1335_v22, 2  ;;  %v1244_v31 = vadd.f32 %v1243_v23, %v1242_v13  ;;  %v1348_v32 = vrot.slane %v1347_v24, 2 }
 0x10c   : > { %v1238_v33 = vadd.f32 %v1237_v25, %v1236_v17  ;;  %v1342_v34 = vrot.slane %v1341_v26, 2  ;;  %v1250_v35 = vadd.f32 %v1249_v27, %v1248_v19  ;;  %v1354_v36 = vrot.slane %v1353_v28, 2 }
 0x10d   : > { %v1233_v37 = vrot.slane %v1232_v29, 1  ;;  %v1337_v38 = vadd.f32 %v1336_v30, %v1335_v22  ;;  %v1245_v39 = vrot.slane %v1244_v31, 1  ;;  %v1349_v40 = vadd.f32 %v1348_v32, %v1347_v24 }
 0x10e   : > { %v1239_v41 = vrot.slane %v1238_v33, 1  ;;  %v1343_v42 = vadd.f32 %v1342_v34, %v1341_v26  ;;  %v1251_v43 = vrot.slane %v1250_v35, 1  ;;  %v1355_v44 = vadd.f32 %v1354_v36, %v1353_v28 }
 0x10f   : > { %v1234_v45 = vadd.f32 %v1233_v37, %v1232_v29  ;;  %v1338_v50 = vrot.slane %v1337_v38, 1  ;;  %v1246_v62 = vadd.f32 %v1245_v39, %v1244_v31  ;;  %v1350_v63 = vrot.slane %v1349_v40, 1 }
 0x110   : > { %v1240_v1 = vadd.f32 %v1239_v41, %v1238_v33  ;;  %v1344_v2 = vrot.slane %v1343_v42, 1  ;;  %v1252_v5 = vadd.f32 %v1251_v43, %v1250_v35  ;;  %v1356_v6 = vrot.slane %v1355_v44, 1 }
 0x111   : > { %v12144_v7 = vmul.f32 0.125, %v1234_v45  ;;  %v1339_v8 = vadd.f32 %v1338_v50, %v1337_v38  ;;  %v12146_v9 = vmul.f32 0.125, %v1246_v62  ;;  %v1351_v10 = vadd.f32 %v1350_v63, %v1349_v40 }
 0x112   : > { %v12148_v11 = vmul.f32 0.125, %v1240_v1  ;;  %v1345_v12 = vadd.f32 %v1344_v2, %v1343_v42  ;;  %v12150_v13 = vmul.f32 0.125, %v1252_v5  ;;  %v1357_v14 = vadd.f32 %v1356_v6, %v1355_v44 }
 0x113   : > { %v1413_v15 = vmul.f32 0.125, %v1339_v8  ;;  %v1426_v16 = vmul.f32 %v12144_v7, %v12144_v7  ;;  %v1415_v17 = vmul.f32 0.125, %v1351_v10  ;;  %v1428_v18 = vmul.f32 %v12146_v9, %v12146_v9 }
 0x114   : > { %v1414_v19 = vmul.f32 0.125, %v1345_v12  ;;  %v1427_v20 = vmul.f32 %v12148_v11, %v12148_v11  ;;  %v1416_v21 = vmul.f32 0.125, %v1357_v14  ;;  %v1429_v22 = vmul.f32 %v12150_v13, %v12150_v13  ;;  %v12160_v23 = vpop.f32.mrb[4].mxu0  ;;  %v12162_v24 = vpop.f32.mrb[4].mxu1 }
 0x115   : > { %v1439_v25 = vsub.f32 %v1413_v15, %v1426_v16  ;;  %v1441_v26 = vsub.f32 %v1415_v17, %v1428_v18  ;;  %v1253_v27 = vrot.slane %v12160_v23, 4  ;;  %v1325_v28 = vmul.f32 %v12160_v23, %v12160_v23  ;;  %v12167_v29 = vpop.f32.mrb[5].mxu0  ;;  %v12169_v30 = vpop.f32.mrb[5].mxu1 }
 0x116   : > { %v1440_v31 = vsub.f32 %v1414_v19, %v1427_v20  ;;  %v1442_v32 = vsub.f32 %v1416_v21, %v1429_v22  ;;  %v1265_v33 = vrot.slane %v12162_v24, 4  ;;  %v1327_v34 = vmul.f32 %v12162_v24, %v12162_v24  ;;  %v1056_v35 = vpop.f32.mrb[6].mxu0  ;;  %v1097_v36 = vpop.f32.mrb[6].mxu1 }
 0x117   : > { %v1452_v37 = vadd.f32 1e-05, %v1439_v25  ;;  %v1454_v38 = vadd.f32 1e-05, %v1441_v26  ;;  %v1254_v39 = vadd.f32 %v1253_v27, %v12160_v23  ;;  %v1358_v40 = vrot.slane %v1325_v28, 4  ;;  %v1057_v41 = vpop.f32.mrb[7].mxu0 }
 0x118   : > { %v1453_v42 = vadd.f32 1e-05, %v1440_v31  ;;  %v1455_v43 = vadd.f32 1e-05, %v1442_v32  ;;  %v1266_v44 = vadd.f32 %v1265_v33, %v12162_v24  ;;  %v1370_v45 = vrot.slane %v1327_v34, 4  ;;  %v1098_v50 = vpop.f32.mrb[7].mxu1 }
 0x119   : > { %11629 = vrsqrt.f32 %v1452_v37  ;;  %v1255_v62 = vrot.slane %v1254_v39, 2  ;;  %v1359_v63 = vadd.f32 %v1358_v40, %v1325_v28  ;;  %v1259_v1 = vrot.slane %v12167_v29, 4 }
 0x11a   : > { %11631 = vrsqrt.f32 %v1454_v38  ;;  %v1267_v2 = vrot.slane %v1266_v44, 2  ;;  %v1371_v5 = vadd.f32 %v1370_v45, %v1327_v34  ;;  %v1326_v6 = vmul.f32 %v12167_v29, %v12167_v29 }
 0x11b   : > { %11633 = vrsqrt.f32 %v1453_v42  ;;  %v1256_v8 = vadd.f32 %v1255_v62, %v1254_v39  ;;  %v1360_v10 = vrot.slane %v1359_v63, 2  ;;  %v1260_v12 = vadd.f32 %v1259_v1, %v12167_v29 }
 0x11c   : > { %11635 = vrsqrt.f32 %v1455_v43  ;;  %v1268_v14 = vadd.f32 %v1267_v2, %v1266_v44  ;;  %v1372_v15 = vrot.slane %v1371_v5, 2  ;;  %v1364_v16 = vrot.slane %v1326_v6, 4 }
 0x11d   : > { %v1257_v17 = vrot.slane %v1256_v8, 1  ;;  %v1361_v18 = vadd.f32 %v1360_v10, %v1359_v63  ;;  %v1261_v19 = vrot.slane %v1260_v12, 2  ;;  %v1271_v20 = vrot.slane %v12169_v30, 4 }
 0x11e   : > { %v12182_v21 = vsub.s32 4, %v12087_v46  ;;  %v1269_v22 = vrot.slane %v1268_v14, 1  ;;  %v1373_v25 = vadd.f32 %v1372_v15, %v1371_v5  ;;  %v1365_v26 = vadd.f32 %v1364_v16, %v1326_v6 }
 0x11f   : > { %v1258_v27 = vadd.f32 %v1257_v17, %v1256_v8  ;;  %v1362_v28 = vrot.slane %v1361_v18, 1  ;;  %v1262_v31 = vadd.f32 %v1261_v19, %v1260_v12  ;;  %v1272_v32 = vadd.f32 %v1271_v20, %v12169_v30 }
 0x120   : > { %v1270_v33 = vadd.f32 %v1269_v22, %v1268_v14  ;;  %v1374_v34 = vrot.slane %v1373_v25, 1  ;;  %v1366_v35 = vrot.slane %v1365_v26, 2  ;;  %v1328_v36 = vmul.f32 %v12169_v30, %v12169_v30 }
 0x121   : > { %v12187_v37 = vmul.f32 0.125, %v1258_v27  ;;  %v1363_v38 = vadd.f32 %v1362_v28, %v1361_v18  ;;  %v1263_v39 = vrot.slane %v1262_v31, 1  ;;  %v1273_v40 = vrot.slane %v1272_v32, 2 }
 0x122   : > { %v12189_v41 = vmul.f32 0.125, %v1270_v33  ;;  %v1375_v42 = vadd.f32 %v1374_v34, %v1373_v25  ;;  %v12192_v43 = vsub.s32 6, %v12087_v46  ;;  %v1367_v44 = vadd.f32 %v1366_v35, %v1365_v26 }
 0x123   : > { %v11630_v45 = vpop.eup %11629  ;;  %v1417_v50 = vmul.f32 0.125, %v1363_v38  ;;  %v1430_v62 = vmul.f32 %v12187_v37, %v12187_v37  ;;  %v1264_v63 = vadd.f32 %v1263_v39, %v1262_v31  ;;  %v1274_v1 = vadd.f32 %v1273_v40, %v1272_v32 }
 0x124   : > { %v11632_v2 = vpop.eup %11631  ;;  %v12199_v5 = vmul.f32 %v11630_v45, %v1483_v55  ;;  %v1419_v6 = vmul.f32 0.125, %v1375_v42  ;;  %v1432_v8 = vmul.f32 %v12189_v41, %v12189_v41  ;;  %v1376_v10 = vrot.slane %v1328_v36, 4  ;;  %v12203_v12 = vpop.f32.mrb[8].mxu0 }
 0x125   : > { %v12205_v14 = vpop.f32.mrb[8].mxu1  ;;  %v11634_v15 = vpop.eup %11633  ;;  %v12210_v16 = vmul.f32 %v11632_v2, %v1491_v58  ;;  %v1443_v17 = vsub.f32 %v1417_v50, %v1430_v62  ;;  %v12212_v18 = vmul.f32 0.125, %v1264_v63  ;;  %v1368_v55 = vrot.slane %v1367_v44, 1 }
 0x126   : > { %v12214_v19 = vpop.f32.mrb[9].mxu0  ;;  %v12216_v20 = vpop.f32.mrb[9].mxu1  ;;  %v1623_v25 = vmul.f32 %v12199_v5, %v12144_v7  ;;  %v12223_v26 = vmul.f32 %v11634_v15, %v1487_v60  ;;  %v1445_v27 = vsub.f32 %v1419_v6, %v1432_v8  ;;  %v1275_v58 = vrot.slane %v1274_v1, 1 }
 0x127   : > { %v11636_v22 = vpop.eup %11635  ;;  %v1138_v28 = vpop.f32.mrb[10].mxu0  ;;  %v1625_v32 = vmul.f32 %v12210_v16, %v12146_v9  ;;  %v1456_v34 = vadd.f32 1e-05, %v1443_v17  ;;  %v12235_v60 = vsub.s32 %v1655_v59, %v12087_v46  ;;  %v1377_v40 = vadd.f32 %v1376_v10, %v1328_v36 }
 0x128   : > { %v1179_v31 = vpop.f32.mrb[10].mxu1  ;;  %v12230_v33 = vmul.f32 %v11636_v22, %v1495_v61  ;;  %v1139_v35 = vpop.f32.mrb[11].mxu0  ;;  %v1624_v38 = vmul.f32 %v12223_v26, %v12148_v11  ;;  %v1458_v39 = vadd.f32 1e-05, %v1445_v27  ;;  %v1499_v61 = vrot.slane %v12095_v47, %v12182_v21 }
 0x129   : > { %v1180_v7 = vpop.f32.mrb[11].mxu1  ;;  %11637 = vrsqrt.f32 %v1456_v34  ;;  %v1507_v45 = vrot.slane %v12095_v47, %v12192_v43  ;;  %v1369_v51 = vadd.f32 %v1368_v55, %v1367_v44  ;;  %v1431_v50 = vmul.f32 %v12212_v18, %v12212_v18 }
 0x12a   : > { %v1626_v9 = vmul.f32 %v12230_v33, %v12150_v13  ;;  %v1649_v42 = vcombine.low %v1623_v25, %v1624_v38  ;;  %11639 = vrsqrt.f32 %v1458_v39  ;;  %v12248_v11 = vsub.s32 5, %v12087_v46 }
 0x12b   : > { %v1276_v36 = vadd.f32 %v1275_v58, %v1274_v1  ;;  %v1418_v62 = vmul.f32 0.125, %v1369_v51  ;;  %v1378_v63 = vrot.slane %v1377_v40, 2  ;;  %v1277_v2 = vrot.slane %v12203_v12, 4 }
 0x12c   : > { %v1650_v59 = vcombine.low %v1625_v32, %v1626_v9  ;;  %v12251_v13 = vrot.slane %v1649_v42, %v12235_v60  ;;  %v1329_v44 = vmul.f32 %v12203_v12, %v12203_v12  ;;  %v1289_v10 = vrot.slane %v12205_v14, 4 }
 0x12d   : > { %v12257_v8 = vmul.f32 0.125, %v1276_v36  ;;  %v1444_v15 = vsub.f32 %v1418_v62, %v1431_v50  ;;  %v1379_v17 = vadd.f32 %v1378_v63, %v1377_v40  ;;  %v1278_v1 = vadd.f32 %v1277_v2, %v12203_v12 }
 0x12e   : > { %v12255_v6 = vrot.slane %v1650_v59, %v12235_v60  ;;  %v1331_v55 = vmul.f32 %v12205_v14, %v12205_v14  ;;  %v1503_v25 = vrot.slane %v12095_v47, %v12248_v11  ;;  %v1382_v27 = vrot.slane %v1329_v44, 4 }
 0x12f   : > { %v1290_v58 = vadd.f32 %v1289_v10, %v12205_v14  ;;  %v1457_v28 = vadd.f32 1e-05, %v1444_v15  ;;  %v1380_v31 = vrot.slane %v1379_v17, 1  ;;  %v1279_v32 = vrot.slane %v1278_v1, 2 }
 0x130   : > { %v1681_v22 = vcombine.low %v12251_v13, %v12255_v6  ;;  %v1394_v34 = vrot.slane %v1331_v55, 4  ;;  %v1433_v35 = vmul.f32 %v12257_v8, %v12257_v8  ;;  %v1383_v7 = vadd.f32 %v1382_v27, %v1329_v44 }
 0x131   : > { %v1291_v38 = vrot.slane %v1290_v58, 2  ;;  %v1283_v39 = vrot.slane %v12214_v19, 4  ;;  %11641 = vrsqrt.f32 %v1457_v28  ;;  %v1381_v40 = vadd.f32 %v1380_v31, %v1379_v17 }
 0x132   : > { %v1280_v9 = vadd.f32 %v1279_v32, %v1278_v1  ;;  %v1395_v42 = vadd.f32 %v1394_v34, %v1331_v55  ;;  %v12274_v59 = vsub.s32 7, %v12087_v46  ;;  %v1384_v50 = vrot.slane %v1383_v7, 2 }
 0x133   : > { %v11638_v51 = vpop.eup %11637  ;;  %v1292_v36 = vadd.f32 %v1291_v38, %v1290_v58  ;;  %v1284_v62 = vadd.f32 %v1283_v39, %v12214_v19  ;;  %v1420_v10 = vmul.f32 0.125, %v1381_v40  ;;  %v1330_v58 = vmul.f32 %v12214_v19, %v12214_v19 }
 0x134   : > { %v11640_v63 = vpop.eup %11639  ;;  %v1549_v2 = vmul.f32 %v11638_v51, %v1499_v61  ;;  %v1281_v15 = vrot.slane %v1280_v9, 1  ;;  %v1396_v44 = vrot.slane %v1395_v42, 2  ;;  %v12277_v27 = vpop.f32.mrb[12].mxu0  ;;  %v1385_v28 = vadd.f32 %v1384_v50, %v1383_v7 }
 0x135   : > { %v1551_v0 = vmul.f32 %v11640_v63, %v1507_v45  ;;  %v1293_v17 = vrot.slane %v1292_v36, 1  ;;  %v1285_v1 = vrot.slane %v1284_v62, 2  ;;  %v1446_v31 = vsub.f32 %v1420_v10, %v1433_v35  ;;  %v10453_v32 = vpop.f32.mrb[13].mxu0 }
 0x136   : > { %v1577_v55 = vrot.slane %v1549_v2, %v12098_v48  ;;  %v1282_v46 = vadd.f32 %v1281_v15, %v1280_v9  ;;  %v12283_v34 = vmul.f32 %v1549_v2, %v12187_v37  ;;  %v1386_v38 = vrot.slane %v1385_v28, 1  ;;  %v1219_v40 = vpop.f32.mrb[14].mxu0 }
 0x137   : > { %v1585_v61 = vrot.slane %v1551_v0, %v12098_v48  ;;  %v1294_v39 = vadd.f32 %v1293_v17, %v1292_v36  ;;  %v1459_v7 = vadd.f32 1e-05, %v1446_v31  ;;  %v1397_v35 = vadd.f32 %v1396_v44, %v1395_v42  ;;  %v10454_v9 = vpop.f32.mrb[15].mxu0 }
 0x138   : > { %v12287_v45 = vmul.f32 %v1577_v55, %v12160_v23  ;;  %v12289_v51 = vmul.f32 0.125, %v1282_v46  ;;  %v1387_v63 = vadd.f32 %v1386_v38, %v1385_v28  ;;  %v1286_v37 = vadd.f32 %v1285_v1, %v1284_v62 }
 0x139   : > { %v12292_v50 = vmul.f32 %v1585_v61, %v12162_v24  ;;  %v12294_v10 = vmul.f32 0.125, %v1294_v39  ;;  %11643 = vrsqrt.f32 %v1459_v7  ;;  %v1398_v2 = vrot.slane %v1397_v35, 1 }
 0x13a   : > { %v1434_v36 = vmul.f32 %v12289_v51, %v12289_v51  ;;  %v1388_v15 = vrot.slane %v1330_v58, 4  ;;  %v1421_v23 = vmul.f32 0.125, %v1387_v63  ;;  %v1287_v55 = vrot.slane %v1286_v37, 1 }
 0x13b   : > { %v1436_v17 = vmul.f32 %v12294_v10, %v12294_v10  ;;  %v1295_v42 = vrot.slane %v12216_v20, 4  ;;  %v11642_v44 = vpop.eup %11641  ;;  %v1399_v24 = vadd.f32 %v1398_v2, %v1397_v35  ;;  %v1332_v28 = vmul.f32 %v12216_v20, %v12216_v20 }
 0x13c   : > { %v1389_v31 = vadd.f32 %v1388_v15, %v1330_v58  ;;  %v1301_v62 = vsel %vm932_vm0, %v12277_v27, 0.0  ;;  %v12305_v1 = vmul.f32 %v11642_v44, %v1503_v25  ;;  %v1447_v46 = vsub.f32 %v1421_v23, %v1434_v36 }
 0x13d   : > { %v1288_v32 = vadd.f32 %v1287_v55, %v1286_v37  ;;  %v1296_v61 = vadd.f32 %v1295_v42, %v12216_v20  ;;  %v1423_v38 = vmul.f32 0.125, %v1399_v24  ;;  %v1400_v40 = vrot.slane %v1332_v28, 4 }
 0x13e   : > { %v1390_v39 = vrot.slane %v1389_v31, 2  ;;  %v1628_v7 = vmul.f32 %v12305_v1, %v12212_v18  ;;  %v1302_v58 = vrot.slane %v1301_v62, 4  ;;  %v1511_v37 = vrot.slane %v12095_v47, %v12274_v59 }
 0x13f   : > { %v12310_v35 = vmul.f32 0.125, %v1288_v32  ;;  %v1449_v9 = vsub.f32 %v1423_v38, %v1436_v17  ;;  %v1297_v2 = vrot.slane %v1296_v61, 2  ;;  %v1401_v15 = vadd.f32 %v1400_v40, %v1332_v28 }
 0x140   : > { %v1391_v63 = vadd.f32 %v1390_v39, %v1389_v31  ;;  %v1651_v25 = vcombine.low %v12283_v34, %v1628_v7  ;;  %v1460_v36 = vadd.f32 1e-05, %v1447_v46  ;;  %v1629_v18 = vmul.f32 %v1551_v0, %v12189_v41  ;;  %v12322_v39 = vld [vmem:[%s12092_s16 + $0x20] ss:$4 sm:$0x1f] }
 0x141   : > { %v1462_v23 = vadd.f32 1e-05, %v1449_v9  ;;  %v1298_v42 = vadd.f32 %v1297_v2, %v1296_v61  ;;  %v1402_v44 = vrot.slane %v1401_v15, 2  ;;  %v1435_v24 = vmul.f32 %v12310_v35, %v12310_v35 }
 0x142   : > { %v1392_v55 = vrot.slane %v1391_v63, 1  ;;  %v1303_v17 = vadd.f32 %v1302_v58, %v1301_v62  ;;  %v1333_v31 = vmul.f32 %v12277_v27, %v12277_v27  ;;  %v1519_v13 = vrot.slane %v12322_v39, %v12106_v52 }
 0x143   : > { %v11644_v28 = vpop.eup %11643  ;;  %11645 = vrsqrt.f32 %v1462_v23  ;;  %v1299_v32 = vrot.slane %v1298_v42, 1  ;;  %v1403_v47 = vadd.f32 %v1402_v44, %v1401_v15  ;;  %v1527_v6 = vrot.slane %v12322_v39, %v12109_v53 }
 0x144   : > { %v1393_v34 = vadd.f32 %v1392_v55, %v1391_v63  ;;  %v1552_v46 = vmul.f32 %v11644_v28, %v1511_v37  ;;  %11647 = vrsqrt.f32 %v1460_v36  ;;  %v1304_v38 = vrot.slane %v1303_v17, 2 }
 0x145   : > { %v1406_v61 = vsel %vm932_vm0, %v1333_v31, 0.0  ;;  %v1300_v41 = vadd.f32 %v1299_v32, %v1298_v42  ;;  %v1404_v40 = vrot.slane %v1403_v47, 1  ;;  %v1673_v36 = vrot.slane %v1651_v25, %v12235_v60 }
 0x146   : > { %v1422_v0 = vmul.f32 0.125, %v1393_v34  ;;  %v1407_v7 = vrot.slane %v1406_v61, 4  ;;  %v1589_v62 = vrot.slane %v1552_v46, %v12098_v48  ;;  %v1630_v58 = vmul.f32 %v1552_v46, %v12257_v8 }
 0x147   : > { %v1305_v9 = vadd.f32 %v1304_v38, %v1303_v17  ;;  %v12326_v63 = vmul.f32 0.125, %v1300_v41  ;;  %v1405_v15 = vadd.f32 %v1404_v40, %v1403_v47 }
 0x148   : > { %v1448_v2 = vsub.f32 %v1422_v0, %v1435_v24  ;;  %v1408_v37 = vadd.f32 %v1407_v7, %v1406_v61  ;;  %v1617_v23 = vmul.f32 %v1589_v62, %v12169_v30  ;;  %v1652_v55 = vcombine.low %v1629_v18, %v1630_v58 }
 0x149   : > { %v1306_v44 = vrot.slane %v1305_v9, 1  ;;  %v1424_v42 = vmul.f32 0.125, %v1405_v15  ;;  %v1437_v28 = vmul.f32 %v12326_v63, %v12326_v63  ;;  %v1523_v24 = vrot.slane %v12322_v39, %v12101_v49 }
 0x14a   : > { %v1461_v31 = vadd.f32 1e-05, %v1448_v2  ;;  %v1409_v34 = vrot.slane %v1408_v37, 2  ;;  %v1680_v8 = vrot.slane %v1652_v55, %v12235_v60  ;;  %v1561_v30 = vrot.slane %v12199_v5, %v12098_v48  ;;  %v9401_v2 = vld [vmem:[%s12092_s16 + $0x1] ss:$4 sm:$0xff] }
 0x14b   : > { %v1307_v17 = vadd.f32 %v1306_v44, %v1305_v9  ;;  %v1450_v32 = vsub.f32 %v1424_v42, %v1437_v28  ;;  %v1515_v18 = vrot.slane %v12322_v39, %v12098_v48  ;;  %v1569_v61 = vrot.slane %v12210_v16, %v12098_v48 }
 0x14c   : > { %11649 = vrsqrt.f32 %v1461_v31  ;;  %v1410_v47 = vadd.f32 %v1409_v34, %v1408_v37  ;;  %v1682_v25 = vcombine.low %v1673_v36, %v1680_v8  ;;  %v1565_v0 = vrot.slane %v12223_v26, %v12098_v48 }
 0x14d   : > { %v12339_v46 = vmul.f32 0.125, %v1307_v17  ;;  %v11646_v38 = vpop.eup %11645  ;;  %v1463_v41 = vadd.f32 1e-05, %v1450_v32  ;;  %v1573_v62 = vrot.slane %v12230_v33, %v12098_v48  ;;  %v1689_v5 = vrot.slane %v1681_v22, %v12235_v60  ;;  %v12384_v32 = vpop.permute.xlu0 %1840 }
 0x14e   : > { %v1411_v40 = vrot.slane %v1410_v47, 1  ;;  %v11648_v7 = vpop.eup %11647  ;;  %v1696_v58 = vrot.slane %v1682_v25, %v12235_v60  ;;  %v1555_v9 = vmul.f32 %v11646_v38, %v1523_v24  ;;  %v1581_v16 = vrot.slane %v12305_v1, %v12098_v48 }
 0x14f   : > { %11651 = vrsqrt.f32 %v1463_v41  ;;  %v1438_v15 = vmul.f32 %v12339_v46, %v12339_v46  ;;  %v12358_v36 = vmul.f32 %v11648_v7, %v1515_v18  ;;  %v1610_v1 = vmul.f32 %v1561_v30, %v12113_v56 }
 0x150   : > { %v1412_v26 = vadd.f32 %v1411_v40, %v1410_v47  ;;  %v1697_v37 = vcombine.low %v1689_v5, %v1696_v58  ;;  %v1601_v33 = vrot.slane %v1555_v9, %v12098_v48  ;;  %v1612_v55 = vmul.f32 %v1569_v61, %v12115_v57  ;;  %v10817_v58 = vld [vmem:[%s11997_s0 + $0x188] ss:$12 sps:$4 sm:$0xff]  }
 0x151   : > { %v1611_v42 = vmul.f32 %v1565_v0, %v12130_v3  ;;  %v1613_v28 = vmul.f32 %v1573_v62, %v12132_v4  ;;  %v1615_v34 = vmul.f32 %v1581_v16, %v12167_v29  ;;  %v1631_v3 = vmul.f32 %v12358_v36, %v12289_v51  ;;  %v10813_v62 = vld [vmem:[%s11997_s0 + $0x180] ss:$12 sps:$4 sm:$0xff]  }
 0x152   : > { %v1425_v22 = vmul.f32 0.125, %v1412_v26  ;;  %v12366_v44 = vsub.f32 %v9401_v2, %v1697_v37  ;;  %v12369_v31 = vmul.f32 %v1601_v33, %v12205_v14  ;;  %v1633_v41 = vmul.f32 %v1555_v9, %v12294_v10  ;;  %v10820_v33 = vld [vmem:[%s11997_s0 + $0x19c] ss:$12 sps:$4 sm:$0xff]  }
 0x154   : > { %v1451_v8 = vsub.f32 %v1425_v22, %v1438_v15  ;;  %v1774_v24 = vrot.slane %v12366_v44, %v12274_v59  ;;  %v1750_v56 = vrot.slane %v12366_v44, %v12106_v52  ;;  %v1746_v57 = vrot.slane %v12366_v44, %v12098_v48 }
 0x155   : > { %v1758_v14 = vrot.slane %v12366_v44, %v12109_v53  ;;  %v1754_v29 = vrot.slane %v12366_v44, %v12101_v49  ;;  %v1766_v47 = vrot.slane %v12366_v44, %v12248_v11 }
 0x156   : > { %v11650_v17 = vpop.eup %11649  ;;  %v1464_v4 = vadd.f32 1e-05, %v1451_v8  ;;  %v12390_v30 = vadd.f32 %v1774_v24, %v1617_v23  ;;  %v1809_v18 = vadd.f32 %v1750_v56, %v1611_v42  ;;  %v1808_v38 = vadd.f32 %v1746_v57, %v1610_v1  ;;  %v10822_v8 = vld [vmem:[%s11997_s0 + $0x1a0] ss:$12 sps:$4 sm:$0xff]  }
 0x157   : > { %v12392_v25 = vmul.f32 %v11650_v17, %v1519_v13  ;;  %v1811_v61 = vadd.f32 %v1758_v14, %v1613_v28  ;;  %v12394_v51 = vadd.f32 %v1754_v29, %v1612_v55  ;;  %v12396_v0 = vadd.f32 %v1766_v47, %v1615_v34  ;;  %v10821_v13 = vld [vmem:[%s11997_s0 + $0x260] ss:$12 sps:$4 sm:$0xff]   ;;  %v10818_v34 = vld [vmem:[%s11997_s0 + $0x198] ss:$12 sps:$4 sm:$0xff]   ;;  %v10823_v14 = vld [vmem:[%s11997_s0 + $0x1b0] ss:$12 sps:$4 sm:$0xff]  }
 0x158   : > { %11653 = vrsqrt.f32 %v1464_v4  ;;  %vm1822_vm2 = vcmp.gt.f32.partialorder %v1809_v18, 0.0  ;;  %v1844_v23 = vmul.f32 %v12384_v32, %v1809_v18  ;;  %vm1821_vm3 = vcmp.gt.f32.partialorder %v1808_v38, 0.0  ;;  %v10827_v4 = vld [vmem:[%s11997_s0 + $0x1b8] ss:$12 sps:$4 sm:$0xff]  }
 0x159   : > { %v1632_v40 = vmul.f32 %v12392_v25, %v12310_v35  ;;  %v11652_v7 = vpop.eup %11651  ;;  %v1843_v5 = vmul.f32 %v12384_v32, %v1808_v38  ;;  %vm1824_vm4 = vcmp.gt.f32.partialorder %v1811_v61, 0.0  ;;  %v1846_v16 = vmul.f32 %v12384_v32, %v1811_v61 }
 0x15a   : > { %v12406_v26 = vmul.f32 %v11652_v7, %v1527_v6  ;;  %v1857_v10 = vsel %vm1822_vm2, %v1809_v18, %v1844_v23  ;;  %v1762_v35 = vrot.slane %v12366_v44, %v12182_v21  ;;  %v1531_v6 = vrot.slane %v12322_v39, %v12182_v21  ;;  %v10826_v39 = vld [vmem:[%s11997_s0 + $0x278] ss:$12 sps:$4 sm:$0xff]   ;;  %v10832_v7 = vld [vmem:[%s11997_s0 + $0x1d0] ss:$12 sps:$4 sm:$0xff]  }
 0x15b   : > { %v1698_v2 = vcombine.low %v1631_v3, %v1632_v40  ;;  %v1870_v9 = vpack.c.bf16 %v1857_v10, %v1857_v10  ;;  %v1856_v15 = vsel %vm1821_vm3, %v1808_v38, %v1843_v5  ;;  %v1859_v37 = vsel %vm1824_vm4, %v1811_v61, %v1846_v16  ;;  %v10830_v38 = vld [vmem:[%s11997_s0 + $0x1cc] ss:$12 sps:$4 sm:$0xff]   ;;  %v10828_v61 = vld [vmem:[%s11997_s0 + $0x1c8] ss:$12 sps:$4 sm:$0xff]  }
 0x15c   : > { %v1634_v22 = vmul.f32 %v12406_v26, %v12326_v63  ;;  %v1869_v1 = vpack.c.bf16 %v1856_v15, %v1856_v15  ;;  %v1872_v28 = vpack.c.bf16 %v1859_v37, %v1859_v37  ;;  %v12420_v24 = vadd.f32 %v1762_v35, %v12287_v45  ;;  %v10825_v63 = vld [vmem:[%s11997_s0 + $0x1b4] ss:$12 sps:$4 sm:$0xff]   ;;  %v10840_v15 = vld [vmem:[%s11997_s0 + $0x1fc] ss:$12 sps:$4 sm:$0xff]  }
 0x15d   : > { %v1706_v55 = vrot.slane %v1698_v2, %v12235_v60  ;;  %3917 = vmatprep.mubr.bf16.mxu1 %v1870_v9  ;;  %4204 = vmatprep.mubr.bf16.mxu0 %v1870_v9  ;;  %v1770_v45 = vrot.slane %v12366_v44, %v12192_v43  ;;  %v10831_v44 = vld [vmem:[%s11997_s0 + $0x290] ss:$12 sps:$4 sm:$0xff]   ;;  %v1605_v16 = vrot.slane %v12406_v26, %v12098_v48  ;;  %v10833_v2 = vld [vmem:[%s11997_s0 + $0x1e0] ss:$12 sps:$4 sm:$0xff]   ;;  %v10838_v26 = vld [vmem:[%s11997_s0 + $0x1f8] ss:$12 sps:$4 sm:$0xff]  }
 0x15e   : > { %v1699_v42 = vcombine.low %v1633_v41, %v1634_v22  ;;  %3918 = vmatmul.mubr.bf16.vlgmr.msra.gmra.mrb[12].mxu1 %v1869_v1  ;;  %4205 = vmatmul.mubr.bf16.vlgmr.msra.gmra.mrb[16].mxu0 %v1869_v1  ;;  %v10841_v37 = vld [vmem:[%s11997_s0 + $0x2c0] ss:$12 sps:$4 sm:$0xff]   ;;  %vm1823_vm5 = vcmp.gt.f32.partialorder %v12394_v51, 0.0  ;;  %vm1826_vm6 = vcmp.gt.f32.partialorder %v12396_v0, 0.0  ;;  %vm1825_vm7 = vcmp.gt.f32.partialorder %v12420_v24, 0.0 }
 0x15f   : > { %3927 = vmatpush1.bf16.msra.mxu1 %v10813_v62  ;;  %10119 = vmatpush3.bf16.msra.mxu0 %v10817_v58  ;;  %v12430_v29 = vadd.f32 %v1770_v45, %v12292_v50  ;;  %v9402_v50 = vld [vmem:[%s12092_s16 + $0x21] ss:$4 sm:$0x1f]  ;;  %v1597_v62 = vrot.slane %v12392_v25, %v12098_v48  ;;  %vm1828_vm8 = vcmp.gt.f32.partialorder %v12390_v30, 0.0  ;;  %vm4855_vm4 = vcmask 1043456  }
 0x160   : > { %v1713_v56 = vrot.slane %v1699_v42, %v12235_v60  ;;  %3958 = vmatprep.mubr.bf16.mxu1 %v1872_v28  ;;  %4244 = vmatprep.mubr.bf16.mxu0 %v1872_v28  ;;  %v10836_v58 = vld [vmem:[%s11997_s0 + $0x2a8] ss:$12 sps:$4 sm:$0xff]   ;;  %v10846_v42 = vld [vmem:[%s11997_s0 + $0x2d8] ss:$12 sps:$4 sm:$0xff]  }
 0x161   : > { %3928 = vmatprep.subr.bf16.mxu1 %v10820_v33  ;;  %10120 = vmatprep.subr.bf16.mxu0 %v10821_v13  ;;  %v1619_v35 = vmul.f32 %v1597_v62, %v12214_v19  ;;  %v1621_v33 = vmul.f32 %v1605_v16, %v12216_v20  ;;  %v10842_v19 = vld [vmem:[%s11997_s0 + $0x200] ss:$12 sps:$4 sm:$0xff]   ;;  %v10848_v45 = vld [vmem:[%s11997_s0 + $0x228] ss:$12 sps:$4 sm:$0xff]   ;;  %v10863_v62 = vld [vmem:[%s11997_s0 + $0x270] ss:$12 sps:$4 sm:$0xff]  }
 0x162   : > { %v11654_v57 = vpop.eup %11653  ;;  %v1721_v17 = vcombine.low %v1706_v55, %v1713_v56  ;;  %v10845_v20 = vld [vmem:[%s11997_s0 + $0x214] ss:$12 sps:$4 sm:$0xff]   ;;  %vm1827_vm9 = vcmp.gt.f32.partialorder %v12430_v29, 0.0 }
 0x163   : > { %v1557_v3 = vmul.f32 %v11654_v57, %v1531_v6  ;;  %3929 = vmatpush1.bf16.msra.mxu1 %v10818_v34  ;;  %10121 = vmatpush3.bf16.msra.mxu0 %v10822_v8  ;;  %v10843_v8 = vld [vmem:[%s11997_s0 + $0x210] ss:$12 sps:$4 sm:$0xff]   ;;  %v10850_v57 = vld [vmem:[%s11997_s0 + $0x22c] ss:$12 sps:$4 sm:$0xff]   ;;  %v10868_v16 = vld [vmem:[%s11997_s0 + $0x288] ss:$12 sps:$4 sm:$0xff]  }
 0x164   : > { %3930 = vmatprep.subr.bf16.mxu1 %v10825_v63  ;;  %10122 = vmatprep.subr.bf16.mxu0 %v10826_v39  ;;  %v1728_v23 = vrot.slane %v1721_v17, %v12235_v60  ;;  %v10847_v39 = vld [vmem:[%s11997_s0 + $0x218] ss:$12 sps:$4 sm:$0xff]   ;;  %v1845_v17 = vmul.f32 %v12384_v32, %v12394_v51 }
 0x165   : > { %v1609_v47 = vrot.slane %v1557_v3, %v12098_v48  ;;  %v1635_v18 = vmul.f32 %v1557_v3, %v12339_v46  ;;  %v1593_v46 = vrot.slane %v12358_v36, %v12098_v48  ;;  %v10837_v36 = vld [vmem:[%s11997_s0 + $0x1e8] ss:$12 sps:$4 sm:$0xff]   ;;  %v1848_v3 = vmul.f32 %v12384_v32, %v12396_v0 }
 0x167   : > { %v1622_v41 = vmul.f32 %v1609_v47, %v12277_v27  ;;  %v1720_v40 = vrot.slane %v1635_v18, %v12235_v60  ;;  %3931 = vmatpush1.bf16.msra.mxu1 %v10823_v14  ;;  %10123 = vmatpush3.bf16.msra.mxu0 %v10827_v4  ;;  %v10835_v27 = vld [vmem:[%s11997_s0 + $0x1e4] ss:$12 sps:$4 sm:$0xff]   ;;  %v1618_v25 = vmul.f32 %v1593_v46, %v12203_v12  ;;  %v10856_v47 = vld [vmem:[%s11997_s0 + $0x3c8] ss:$12 sps:$4 sm:$0xff]   ;;  %v10853_v18 = vld [vmem:[%s11997_s0 + $0x240] ss:$12 sps:$4 sm:$0xff]  }
 0x168   : > { %3932 = vmatprep.subr.bf16.mxu1 %v10830_v38  ;;  %10124 = vmatprep.subr.bf16.mxu0 %v10831_v44  ;;  %v10851_v14 = vld [vmem:[%s11997_s0 + $0x2f0] ss:$12 sps:$4 sm:$0xff]   ;;  %v1858_v38 = vsel %vm1823_vm5, %v12394_v51, %v1845_v17  ;;  %v10857_v44 = vld [vmem:[%s11997_s0 + $0x308] ss:$12 sps:$4 sm:$0xff]   ;;  %v10861_v51 = vld [vmem:[%s11997_s0 + $0x3e0] ss:$12 sps:$4 sm:$0xff]  }
 0x169   : > { %v1735_v5 = vrot.slane %v1720_v40, %v12235_v60  ;;  %v10855_v4 = vld [vmem:[%s11997_s0 + $0x244] ss:$12 sps:$4 sm:$0xff]   ;;  %v10860_v40 = vld [vmem:[%s11997_s0 + $0x25c] ss:$12 sps:$4 sm:$0xff]   ;;  %vm4868_vm5 = vcmask 64512  }
 0x16a   : > { %v10866_v46 = vld [vmem:[%s11997_s0 + $0x3f8] ss:$12 sps:$4 sm:$0xff]   ;;  %v10897_v17 = vld [vmem:[%s11997_s0 + $0x488] ss:$12 sps:$4 sm:$0xff]  }
 0x16b   : > { %v1736_v10 = vcombine.low %v1728_v23, %v1735_v5  ;;  %3933 = vmatpush1.bf16.msra.mxu1 %v10828_v61  ;;  %10125 = vmatpush3.bf16.msra.mxu0 %v10832_v7  ;;  %v1861_v61 = vsel %vm1826_vm6, %v12396_v0, %v1848_v3  ;;  %v10858_v23 = vld [vmem:[%s11997_s0 + $0x258] ss:$12 sps:$4 sm:$0xff]   ;;  %v10862_v0 = vld [vmem:[%s11997_s0 + $0x320] ss:$12 sps:$4 sm:$0xff]   ;;  %v10900_v3 = vld [vmem:[%s11997_s0 + $0x31c] ss:$12 sps:$4 sm:$0xff]  }
 0x16c   : > { %3934 = vmatprep.subr.bf16.mxu1 %v10835_v27  ;;  %10126 = vmatprep.subr.bf16.mxu0 %v10836_v58  ;;  %v10865_v7 = vld [vmem:[%s11997_s0 + $0x274] ss:$12 sps:$4 sm:$0xff]   ;;  %v10867_v5 = vld [vmem:[%s11997_s0 + $0x338] ss:$12 sps:$4 sm:$0xff]   ;;  %v10871_v58 = vld [vmem:[%s11997_s0 + $0x410] ss:$12 sps:$4 sm:$0xff]  }
 0x16d   : > { %v1740_v9 = vsub.f32 %v9402_v50, %v1736_v10  ;;  %v12508_v50 = vpack.c.bf16 %v1861_v61, %v1861_v61  ;;  %v10870_v27 = vld [vmem:[%s11997_s0 + $0x28c] ss:$12 sps:$4 sm:$0xff]   ;;  %v10875_v10 = vld [vmem:[%s11997_s0 + $0x2a4] ss:$12 sps:$4 sm:$0xff]   ;;  %vm4812_vm6 = vcmask 130048  }
 0x16e   : > { %v10903_v61 = vld [vmem:[%s11997_s0 + $0x330] ss:$12 sps:$4 sm:$0xff]  }
 0x16f   : > { %v1794_v13 = vrot.slane %v1740_v9, %v12182_v21  ;;  %v1782_v22 = vrot.slane %v1740_v9, %v12106_v52  ;;  %v1778_v1 = vrot.slane %v1740_v9, %v12098_v48  ;;  %v1790_v12 = vrot.slane %v1740_v9, %v12109_v53  ;;  %3935 = vmatpush1.bf16.msra.mxu1 %v10833_v2  ;;  %v10872_v2 = vld [vmem:[%s11997_s0 + $0x350] ss:$12 sps:$4 sm:$0xff]  }
 0x170   : > { %10127 = vmatpush3.bf16.msra.mxu0 %v10837_v36  ;;  %v1786_v55 = vrot.slane %v1740_v9, %v12101_v49  ;;  %3936 = vmatprep.subr.bf16.mxu1 %v10840_v15  ;;  %v10876_v36 = vld [vmem:[%s11997_s0 + $0x428] ss:$12 sps:$4 sm:$0xff]   ;;  %v10881_v15 = vld [vmem:[%s11997_s0 + $0x440] ss:$12 sps:$4 sm:$0xff]  }
 0x171   : > { %v12465_v6 = vadd.f32 %v1794_v13, %v1622_v41  ;;  %10128 = vmatprep.subr.bf16.mxu0 %v10841_v37  ;;  %v12469_v28 = vadd.f32 %v1782_v22, %v1619_v35  ;;  %v12471_v34 = vadd.f32 %v1778_v1, %v1618_v25  ;;  %v12474_v63 = vadd.f32 %v1790_v12, %v1621_v33  ;;  %v10873_v25 = vld [vmem:[%s11997_s0 + $0x2a0] ss:$12 sps:$4 sm:$0xff]   ;;  %v10877_v35 = vld [vmem:[%s11997_s0 + $0x368] ss:$12 sps:$4 sm:$0xff]   ;;  %v10878_v37 = vld [vmem:[%s11997_s0 + $0x2b8] ss:$12 sps:$4 sm:$0xff]  }
 0x172   : > { %v12477_v56 = vadd.f32 %v1786_v55, %v12369_v31  ;;  %v10852_v31 = vld [vmem:[%s11997_s0 + $0x230] ss:$12 sps:$4 sm:$0xff]   ;;  %v12502_v41 = vpack.c.bf16 %v1858_v38, %v1858_v38  ;;  %v10882_v33 = vld [vmem:[%s11997_s0 + $0x380] ss:$12 sps:$4 sm:$0xff]   ;;  %v10886_v13 = vld [vmem:[%s11997_s0 + $0x458] ss:$12 sps:$4 sm:$0xff]  }
 0x173   : > { %3937 = vmatpush1.bf16.msra.mxu1 %v10838_v26  ;;  %v10880_v9 = vld [vmem:[%s11997_s0 + $0x2bc] ss:$12 sps:$4 sm:$0xff]   ;;  %v10885_v26 = vld [vmem:[%s11997_s0 + $0x2d4] ss:$12 sps:$4 sm:$0xff]   ;;  %v10887_v1 = vld [vmem:[%s11997_s0 + $0x398] ss:$12 sps:$4 sm:$0xff]  }
 0x174   : > { %10129 = vmatpush3.bf16.msra.mxu0 %v10842_v19  ;;  %3938 = vmatprep.subr.bf16.mxu1 %v10845_v20  ;;  %v10883_v22 = vld [vmem:[%s11997_s0 + $0x2d0] ss:$12 sps:$4 sm:$0xff]   ;;  %v10890_v12 = vld [vmem:[%s11997_s0 + $0x2ec] ss:$12 sps:$4 sm:$0xff]   ;;  %v10888_v55 = vld [vmem:[%s11997_s0 + $0x2e8] ss:$12 sps:$4 sm:$0xff]  }
 0x175   : > { %10130 = vmatprep.subr.bf16.mxu0 %v10846_v42  ;;  %v10891_v19 = vld [vmem:[%s11997_s0 + $0x470] ss:$12 sps:$4 sm:$0xff]   ;;  %v1847_v42 = vmul.f32 %v12384_v32, %v12420_v24  ;;  %v10902_v38 = vld [vmem:[%s11997_s0 + $0x4a0] ss:$12 sps:$4 sm:$0xff]   ;;  %vm1830_vm10 = vcmp.gt.f32.partialorder %v12469_v28, 0.0  ;;  %vm1829_vm11 = vcmp.gt.f32.partialorder %v12471_v34, 0.0 }
 0x176   : > { %v10892_v20 = vld [vmem:[%s11997_s0 + $0x3b0] ss:$12 sps:$4 sm:$0xff]   ;;  %vm1832_vm12 = vcmp.gt.f32.partialorder %v12474_v63, 0.0  ;;  %vm1831_vm13 = vcmp.gt.f32.partialorder %v12477_v56, 0.0  ;;  %vm1833_vm14 = vcmp.gt.f32.partialorder %v12465_v6, 0.0 }
 0x177   : > { %3939 = vmatpush1.bf16.msra.mxu1 %v10843_v8  ;;  %v10895_v8 = vld [vmem:[%s11997_s0 + $0x304] ss:$12 sps:$4 sm:$0xff]  }
 0x178   : > { %10131 = vmatpush3.bf16.msra.mxu0 %v10847_v39  ;;  %3940 = vmatprep.subr.bf16.mxu1 %v10850_v57  ;;  %v10896_v39 = vld [vmem:[%s11997_s0 + $0x548] ss:$12 sps:$4 sm:$0xff]   ;;  %v1850_v57 = vmul.f32 %v12384_v32, %v12390_v30 }
 0x179   : > { %10132 = vmatprep.subr.bf16.mxu0 %v10851_v14  ;;  %v10893_v14 = vld [vmem:[%s11997_s0 + $0x300] ss:$12 sps:$4 sm:$0xff]  }
 0x17b   : > { %3941 = vmatpush1.bf16.msra.mxu1 %v10848_v45  ;;  %v1860_v45 = vsel %vm1825_vm7, %v12420_v24, %v1847_v42  ;;  %v10941_v42 = vld [vmem:[%s11997_s0 + $0x6e0] ss:$12 sps:$4 sm:$0xff]   ;;  %vm4814_vm7 = vcmask 195584  }
 0x17c   : > { %10133 = vmatpush3.bf16.msra.mxu0 %v10852_v31  ;;  %3942 = vmatprep.subr.bf16.mxu1 %v10855_v4  ;;  %v1863_v31 = vsel %vm1828_vm8, %v12390_v30, %v1850_v57  ;;  %v10901_v4 = vld [vmem:[%s11997_s0 + $0x560] ss:$12 sps:$4 sm:$0xff]  }
 0x17d   : > { %10140 = vmatprep.subr.bf16.mxu0 %v10856_v47  ;;  %v12550_v47 = vpack.c.bf16 %v1860_v45, %v1860_v45  ;;  %v12554_v24 = vpack.c.bf16 %v1863_v31, %v1863_v31  ;;  %v10905_v30 = vld [vmem:[%s11997_s0 + $0x334] ss:$12 sps:$4 sm:$0xff]   ;;  %v10943_v45 = vld [vmem:[%s11997_s0 + $0x3f0] ss:$12 sps:$4 sm:$0xff]   ;;  %v10950_v31 = vld [vmem:[%s11997_s0 + $0x40c] ss:$12 sps:$4 sm:$0xff]  }
 0x17f   : > { %4245 = vmatmul.mubr.bf16.vlgmr.msra.gmra.mrb[20].mxu0 %v12502_v41  ;;  %3943 = vmatpush1.bf16.msra.mxu1 %v10853_v18  ;;  %v10898_v18 = vld [vmem:[%s11997_s0 + $0x318] ss:$12 sps:$4 sm:$0xff]  }
 0x180   : > { %10141 = vmatpush3.bf16.msra.mxu0 %v10857_v44  ;;  %4284 = vmatprep.mubr.bf16.mxu0 %v12508_v50  ;;  %v10906_v44 = vld [vmem:[%s11997_s0 + $0x578] ss:$12 sps:$4 sm:$0xff]  }
 0x181   : > { %3944 = vmatprep.subr.bf16.mxu1 %v10860_v40  ;;  %10142 = vmatprep.subr.bf16.mxu0 %v10861_v51  ;;  %v10910_v40 = vld [vmem:[%s11997_s0 + $0x34c] ss:$12 sps:$4 sm:$0xff]   ;;  %v10911_v51 = vld [vmem:[%s11997_s0 + $0x590] ss:$12 sps:$4 sm:$0xff]  }
 0x183   : > { %3945 = vmatpush1.bf16.msra.mxu1 %v10858_v23  ;;  %v10908_v23 = vld [vmem:[%s11997_s0 + $0x348] ss:$12 sps:$4 sm:$0xff]  }
 0x184   : > { %10143 = vmatpush3.bf16.msra.mxu0 %v10862_v0  ;;  %3946 = vmatprep.subr.bf16.mxu1 %v10865_v7  ;;  %v10915_v0 = vld [vmem:[%s11997_s0 + $0x364] ss:$12 sps:$4 sm:$0xff]   ;;  %v10916_v7 = vld [vmem:[%s11997_s0 + $0x5a8] ss:$12 sps:$4 sm:$0xff]  }
 0x185   : > { %10144 = vmatprep.subr.bf16.mxu0 %v10866_v46  ;;  %v10913_v46 = vld [vmem:[%s11997_s0 + $0x360] ss:$12 sps:$4 sm:$0xff]  }
 0x187   : > { %3947 = vmatpush1.bf16.msra.mxu1 %v10863_v62  ;;  %v10917_v62 = vld [vmem:[%s11997_s0 + $0x4e8] ss:$12 sps:$4 sm:$0xff]  }
 0x188   : > { %10145 = vmatpush3.bf16.msra.mxu0 %v10867_v5  ;;  %3948 = vmatprep.subr.bf16.mxu1 %v10870_v27  ;;  %v10920_v5 = vld [vmem:[%s11997_s0 + $0x37c] ss:$12 sps:$4 sm:$0xff]   ;;  %v10921_v27 = vld [vmem:[%s11997_s0 + $0x5c0] ss:$12 sps:$4 sm:$0xff]  }
 0x189   : > { %10146 = vmatprep.subr.bf16.mxu0 %v10871_v58  ;;  %v10918_v58 = vld [vmem:[%s11997_s0 + $0x378] ss:$12 sps:$4 sm:$0xff]  }
 0x18b   : > { %3949 = vmatpush1.bf16.msra.mxu1 %v10868_v16  ;;  %v10922_v16 = vld [vmem:[%s11997_s0 + $0x500] ss:$12 sps:$4 sm:$0xff]  }
 0x18c   : > { %10147 = vmatpush3.bf16.msra.mxu0 %v10872_v2  ;;  %3950 = vmatprep.subr.bf16.mxu1 %v10875_v10  ;;  %v10925_v2 = vld [vmem:[%s11997_s0 + $0x394] ss:$12 sps:$4 sm:$0xff]   ;;  %v10926_v10 = vld [vmem:[%s11997_s0 + $0x5d8] ss:$12 sps:$4 sm:$0xff]  }
 0x18d   : > { %10148 = vmatprep.subr.bf16.mxu0 %v10876_v36  ;;  %v10923_v36 = vld [vmem:[%s11997_s0 + $0x390] ss:$12 sps:$4 sm:$0xff]  }
 0x18f   : > { %3951 = vmatpush1.bf16.msra.mxu1 %v10873_v25  ;;  %v10927_v25 = vld [vmem:[%s11997_s0 + $0x518] ss:$12 sps:$4 sm:$0xff]  }
 0x190   : > { %10149 = vmatpush3.bf16.msra.mxu0 %v10877_v35  ;;  %3952 = vmatprep.subr.bf16.mxu1 %v10880_v9  ;;  %v10930_v35 = vld [vmem:[%s11997_s0 + $0x3ac] ss:$12 sps:$4 sm:$0xff]   ;;  %v10931_v9 = vld [vmem:[%s11997_s0 + $0x5f0] ss:$12 sps:$4 sm:$0xff]  }
 0x191   : > { %10150 = vmatprep.subr.bf16.mxu0 %v10881_v15  ;;  %v10928_v15 = vld [vmem:[%s11997_s0 + $0x3a8] ss:$12 sps:$4 sm:$0xff]  }
 0x193   : > { %3953 = vmatpush1.bf16.msra.mxu1 %v10878_v37  ;;  %v10932_v37 = vld [vmem:[%s11997_s0 + $0x530] ss:$12 sps:$4 sm:$0xff]  }
 0x194   : > { %10151 = vmatpush3.bf16.msra.mxu0 %v10882_v33  ;;  %3954 = vmatprep.subr.bf16.mxu1 %v10885_v26  ;;  %v10935_v33 = vld [vmem:[%s11997_s0 + $0x3c4] ss:$12 sps:$4 sm:$0xff]   ;;  %v1849_v26 = vmul.f32 %v12384_v32, %v12430_v29 }
 0x195   : > { %10152 = vmatprep.subr.bf16.mxu0 %v10886_v13  ;;  %v10936_v13 = vld [vmem:[%s11997_s0 + $0x6c8] ss:$12 sps:$4 sm:$0xff]  }
 0x197   : > { %3955 = vmatpush1.bf16.msra.mxu1 %v10883_v22  ;;  %v1852_v22 = vmul.f32 %v12384_v32, %v12469_v28 }
 0x198   : > { %10153 = vmatpush3.bf16.msra.mxu0 %v10887_v1  ;;  %3956 = vmatprep.subr.bf16.mxu1 %v10890_v12  ;;  %v10933_v1 = vld [vmem:[%s11997_s0 + $0x3c0] ss:$12 sps:$4 sm:$0xff]   ;;  %v1862_v12 = vsel %vm1827_vm9, %v12430_v29, %v1849_v26 }
 0x199   : > { %10154 = vmatprep.subr.bf16.mxu0 %v10891_v19  ;;  %v10937_v19 = vld [vmem:[%s11997_s0 + $0x608] ss:$12 sps:$4 sm:$0xff]   ;;  %v10942_v29 = vld [vmem:[%s11997_s0 + $0x620] ss:$12 sps:$4 sm:$0xff]  }
 0x19a   : > { %v10981_v26 = vld [vmem:[%s11997_s0 + $0x860] ss:$12 sps:$4 sm:$0xff]  }
 0x19b   : > { %3957 = vmatpush1.bf16.msra.mxu1 %v10888_v55  ;;  %v1865_v55 = vsel %vm1830_vm10, %v12469_v28, %v1852_v22  ;;  %v10945_v28 = vld [vmem:[%s11997_s0 + $0x3f4] ss:$12 sps:$4 sm:$0xff]  }
 0x19c   : > { %10155 = vmatpush3.bf16.msra.mxu0 %v10892_v20  ;;  %3967 = vmatprep.subr.bf16.mxu1 %v10895_v8  ;;  %v10940_v20 = vld [vmem:[%s11997_s0 + $0x3dc] ss:$12 sps:$4 sm:$0xff]   ;;  %v12598_v8 = vpack.c.bf16 %v1862_v12, %v1862_v12  ;;  %v12601_v57 = vpack.c.bf16 %v1865_v55, %v1865_v55  ;;  %v10985_v22 = vld [vmem:[%s11997_s0 + $0x4b4] ss:$12 sps:$4 sm:$0xff]   ;;  %v10987_v12 = vld [vmem:[%s11997_s0 + $0x7b8] ss:$12 sps:$4 sm:$0xff]  }
 0x19d   : > { %10162 = vmatprep.subr.bf16.mxu0 %v10896_v39  ;;  %v10938_v39 = vld [vmem:[%s11997_s0 + $0x3d8] ss:$12 sps:$4 sm:$0xff]   ;;  %v10988_v55 = vld [vmem:[%s11997_s0 + $0x4c8] ss:$12 sps:$4 sm:$0xff]  }
 0x19e   : > { %3959 = vmatmul.mubr.bf16.vlgmr.msra.gmra.mrb[12].mxu1 %v12502_v41  ;;  %v10907_v41 = vld [vmem:[%s11997_s0 + $0x4b8] ss:$12 sps:$4 sm:$0xff]  }
 0x19f   : > { %4285 = vmatmul.mubr.bf16.vlgmr.msra.gmra.mrb[24].mxu0 %v12550_v47  ;;  %3968 = vmatpush1.bf16.msra.mxu1 %v10893_v14  ;;  %v10946_v14 = vld [vmem:[%s11997_s0 + $0x6f8] ss:$12 sps:$4 sm:$0xff]  }
 0x1a0   : > { %3999 = vmatprep.mubr.bf16.mxu1 %v12508_v50  ;;  %10163 = vmatpush3.bf16.msra.mxu0 %v10897_v17  ;;  %v10912_v50 = vld [vmem:[%s11997_s0 + $0x4d0] ss:$12 sps:$4 sm:$0xff]   ;;  %v10947_v17 = vld [vmem:[%s11997_s0 + $0x638] ss:$12 sps:$4 sm:$0xff]  }
 0x1a1   : > { %4324 = vmatprep.mubr.bf16.mxu0 %v12554_v24  ;;  %3969 = vmatprep.subr.bf16.mxu1 %v10900_v3  ;;  %v10951_v3 = vld [vmem:[%s11997_s0 + $0x710] ss:$12 sps:$4 sm:$0xff]  }
 0x1a2   : > { %10164 = vmatprep.subr.bf16.mxu0 %v10901_v4  ;;  %v10948_v4 = vld [vmem:[%s11997_s0 + $0x408] ss:$12 sps:$4 sm:$0xff]  }
 0x1a3   : > { %3970 = vmatpush1.bf16.msra.mxu1 %v10898_v18  ;;  %v10952_v18 = vld [vmem:[%s11997_s0 + $0x650] ss:$12 sps:$4 sm:$0xff]  }
 0x1a4   : > { %10165 = vmatpush3.bf16.msra.mxu0 %v10902_v38  ;;  %3971 = vmatprep.subr.bf16.mxu1 %v10905_v30  ;;  %v10955_v38 = vld [vmem:[%s11997_s0 + $0x424] ss:$12 sps:$4 sm:$0xff]   ;;  %v10956_v30 = vld [vmem:[%s11997_s0 + $0x728] ss:$12 sps:$4 sm:$0xff]  }
 0x1a5   : > { %10166 = vmatprep.subr.bf16.mxu0 %v10906_v44  ;;  %v10953_v44 = vld [vmem:[%s11997_s0 + $0x420] ss:$12 sps:$4 sm:$0xff]  }
 0x1a7   : > { %3972 = vmatpush1.bf16.msra.mxu1 %v10903_v61  ;;  %v10957_v61 = vld [vmem:[%s11997_s0 + $0x668] ss:$12 sps:$4 sm:$0xff]  }
 0x1a8   : > { %10167 = vmatpush3.bf16.msra.mxu0 %v10907_v41  ;;  %3973 = vmatprep.subr.bf16.mxu1 %v10910_v40  ;;  %v10960_v41 = vld [vmem:[%s11997_s0 + $0x43c] ss:$12 sps:$4 sm:$0xff]   ;;  %v10961_v40 = vld [vmem:[%s11997_s0 + $0x740] ss:$12 sps:$4 sm:$0xff]  }
 0x1a9   : > { %10168 = vmatprep.subr.bf16.mxu0 %v10911_v51  ;;  %v10958_v51 = vld [vmem:[%s11997_s0 + $0x438] ss:$12 sps:$4 sm:$0xff]  }
 0x1ab   : > { %3974 = vmatpush1.bf16.msra.mxu1 %v10908_v23  ;;  %v10962_v23 = vld [vmem:[%s11997_s0 + $0x680] ss:$12 sps:$4 sm:$0xff]  }
 0x1ac   : > { %10169 = vmatpush3.bf16.msra.mxu0 %v10912_v50  ;;  %3975 = vmatprep.subr.bf16.mxu1 %v10915_v0  ;;  %v10965_v50 = vld [vmem:[%s11997_s0 + $0x454] ss:$12 sps:$4 sm:$0xff]   ;;  %v10966_v0 = vld [vmem:[%s11997_s0 + $0x758] ss:$12 sps:$4 sm:$0xff]  }
 0x1ad   : > { %10170 = vmatprep.subr.bf16.mxu0 %v10916_v7  ;;  %v10963_v7 = vld [vmem:[%s11997_s0 + $0x450] ss:$12 sps:$4 sm:$0xff]  }
 0x1af   : > { %3976 = vmatpush1.bf16.msra.mxu1 %v10913_v46  ;;  %v10967_v46 = vld [vmem:[%s11997_s0 + $0x698] ss:$12 sps:$4 sm:$0xff]  }
 0x1b0   : > { %10171 = vmatpush3.bf16.msra.mxu0 %v10917_v62  ;;  %3977 = vmatprep.subr.bf16.mxu1 %v10920_v5  ;;  %v10970_v62 = vld [vmem:[%s11997_s0 + $0x46c] ss:$12 sps:$4 sm:$0xff]   ;;  %v10971_v5 = vld [vmem:[%s11997_s0 + $0x770] ss:$12 sps:$4 sm:$0xff]  }
 0x1b1   : > { %10172 = vmatprep.subr.bf16.mxu0 %v10921_v27  ;;  %v1851_v27 = vmul.f32 %v12384_v32, %v12471_v34 }
 0x1b3   : > { %3978 = vmatpush1.bf16.msra.mxu1 %v10918_v58  ;;  %v10968_v58 = vld [vmem:[%s11997_s0 + $0x468] ss:$12 sps:$4 sm:$0xff]  }
 0x1b4   : > { %10173 = vmatpush3.bf16.msra.mxu0 %v10922_v16  ;;  %3979 = vmatprep.subr.bf16.mxu1 %v10925_v2  ;;  %v10972_v16 = vld [vmem:[%s11997_s0 + $0x6b0] ss:$12 sps:$4 sm:$0xff]  }
 0x1b5   : > { %10174 = vmatprep.subr.bf16.mxu0 %v10926_v10  ;;  %v10975_v2 = vld [vmem:[%s11997_s0 + $0x484] ss:$12 sps:$4 sm:$0xff]   ;;  %v1854_v10 = vmul.f32 %v12384_v32, %v12474_v63 }
 0x1b7   : > { %3980 = vmatpush1.bf16.msra.mxu1 %v10923_v36  ;;  %v10976_v36 = vld [vmem:[%s11997_s0 + $0x848] ss:$12 sps:$4 sm:$0xff]  }
 0x1b8   : > { %10175 = vmatpush3.bf16.msra.mxu0 %v10927_v25  ;;  %3981 = vmatprep.subr.bf16.mxu1 %v10930_v35  ;;  %v1864_v25 = vsel %vm1829_vm11, %v12471_v34, %v1851_v27  ;;  %v10973_v35 = vld [vmem:[%s11997_s0 + $0x480] ss:$12 sps:$4 sm:$0xff]   ;;  %v11021_v27 = vld [vmem:[%s11997_s0 + $0x570] ss:$12 sps:$4 sm:$0xff]  }
 0x1b9   : > { %10176 = vmatprep.subr.bf16.mxu0 %v10931_v9  ;;  %v10977_v9 = vld [vmem:[%s11997_s0 + $0x788] ss:$12 sps:$4 sm:$0xff]  }
 0x1bb   : > { %3982 = vmatpush1.bf16.msra.mxu1 %v10928_v15  ;;  %v1867_v15 = vsel %vm1832_vm12, %v12474_v63, %v1854_v10  ;;  %v10982_v63 = vld [vmem:[%s11997_s0 + $0x7a0] ss:$12 sps:$4 sm:$0xff]   ;;  %v11025_v10 = vld [vmem:[%s11997_s0 + $0x588] ss:$12 sps:$4 sm:$0xff]  }
 0x1bc   : > { %10177 = vmatpush3.bf16.msra.mxu0 %v10932_v37  ;;  %3983 = vmatprep.subr.bf16.mxu1 %v10935_v33  ;;  %v12642_v37 = vpack.c.bf16 %v1864_v25, %v1864_v25  ;;  %v10980_v33 = vld [vmem:[%s11997_s0 + $0x49c] ss:$12 sps:$4 sm:$0xff]   ;;  %v12648_v34 = vpack.c.bf16 %v1867_v15, %v1867_v15  ;;  %v11031_v25 = vld [vmem:[%s11997_s0 + $0x5a4] ss:$12 sps:$4 sm:$0xff]  }
 0x1bd   : > { %10184 = vmatprep.subr.bf16.mxu0 %v10936_v13  ;;  %v10978_v13 = vld [vmem:[%s11997_s0 + $0x498] ss:$12 sps:$4 sm:$0xff]  }
 0x1bf   : > { %4325 = vmatmul.mubr.bf16.vlgmr.msra.gmra.mrb[28].mxu0 %v12598_v8  ;;  %3984 = vmatpush1.bf16.msra.mxu1 %v10933_v1  ;;  %v10983_v1 = vld [vmem:[%s11997_s0 + $0x4b0] ss:$12 sps:$4 sm:$0xff]  }
 0x1c0   : > { %10185 = vmatpush3.bf16.msra.mxu0 %v10937_v19  ;;  %4364 = vmatprep.mubr.bf16.mxu0 %v12601_v57  ;;  %v10991_v19 = vld [vmem:[%s11997_s0 + $0x890] ss:$12 sps:$4 sm:$0xff]  }
 0x1c1   : > { %3985 = vmatprep.subr.bf16.mxu1 %v10940_v20  ;;  %10186 = vmatprep.subr.bf16.mxu0 %v10941_v42  ;;  %v10992_v20 = vld [vmem:[%s11997_s0 + $0x7d0] ss:$12 sps:$4 sm:$0xff]  }
 0x1c2   : > { %v10995_v42 = vld [vmem:[%s11997_s0 + $0x4e4] ss:$12 sps:$4 sm:$0xff]  }
 0x1c3   : > { %3986 = vmatpush1.bf16.msra.mxu1 %v10938_v39  ;;  %v10996_v39 = vld [vmem:[%s11997_s0 + $0x8a8] ss:$12 sps:$4 sm:$0xff]  }
 0x1c4   : > { %10187 = vmatpush3.bf16.msra.mxu0 %v10942_v29  ;;  %3987 = vmatprep.subr.bf16.mxu1 %v10945_v28  ;;  %v10993_v29 = vld [vmem:[%s11997_s0 + $0x4e0] ss:$12 sps:$4 sm:$0xff]   ;;  %v10997_v28 = vld [vmem:[%s11997_s0 + $0x7e8] ss:$12 sps:$4 sm:$0xff]  }
 0x1c5   : > { %10188 = vmatprep.subr.bf16.mxu0 %v10946_v14  ;;  %v11000_v14 = vld [vmem:[%s11997_s0 + $0x4fc] ss:$12 sps:$4 sm:$0xff]  }
 0x1c7   : > { %3988 = vmatpush1.bf16.msra.mxu1 %v10943_v45  ;;  %v11001_v45 = vld [vmem:[%s11997_s0 + $0x8c0] ss:$12 sps:$4 sm:$0xff]  }
 0x1c8   : > { %10189 = vmatpush3.bf16.msra.mxu0 %v10947_v17  ;;  %3989 = vmatprep.subr.bf16.mxu1 %v10950_v31  ;;  %v10998_v17 = vld [vmem:[%s11997_s0 + $0x4f8] ss:$12 sps:$4 sm:$0xff]   ;;  %v11002_v31 = vld [vmem:[%s11997_s0 + $0x800] ss:$12 sps:$4 sm:$0xff]  }
 0x1c9   : > { %10190 = vmatprep.subr.bf16.mxu0 %v10951_v3  ;;  %v11005_v3 = vld [vmem:[%s11997_s0 + $0x514] ss:$12 sps:$4 sm:$0xff]  }
 0x1cb   : > { %3990 = vmatpush1.bf16.msra.mxu1 %v10948_v4  ;;  %v11006_v4 = vld [vmem:[%s11997_s0 + $0x8d8] ss:$12 sps:$4 sm:$0xff]  }
 0x1cc   : > { %10191 = vmatpush3.bf16.msra.mxu0 %v10952_v18  ;;  %3991 = vmatprep.subr.bf16.mxu1 %v10955_v38  ;;  %v11003_v18 = vld [vmem:[%s11997_s0 + $0x510] ss:$12 sps:$4 sm:$0xff]   ;;  %v11007_v38 = vld [vmem:[%s11997_s0 + $0x818] ss:$12 sps:$4 sm:$0xff]  }
 0x1cd   : > { %10192 = vmatprep.subr.bf16.mxu0 %v10956_v30  ;;  %v11010_v30 = vld [vmem:[%s11997_s0 + $0x52c] ss:$12 sps:$4 sm:$0xff]  }
 0x1cf   : > { %3992 = vmatpush1.bf16.msra.mxu1 %v10953_v44  ;;  %v11011_v44 = vld [vmem:[%s11997_s0 + $0x8f0] ss:$12 sps:$4 sm:$0xff]  }
 0x1d0   : > { %10193 = vmatpush3.bf16.msra.mxu0 %v10957_v61  ;;  %3993 = vmatprep.subr.bf16.mxu1 %v10960_v41  ;;  %v1853_v61 = vmul.f32 %v12384_v32, %v12477_v56  ;;  %v11008_v41 = vld [vmem:[%s11997_s0 + $0x528] ss:$12 sps:$4 sm:$0xff]  }
 0x1d1   : > { %10194 = vmatprep.subr.bf16.mxu0 %v10961_v40  ;;  %v11012_v40 = vld [vmem:[%s11997_s0 + $0x830] ss:$12 sps:$4 sm:$0xff]  }
 0x1d3   : > { %3994 = vmatpush1.bf16.msra.mxu1 %v10958_v51  ;;  %v11015_v51 = vld [vmem:[%s11997_s0 + $0x544] ss:$12 sps:$4 sm:$0xff]  }
 0x1d4   : > { %10195 = vmatpush3.bf16.msra.mxu0 %v10962_v23  ;;  %3995 = vmatprep.subr.bf16.mxu1 %v10965_v50  ;;  %v1866_v23 = vsel %vm1831_vm13, %v12477_v56, %v1853_v61  ;;  %v11013_v50 = vld [vmem:[%s11997_s0 + $0x540] ss:$12 sps:$4 sm:$0xff]   ;;  %v11068_v61 = vld [vmem:[%s11997_s0 + $0x6d8] ss:$12 sps:$4 sm:$0xff]  }
 0x1d5   : > { %10196 = vmatprep.subr.bf16.mxu0 %v10966_v0  ;;  %v11016_v0 = vld [vmem:[%s11997_s0 + $0x908] ss:$12 sps:$4 sm:$0xff]   ;;  %v11020_v56 = vld [vmem:[%s11997_s0 + $0x920] ss:$12 sps:$4 sm:$0xff]  }
 0x1d7   : > { %3996 = vmatpush1.bf16.msra.mxu1 %v10963_v7  ;;  %v11019_v7 = vld [vmem:[%s11997_s0 + $0x55c] ss:$12 sps:$4 sm:$0xff]  }
 0x1d8   : > { %10197 = vmatpush3.bf16.msra.mxu0 %v10967_v46  ;;  %3997 = vmatprep.subr.bf16.mxu1 %v10970_v62  ;;  %v12686_v46 = vpack.c.bf16 %v1866_v23, %v1866_v23  ;;  %v11017_v62 = vld [vmem:[%s11997_s0 + $0x558] ss:$12 sps:$4 sm:$0xff]   ;;  %v11074_v23 = vld [vmem:[%s11997_s0 + $0x708] ss:$12 sps:$4 sm:$0xff]  }
 0x1d9   : > { %10198 = vmatprep.subr.bf16.mxu0 %v10971_v5  ;;  %v11023_v5 = vld [vmem:[%s11997_s0 + $0x574] ss:$12 sps:$4 sm:$0xff]  }
 0x1db   : > { %3998 = vmatpush1.bf16.msra.mxu1 %v10968_v58  ;;  %v11024_v58 = vld [vmem:[%s11997_s0 + $0x938] ss:$12 sps:$4 sm:$0xff]  }
 0x1dc   : > { %10199 = vmatpush3.bf16.msra.mxu0 %v10972_v16  ;;  %4008 = vmatprep.subr.bf16.mxu1 %v10975_v2  ;;  %v11027_v16 = vld [vmem:[%s11997_s0 + $0x58c] ss:$12 sps:$4 sm:$0xff]   ;;  %v1855_v2 = vmul.f32 %v12384_v32, %v12465_v6  ;;  %v11034_v32 = vld [vmem:[%s11997_s0 + $0x5bc] ss:$12 sps:$4 sm:$0xff]  }
 0x1dd   : > { %10206 = vmatprep.subr.bf16.mxu0 %v10976_v36  ;;  %v11028_v36 = vld [vmem:[%s11997_s0 + $0x950] ss:$12 sps:$4 sm:$0xff]  }
 0x1de   : > { %4000 = vmatmul.mubr.bf16.vlgmr.msra.gmra.mrb[12].mxu1 %v12550_v47  ;;  %v10986_v47 = vld [vmem:[%s11997_s0 + $0x878] ss:$12 sps:$4 sm:$0xff]  }
 0x1df   : > { %4365 = vmatmul.mubr.bf16.vlgmr.msra.gmra.mrb[32].mxu0 %v12642_v37  ;;  %4009 = vmatpush1.bf16.msra.mxu1 %v10973_v35  ;;  %v1868_v35 = vsel %vm1833_vm14, %v12465_v6, %v1855_v2  ;;  %v11035_v6 = vld [vmem:[%s11997_s0 + $0x5d0] ss:$12 sps:$4 sm:$0xff]  }
 0x1e0   : > { %4040 = vmatprep.mubr.bf16.mxu1 %v12554_v24  ;;  %10207 = vmatpush3.bf16.msra.mxu0 %v10977_v9  ;;  %v10990_v24 = vld [vmem:[%s11997_s0 + $0x4cc] ss:$12 sps:$4 sm:$0xff]   ;;  %v12710_v15 = vpack.c.bf16 %v1868_v35, %v1868_v35  ;;  %v11083_v2 = vld [vmem:[%s11997_s0 + $0x750] ss:$12 sps:$4 sm:$0xff]   ;;  %v11086_v35 = vld [vmem:[%s11997_s0 + $0x768] ss:$12 sps:$4 sm:$0xff]  }
 0x1e1   : > { %4404 = vmatprep.mubr.bf16.mxu0 %v12648_v34  ;;  %4010 = vmatprep.subr.bf16.mxu1 %v10980_v33  ;;  %v11029_v9 = vld [vmem:[%s11997_s0 + $0x5a0] ss:$12 sps:$4 sm:$0xff]   ;;  %v11032_v33 = vld [vmem:[%s11997_s0 + $0x5b8] ss:$12 sps:$4 sm:$0xff]  }
 0x1e2   : > { %10208 = vmatprep.subr.bf16.mxu0 %v10981_v26  ;;  %v11037_v26 = vld [vmem:[%s11997_s0 + $0x5d4] ss:$12 sps:$4 sm:$0xff]  }
 0x1e3   : > { %4011 = vmatpush1.bf16.msra.mxu1 %v10978_v13  ;;  %v11040_v13 = vld [vmem:[%s11997_s0 + $0x5ec] ss:$12 sps:$4 sm:$0xff]  }
 0x1e4   : > { %10209 = vmatpush3.bf16.msra.mxu0 %v10982_v63  ;;  %4012 = vmatprep.subr.bf16.mxu1 %v10985_v22  ;;  %v11038_v63 = vld [vmem:[%s11997_s0 + $0x5e8] ss:$12 sps:$4 sm:$0xff]   ;;  %v11043_v22 = vld [vmem:[%s11997_s0 + $0x604] ss:$12 sps:$4 sm:$0xff]  }
 0x1e5   : > { %10210 = vmatprep.subr.bf16.mxu0 %v10986_v47  ;;  %v11041_v47 = vld [vmem:[%s11997_s0 + $0x600] ss:$12 sps:$4 sm:$0xff]  }
 0x1e7   : > { %4013 = vmatpush1.bf16.msra.mxu1 %v10983_v1  ;;  %v11046_v1 = vld [vmem:[%s11997_s0 + $0x61c] ss:$12 sps:$4 sm:$0xff]  }
 0x1e8   : > { %10211 = vmatpush3.bf16.msra.mxu0 %v10987_v12  ;;  %4014 = vmatprep.subr.bf16.mxu1 %v10990_v24  ;;  %v11044_v12 = vld [vmem:[%s11997_s0 + $0x618] ss:$12 sps:$4 sm:$0xff]   ;;  %v11049_v24 = vld [vmem:[%s11997_s0 + $0x634] ss:$12 sps:$4 sm:$0xff]  }
 0x1e9   : > { %10212 = vmatprep.subr.bf16.mxu0 %v10991_v19  ;;  %v11047_v19 = vld [vmem:[%s11997_s0 + $0x630] ss:$12 sps:$4 sm:$0xff]  }
 0x1eb   : > { %4015 = vmatpush1.bf16.msra.mxu1 %v10988_v55  ;;  %v11052_v55 = vld [vmem:[%s11997_s0 + $0x64c] ss:$12 sps:$4 sm:$0xff]  }
 0x1ec   : > { %10213 = vmatpush3.bf16.msra.mxu0 %v10992_v20  ;;  %4016 = vmatprep.subr.bf16.mxu1 %v10995_v42  ;;  %v11050_v20 = vld [vmem:[%s11997_s0 + $0x648] ss:$12 sps:$4 sm:$0xff]   ;;  %v11055_v42 = vld [vmem:[%s11997_s0 + $0x664] ss:$12 sps:$4 sm:$0xff]  }
 0x1ed   : > { %10214 = vmatprep.subr.bf16.mxu0 %v10996_v39  ;;  %v11056_v39 = vld [vmem:[%s11997_s0 + $0x678] ss:$12 sps:$4 sm:$0xff]  }
 0x1ef   : > { %4017 = vmatpush1.bf16.msra.mxu1 %v10993_v29  ;;  %v11061_v29 = vld [vmem:[%s11997_s0 + $0x694] ss:$12 sps:$4 sm:$0xff]  }
 0x1f0   : > { %10215 = vmatpush3.bf16.msra.mxu0 %v10997_v28  ;;  %4018 = vmatprep.subr.bf16.mxu1 %v11000_v14 }
 0x1f1   : > { %10216 = vmatprep.subr.bf16.mxu0 %v11001_v45 }
 0x1f3   : > { %4019 = vmatpush1.bf16.msra.mxu1 %v10998_v17 }
 0x1f4   : > { %10217 = vmatpush3.bf16.msra.mxu0 %v11002_v31  ;;  %4020 = vmatprep.subr.bf16.mxu1 %v11005_v3  ;;  %v11059_v31 = vld [vmem:[%s11997_s0 + $0x690] ss:$12 sps:$4 sm:$0xff]  }
 0x1f5   : > { %10218 = vmatprep.subr.bf16.mxu0 %v11006_v4  ;;  %v11064_v4 = vld [vmem:[%s11997_s0 + $0x6ac] ss:$12 sps:$4 sm:$0xff]  }
 0x1f7   : > { %4021 = vmatpush1.bf16.msra.mxu1 %v11003_v18  ;;  %v11062_v18 = vld [vmem:[%s11997_s0 + $0x6a8] ss:$12 sps:$4 sm:$0xff]  }
 0x1f8   : > { %10219 = vmatpush3.bf16.msra.mxu0 %v11007_v38  ;;  %4022 = vmatprep.subr.bf16.mxu1 %v11010_v30  ;;  %v11067_v38 = vld [vmem:[%s11997_s0 + $0x6c4] ss:$12 sps:$4 sm:$0xff]   ;;  %v11065_v30 = vld [vmem:[%s11997_s0 + $0x6c0] ss:$12 sps:$4 sm:$0xff]  }
 0x1f9   : > { %10220 = vmatprep.subr.bf16.mxu0 %v11011_v44  ;;  %v11070_v44 = vld [vmem:[%s11997_s0 + $0x6dc] ss:$12 sps:$4 sm:$0xff]  }
 0x1fb   : > { %4023 = vmatpush1.bf16.msra.mxu1 %v11008_v41  ;;  %v11073_v41 = vld [vmem:[%s11997_s0 + $0x6f4] ss:$12 sps:$4 sm:$0xff]  }
 0x1fc   : > { %10221 = vmatpush3.bf16.msra.mxu0 %v11012_v40  ;;  %4024 = vmatprep.subr.bf16.mxu1 %v11015_v51  ;;  %v11071_v40 = vld [vmem:[%s11997_s0 + $0x6f0] ss:$12 sps:$4 sm:$0xff]   ;;  %v11076_v51 = vld [vmem:[%s11997_s0 + $0x70c] ss:$12 sps:$4 sm:$0xff]  }
 0x1fd   : > { %10455 = vmatprep.subr.bf16.mxu0 %v13751_v54 }
 0x1ff   : > { %4405 = vmatmul.mubr.bf16.vlgmr.msra.gmra.mrb[36].mxu0 %v12686_v46  ;;  %4025 = vmatpush1.bf16.msra.mxu1 %v11013_v50  ;;  %v11079_v50 = vld [vmem:[%s11997_s0 + $0x724] ss:$12 sps:$4 sm:$0xff]  }
 0x200   : > { %10456 = vmatpush3.bf16.msra.mxu0 %v11016_v0  ;;  %4026 = vmatprep.subr.bf16.mxu1 %v11019_v7  ;;  %v11077_v0 = vld [vmem:[%s11997_s0 + $0x720] ss:$12 sps:$4 sm:$0xff]   ;;  %v11082_v7 = vld [vmem:[%s11997_s0 + $0x73c] ss:$12 sps:$4 sm:$0xff]  }
 0x201   : > { %10457 = vmatprep.subr.bf16.mxu0 %v13751_v54  ;;  %10463 = vmatprep.mubr.msk.bf16.mxu0 %vm11796_vm1, %v13751_v54 }
 0x203   : > { %4027 = vmatpush1.bf16.msra.mxu1 %v11017_v62  ;;  %v11080_v62 = vld [vmem:[%s11997_s0 + $0x738] ss:$12 sps:$4 sm:$0xff]  }
 0x204   : > { %10458 = vmatpush3.bf16.msra.mxu0 %v11020_v56  ;;  %4028 = vmatprep.subr.bf16.mxu1 %v11023_v5  ;;  %v11085_v56 = vld [vmem:[%s11997_s0 + $0x754] ss:$12 sps:$4 sm:$0xff]  }
 0x205   : > { %10459 = vmatprep.subr.bf16.mxu0 %v13751_v54 }
 0x207   : > { %4029 = vmatpush1.bf16.msra.mxu1 %v11021_v27 }
 0x208   : > { %10460 = vmatpush3.bf16.msra.mxu0 %v11024_v58  ;;  %4030 = vmatprep.subr.bf16.mxu1 %v11027_v16 }
 0x209   : > { %10461 = vmatprep.subr.bf16.mxu0 %v13751_v54 }
 0x20b   : > { %4031 = vmatpush1.bf16.msra.mxu1 %v11025_v10 }
 0x20c   : > { %10462 = vmatpush3.bf16.msra.mxu0 %v11028_v36  ;;  %4032 = vmatprep.subr.bf16.mxu1 %v11031_v25  ;;  %v11088_v36 = vld [vmem:[%s11997_s0 + $0x76c] ss:$12 sps:$4 sm:$0xff]  }
 0x20f   : > { %10464 = vmatmul.mubr.msk.bf16.vlgmr.msra.gmra.mrb[40].mxu0 %vm932_vm0, %v12710_v15  ;;  %4033 = vmatpush1.bf16.msra.mxu1 %v11029_v9  ;;  %v11091_v9 = vld [vmem:[%s11997_s0 + $0x784] ss:$12 sps:$4 sm:$0xff]  }
 0x210   : > { %4034 = vmatprep.subr.bf16.mxu1 %v11034_v32  ;;  %v11089_v32 = vld [vmem:[%s11997_s0 + $0x780] ss:$12 sps:$4 sm:$0xff]  }
 0x213   : > { %4035 = vmatpush1.bf16.msra.mxu1 %v11032_v33  ;;  %v11094_v33 = vld [vmem:[%s11997_s0 + $0x79c] ss:$12 sps:$4 sm:$0xff]  }
 0x214   : > { %4036 = vmatprep.subr.bf16.mxu1 %v11037_v26  ;;  %v11092_v26 = vld [vmem:[%s11997_s0 + $0x798] ss:$12 sps:$4 sm:$0xff]  }
 0x217   : > { %4037 = vmatpush1.bf16.msra.mxu1 %v11035_v6  ;;  %v11097_v6 = vld [vmem:[%s11997_s0 + $0x7b4] ss:$12 sps:$4 sm:$0xff]  }
 0x218   : > { %4038 = vmatprep.subr.bf16.mxu1 %v11040_v13  ;;  %v11095_v13 = vld [vmem:[%s11997_s0 + $0x7b0] ss:$12 sps:$4 sm:$0xff]  }
 0x21b   : > { %4039 = vmatpush1.bf16.msra.mxu1 %v11038_v63  ;;  %v11100_v63 = vld [vmem:[%s11997_s0 + $0x7cc] ss:$12 sps:$4 sm:$0xff]  }
 0x21c   : > { %4049 = vmatprep.subr.bf16.mxu1 %v11043_v22  ;;  %v11098_v22 = vld [vmem:[%s11997_s0 + $0x7c8] ss:$12 sps:$4 sm:$0xff]  }
 0x21e   : > { %4041 = vmatmul.mubr.bf16.vlgmr.msra.gmra.mrb[12].mxu1 %v12598_v8  ;;  %v11053_v8 = vld [vmem:[%s11997_s0 + $0x660] ss:$12 sps:$4 sm:$0xff]  }
 0x21f   : > { %4050 = vmatpush1.bf16.msra.mxu1 %v11041_v47  ;;  %4081 = vmatprep.mubr.bf16.mxu1 %v12601_v57  ;;  %v11058_v57 = vld [vmem:[%s11997_s0 + $0x67c] ss:$12 sps:$4 sm:$0xff]   ;;  %v11103_v47 = vld [vmem:[%s11997_s0 + $0x7e4] ss:$12 sps:$4 sm:$0xff]  }
 0x220   : > { %4051 = vmatprep.subr.bf16.mxu1 %v11046_v1  ;;  %v11106_v1 = vld [vmem:[%s11997_s0 + $0x7fc] ss:$12 sps:$4 sm:$0xff]  }
 0x223   : > { %4052 = vmatpush1.bf16.msra.mxu1 %v11044_v12  ;;  %v11109_v12 = vld [vmem:[%s11997_s0 + $0x814] ss:$12 sps:$4 sm:$0xff]  }
 0x224   : > { %4053 = vmatprep.subr.bf16.mxu1 %v11049_v24 }
 0x227   : > { %4054 = vmatpush1.bf16.msra.mxu1 %v11047_v19 }
 0x228   : > { %4055 = vmatprep.subr.bf16.mxu1 %v11052_v55 }
 0x22b   : > { %4056 = vmatpush1.bf16.msra.mxu1 %v11050_v20 }
 0x22c   : > { %4057 = vmatprep.subr.bf16.mxu1 %v11055_v42  ;;  %v11107_v42 = vld [vmem:[%s11997_s0 + $0x810] ss:$12 sps:$4 sm:$0xff]  }
 0x22f   : > { %4058 = vmatpush1.bf16.msra.mxu1 %v11053_v8 }
 0x230   : > { %4059 = vmatprep.subr.bf16.mxu1 %v11058_v57  ;;  %v11112_v57 = vld [vmem:[%s11997_s0 + $0x82c] ss:$12 sps:$4 sm:$0xff]  }
 0x231   : > { %v10112_v28 = vpop.f32.mrb[16].mxu0 }
 0x232   : > { %v10113_v14 = vpop.f32.mrb[17].mxu0 }
 0x233   : > { %4060 = vmatpush1.bf16.msra.mxu1 %v11056_v39  ;;  %v10114_v45 = vadd.f32 %v10113_v14, %v10112_v28  ;;  %v10115_v17 = vpop.f32.mrb[18].mxu0  ;;  %v11115_v28 = vld [vmem:[%s11997_s0 + $0x844] ss:$12 sps:$4 sm:$0xff]   ;;  %v11113_v14 = vld [vmem:[%s11997_s0 + $0x840] ss:$12 sps:$4 sm:$0xff]  }
 0x234   : > { %v10116_v3 = vpop.f32.mrb[19].mxu0  ;;  %4061 = vmatprep.subr.bf16.mxu1 %v11061_v29  ;;  %v11110_v29 = vld [vmem:[%s11997_s0 + $0x828] ss:$12 sps:$4 sm:$0xff]   ;;  %v11116_v17 = vld [vmem:[%s11997_s0 + $0x858] ss:$12 sps:$4 sm:$0xff]  }
 0x235   : > { %v11119_v3 = vld [vmem:[%s11997_s0 + $0x870] ss:$12 sps:$4 sm:$0xff]  }
 0x237   : > { %4062 = vmatpush1.bf16.msra.mxu1 %v11059_v31  ;;  %v11121_v31 = vld [vmem:[%s11997_s0 + $0x874] ss:$12 sps:$4 sm:$0xff]  }
 0x238   : > { %4063 = vmatprep.subr.bf16.mxu1 %v11064_v4  ;;  %v11124_v4 = vld [vmem:[%s11997_s0 + $0x88c] ss:$12 sps:$4 sm:$0xff]  }
 0x23b   : > { %4064 = vmatpush1.bf16.msra.mxu1 %v11062_v18  ;;  %v11122_v18 = vld [vmem:[%s11997_s0 + $0x888] ss:$12 sps:$4 sm:$0xff]  }
 0x23c   : > { %4065 = vmatprep.subr.bf16.mxu1 %v11067_v38  ;;  %v11127_v38 = vld [vmem:[%s11997_s0 + $0x8a4] ss:$12 sps:$4 sm:$0xff]  }
 0x23f   : > { %4066 = vmatpush1.bf16.msra.mxu1 %v11065_v30  ;;  %v11798_v30 = vmov 81  }
 0x240   : > { %4067 = vmatprep.subr.bf16.mxu1 %v11070_v44  ;;  %10670 = vset.pattern.permute.xlu0 %v11798_v30  ;;  %v11125_v44 = vld [vmem:[%s11997_s0 + $0x8a0] ss:$12 sps:$4 sm:$0xff]  }
 0x243   : > { %4068 = vmatpush1.bf16.msra.mxu1 %v11068_v61  ;;  %v12782_v61 = vld [vmem:[%s11989_s26] ss:$0 sm:$0xff] }
 0x244   : > { %4069 = vmatprep.subr.bf16.mxu1 %v11073_v41  ;;  %4602 = vperm.xlu0 %10670, %v12782_v61   ;;  %v11130_v41 = vld [vmem:[%s11997_s0 + $0x8bc] ss:$12 sps:$4 sm:$0xff]  }
 0x247   : > { %4070 = vmatpush1.bf16.msra.mxu1 %v11071_v40  ;;  %v11128_v40 = vld [vmem:[%s11997_s0 + $0x8b8] ss:$12 sps:$4 sm:$0xff]  }
 0x248   : > { %4071 = vmatprep.subr.bf16.mxu1 %v11076_v51  ;;  %v13762_v51 = vmov 0  }
 0x249   : > { %10672 = vset.pattern.permute.xlu0 %v13762_v51 }
 0x24b   : > { %4072 = vmatpush1.bf16.msra.mxu1 %v11074_v23  ;;  %v11133_v23 = vld [vmem:[%s11997_s0 + $0x8d4] ss:$12 sps:$4 sm:$0xff]  }
 0x24c   : > { %4073 = vmatprep.subr.bf16.mxu1 %v11079_v50 }
 0x24f   : > { %4074 = vmatpush1.bf16.msra.mxu1 %v11077_v0 }
 0x250   : > { %4075 = vmatprep.subr.bf16.mxu1 %v11082_v7  ;;  %v11131_v7 = vld [vmem:[%s11997_s0 + $0x8d0] ss:$12 sps:$4 sm:$0xff]  }
 0x252   : > { %v10134_v5 = vpop.f32.mrb[20].mxu0 }
 0x253   : > { %v10135_v27 = vpop.f32.mrb[21].mxu0  ;;  %4076 = vmatpush1.bf16.msra.mxu1 %v11080_v62 }
 0x254   : > { %v10136_v58 = vadd.f32 %v10135_v27, %v10134_v5  ;;  %v10137_v16 = vpop.f32.mrb[22].mxu0  ;;  %4077 = vmatprep.subr.bf16.mxu1 %v11085_v56  ;;  %v11136_v5 = vld [vmem:[%s11997_s0 + $0x8ec] ss:$12 sps:$4 sm:$0xff]  }
 0x255   : > { %v10138_v10 = vpop.f32.mrb[23].mxu0  ;;  %v11134_v16 = vld [vmem:[%s11997_s0 + $0x8e8] ss:$12 sps:$4 sm:$0xff]  }
 0x256   : > { %v4247_v25 = vadd.f32 %v10136_v58, %v10114_v45  ;;  %v11118_v45 = vld [vmem:[%s11997_s0 + $0x85c] ss:$12 sps:$4 sm:$0xff]   ;;  %v11137_v10 = vld [vmem:[%s11997_s0 + $0x900] ss:$12 sps:$4 sm:$0xff]  }
 0x257   : > { %4078 = vmatpush1.bf16.msra.mxu1 %v11083_v2  ;;  %v11139_v2 = vld [vmem:[%s11997_s0 + $0x904] ss:$12 sps:$4 sm:$0xff]  }
 0x258   : > { %4079 = vmatprep.subr.bf16.mxu1 %v11088_v36  ;;  %v11142_v36 = vld [vmem:[%s11997_s0 + $0x91c] ss:$12 sps:$4 sm:$0xff]  }
 0x25b   : > { %4080 = vmatpush1.bf16.msra.mxu1 %v11086_v35  ;;  %v11145_v35 = vld [vmem:[%s11997_s0 + $0x934] ss:$12 sps:$4 sm:$0xff]  }
 0x25c   : > { %4090 = vmatprep.subr.bf16.mxu1 %v11091_v9  ;;  %v11143_v9 = vld [vmem:[%s11997_s0 + $0x930] ss:$12 sps:$4 sm:$0xff]  }
 0x25e   : > { %4082 = vmatmul.mubr.bf16.vlgmr.msra.gmra.mrb[12].mxu1 %v12642_v37  ;;  %v11101_v37 = vld [vmem:[%s11997_s0 + $0x7e0] ss:$12 sps:$4 sm:$0xff]  }
 0x25f   : > { %4091 = vmatpush1.bf16.msra.mxu1 %v11089_v32  ;;  %4122 = vmatprep.mubr.bf16.mxu1 %v12648_v34  ;;  %v11104_v34 = vld [vmem:[%s11997_s0 + $0x7f8] ss:$12 sps:$4 sm:$0xff]  }
 0x260   : > { %4092 = vmatprep.subr.bf16.mxu1 %v11094_v33  ;;  %v11148_v32 = vld [vmem:[%s11997_s0 + $0x94c] ss:$12 sps:$4 sm:$0xff]   ;;  %v11146_v33 = vld [vmem:[%s11997_s0 + $0x948] ss:$12 sps:$4 sm:$0xff]  }
 0x263   : > { %4093 = vmatpush1.bf16.msra.mxu1 %v11092_v26 }
 0x264   : > { %4094 = vmatprep.subr.bf16.mxu1 %v11097_v6 }
 0x267   : > { %4095 = vmatpush1.bf16.msra.mxu1 %v11095_v13 }
 0x268   : > { %4096 = vmatprep.subr.bf16.mxu1 %v11100_v63 }
 0x26b   : > { %4097 = vmatpush1.bf16.msra.mxu1 %v11098_v22 }
 0x26c   : > { %4098 = vmatprep.subr.bf16.mxu1 %v11103_v47 }
 0x26f   : > { %4099 = vmatpush1.bf16.msra.mxu1 %v11101_v37 }
 0x270   : > { %4100 = vmatprep.subr.bf16.mxu1 %v11106_v1 }
 0x272   : > { %v10156_v24 = vpop.f32.mrb[24].mxu0 }
 0x273   : > { %v10157_v19 = vpop.f32.mrb[25].mxu0  ;;  %4101 = vmatpush1.bf16.msra.mxu1 %v11104_v34 }
 0x274   : > { %v10158_v55 = vadd.f32 %v10157_v19, %v10156_v24  ;;  %v10159_v20 = vpop.f32.mrb[26].mxu0  ;;  %4102 = vmatprep.subr.bf16.mxu1 %v11109_v12 }
 0x275   : > { %v10160_v8 = vpop.f32.mrb[27].mxu0 }
 0x276   : > { %v4287_v39 = vadd.f32 %v10158_v55, %v4247_v25  ;;  %v11140_v25 = vld [vmem:[%s11997_s0 + $0x918] ss:$12 sps:$4 sm:$0xff]   ;;  %s10609_s0 = smul.u32 320, %s11923_s15 }
 0x277   : > { %4103 = vmatpush1.bf16.msra.mxu1 %v11107_v42 }
 0x278   : > { %4104 = vmatprep.subr.bf16.mxu1 %v11112_v57  ;;  %s12810_s29 = scalar_lea.vmem %s13741_s5, %s10609_s0  ;;  %s11801_s0 = smov 120  }
 0x279   : > { %v4628_v57 = vld [vmem:[%s12810_s29 + $0x88] sm:$0xff] }
 0x27a   : > { %v4632_v30 = vld [vmem:[%s12810_s29 + $0xa8] sm:$0xff] }
 0x27b   : > { %4105 = vmatpush1.bf16.msra.mxu1 %v11110_v29  ;;  %v4611_v29 = vld [vmem:[%s12810_s29] sm:$0xff] }
 0x27c   : > { %4106 = vmatprep.subr.bf16.mxu1 %v11115_v28  ;;  %v4612_v28 = vld [vmem:[%s12810_s29 + $0x8] sm:$0xff] }
 0x27f   : > { %4107 = vmatpush1.bf16.msra.mxu1 %v11113_v14  ;;  %v10517_v14 = vpack.c.bf16 %v4612_v28, %v4611_v29 }
 0x280   : > { %4108 = vmatprep.subr.bf16.mxu1 %v11118_v45  ;;  %v4629_v45 = vld [vmem:[%s12810_s29 + $0x90] sm:$0xff] }
 0x283   : > { %4109 = vmatpush1.bf16.msra.mxu1 %v11116_v17  ;;  %v4630_v17 = vld [vmem:[%s12810_s29 + $0x98] sm:$0xff] }
 0x284   : > { %4110 = vmatprep.subr.bf16.mxu1 %v11121_v31  ;;  %v10519_v31 = vpack.c.bf16 %v4630_v17, %v4629_v45 }
 0x287   : > { %4111 = vmatpush1.bf16.msra.mxu1 %v11119_v3  ;;  %v4613_v3 = vld [vmem:[%s12810_s29 + $0x10] sm:$0xff] }
 0x288   : > { %4112 = vmatprep.subr.bf16.mxu1 %v11124_v4  ;;  %v4614_v4 = vld [vmem:[%s12810_s29 + $0x18] sm:$0xff] }
 0x28b   : > { %4113 = vmatpush1.bf16.msra.mxu1 %v11122_v18  ;;  %v10521_v18 = vpack.c.bf16 %v4614_v4, %v4613_v3 }
 0x28c   : > { %4114 = vmatprep.subr.bf16.mxu1 %v11127_v38  ;;  %v4631_v38 = vld [vmem:[%s12810_s29 + $0xa0] sm:$0xff] }
 0x28f   : > { %4115 = vmatpush1.bf16.msra.mxu1 %v11125_v44  ;;  %v10523_v44 = vpack.c.bf16 %v4632_v30, %v4631_v38 }
 0x290   : > { %4116 = vmatprep.subr.bf16.mxu1 %v11130_v41  ;;  %v4615_v41 = vld [vmem:[%s12810_s29 + $0x20] sm:$0xff] }
 0x292   : > { %v10178_v50 = vpop.f32.mrb[28].mxu0 }
 0x293   : > { %v10179_v0 = vpop.f32.mrb[29].mxu0  ;;  %4117 = vmatpush1.bf16.msra.mxu1 %v11128_v40  ;;  %v4616_v40 = vld [vmem:[%s12810_s29 + $0x28] sm:$0xff] }
 0x294   : > { %v10180_v62 = vadd.f32 %v10179_v0, %v10178_v50  ;;  %v10181_v56 = vpop.f32.mrb[30].mxu0  ;;  %4118 = vmatprep.subr.bf16.mxu1 %v11133_v23  ;;  %v10525_v23 = vpack.c.bf16 %v4616_v40, %v4615_v41  ;;  %v4633_v50 = vld [vmem:[%s12810_s29 + $0xb0] sm:$0xff]  ;;  %v4634_v0 = vld [vmem:[%s12810_s29 + $0xb8] sm:$0xff] }
 0x295   : > { %v10182_v27 = vpop.f32.mrb[31].mxu0  ;;  %v4618_v56 = vld [vmem:[%s12810_s29 + $0x38] sm:$0xff] }
 0x296   : > { %v4327_v58 = vadd.f32 %v10180_v62, %v4287_v39  ;;  %v4617_v62 = vld [vmem:[%s12810_s29 + $0x30] sm:$0xff]  ;;  %v4635_v27 = vld [vmem:[%s12810_s29 + $0xc0] sm:$0xff] }
 0x297   : > { %4119 = vmatpush1.bf16.msra.mxu1 %v11131_v7  ;;  %v10527_v7 = vpack.c.bf16 %v4634_v0, %v4633_v50 }
 0x298   : > { %4120 = vmatprep.subr.bf16.mxu1 %v11136_v5  ;;  %v10529_v5 = vpack.c.bf16 %v4618_v56, %v4617_v62 }
 0x29b   : > { %4121 = vmatpush1.bf16.msra.mxu1 %v11134_v16 }
 0x29c   : > { %4131 = vmatprep.subr.bf16.mxu1 %v11139_v2  ;;  %v4619_v2 = vld [vmem:[%s12810_s29 + $0x40] sm:$0xff] }
 0x29e   : > { %4123 = vmatmul.mubr.bf16.vlgmr.msra.gmra.mrb[12].mxu1 %v12686_v46 }
 0x29f   : > { %4132 = vmatpush1.bf16.msra.mxu1 %v11137_v10  ;;  %4163 = vmatprep.mubr.bf16.mxu1 %v13762_v51  ;;  %v4620_v10 = vld [vmem:[%s12810_s29 + $0x48] sm:$0xff] }
 0x2a0   : > { %4133 = vmatprep.subr.bf16.mxu1 %v11142_v36  ;;  %v10533_v36 = vpack.c.bf16 %v4620_v10, %v4619_v2 }
 0x2a3   : > { %4134 = vmatpush1.bf16.msra.mxu1 %v11140_v25  ;;  %v4637_v25 = vld [vmem:[%s12810_s29 + $0xd0] sm:$0xff] }
 0x2a4   : > { %4135 = vmatprep.subr.bf16.mxu1 %v11145_v35  ;;  %v4638_v35 = vld [vmem:[%s12810_s29 + $0xd8] sm:$0xff] }
 0x2a7   : > { %4136 = vmatpush1.bf16.msra.mxu1 %v11143_v9  ;;  %v4621_v9 = vld [vmem:[%s12810_s29 + $0x50] sm:$0xff] }
 0x2a8   : > { %4137 = vmatprep.subr.bf16.mxu1 %v11148_v32  ;;  %v10535_v32 = vpack.c.bf16 %v4638_v35, %v4637_v25 }
 0x2ab   : > { %4138 = vmatpush1.bf16.msra.mxu1 %v11146_v33  ;;  %v4622_v33 = vld [vmem:[%s12810_s29 + $0x58] sm:$0xff] }
 0x2ae   : > { %9704 = vmatmul.mubr.msk.bf16.vlgmr.msra.gmra.mrb[12].mxu1 %vm932_vm0, %v12710_v15  ;;  %v4627_v15 = vld [vmem:[%s12810_s29 + $0x80] sm:$0xff] }
 0x2af   : > { %v10515_v39 = vpack.c.bf16 %v4628_v57, %v4627_v15 }
 0x2b1   : > { %10516 = vmatprep.subr.bf16.mxu0 %v10515_v39 }
 0x2b2   : > { %v10200_v26 = vpop.f32.mrb[32].mxu0  ;;  %10518 = vmatpush3.bf16.msra.mxu0 %v10517_v14 }
 0x2b3   : > { %v10201_v6 = vpop.f32.mrb[33].mxu0  ;;  %10520 = vmatprep.subr.bf16.mxu0 %v10519_v31 }
 0x2b4   : > { %v10202_v46 = vadd.f32 %v10201_v6, %v10200_v26  ;;  %v10203_v13 = vpop.f32.mrb[34].mxu0  ;;  %v4639_v26 = vld [vmem:[%s12810_s29 + $0xe0] sm:$0xff]  ;;  %v4640_v6 = vld [vmem:[%s12810_s29 + $0xe8] sm:$0xff] }
 0x2b5   : > { %v10204_v63 = vpop.f32.mrb[35].mxu0  ;;  %v10539_v13 = vpack.c.bf16 %v4640_v6, %v4639_v26 }
 0x2b6   : > { %v4367_v22 = vadd.f32 %v10202_v46, %v4327_v58  ;;  %10522 = vmatpush3.bf16.msra.mxu0 %v10521_v18  ;;  %v4636_v58 = vld [vmem:[%s12810_s29 + $0xc8] sm:$0xff]  ;;  %v10537_v46 = vpack.c.bf16 %v4622_v33, %v4621_v9  ;;  %v4623_v63 = vld [vmem:[%s12810_s29 + $0x60] sm:$0xff] }
 0x2b7   : > { %10524 = vmatprep.subr.bf16.mxu0 %v10523_v44  ;;  %v10531_v16 = vpack.c.bf16 %v4636_v58, %v4635_v27 }
 0x2ba   : > { %10526 = vmatpush3.bf16.msra.mxu0 %v10525_v23 }
 0x2bb   : > { %10528 = vmatprep.subr.bf16.mxu0 %v10527_v7 }
 0x2be   : > { %10530 = vmatpush3.bf16.msra.mxu0 %v10529_v5 }
 0x2bf   : > { %10532 = vmatprep.subr.bf16.mxu0 %v10531_v16 }
 0x2c2   : > { %10534 = vmatpush3.bf16.msra.mxu0 %v10533_v36 }
 0x2c3   : > { %10536 = vmatprep.subr.bf16.mxu0 %v10535_v32 }
 0x2c6   : > { %10538 = vmatpush3.bf16.msra.mxu0 %v10537_v46 }
 0x2c7   : > { %10540 = vmatprep.subr.bf16.mxu0 %v10539_v13 }
 0x2d2   : > { %v10222_v47 = vpop.f32.mrb[36].mxu0 }
 0x2d3   : > { %v10223_v37 = vpop.f32.mrb[37].mxu0 }
 0x2d4   : > { %v10224_v1 = vadd.f32 %v10223_v37, %v10222_v47  ;;  %v10225_v34 = vpop.f32.mrb[38].mxu0  ;;  %v4641_v47 = vld [vmem:[%s12810_s29 + $0xf0] sm:$0xff]  ;;  %v4642_v37 = vld [vmem:[%s12810_s29 + $0xf8] sm:$0xff] }
 0x2d5   : > { %v10226_v12 = vpop.f32.mrb[39].mxu0  ;;  %v10543_v34 = vpack.c.bf16 %v4642_v37, %v4641_v47 }
 0x2d6   : > { %v4407_v24 = vadd.f32 %v10224_v1, %v4367_v22  ;;  %v4624_v22 = vld [vmem:[%s12810_s29 + $0x68] sm:$0xff]  ;;  %v4625_v12 = vld [vmem:[%s12810_s29 + $0x70] sm:$0xff] }
 0x2d7   : > { %v10541_v1 = vpack.c.bf16 %v4624_v22, %v4623_v63 }
 0x2d9   : > { %10542 = vmatpush3.bf16.msra.mxu0 %v10541_v1 }
 0x2da   : > { %10544 = vmatprep.subr.bf16.mxu0 %v10543_v34 }
 0x2e2   : > { %v4446_v19 = vpop.f32.mrb[40].mxu0 }
 0x2e3   : > { %v12804_v55 = vadd.f32 %v4446_v19, %v4407_v24  ;;  %v10465_v20 = vpop.f32.mrb[41].mxu0  ;;  %v4626_v24 = vld [vmem:[%s12810_s29 + $0x78] sm:$0xff] }
 0x2e4   : > { %v4449_v42 = vpop.f32.mrb[42].mxu0  ;;  %v10545_v19 = vpack.c.bf16 %v4626_v24, %v4625_v12  ;;  %v11799_v20 = vmov 0.0|0.0  }
 0x2e5   : > { %v10466_v8 = vpop.f32.mrb[43].mxu0  ;;  %v4797_v42 = vld [vmem:[%s569_s28] sm:$0xff]  ;;  %v4479_v15 = vmul.f32 %v12804_v55, %v12804_v55 }
 0x2e6   : > { %10546 = vmatpush3.bf16.msra.mxu0 %v10545_v19  ;;  %4799 = vrot.lane.b32.xlu1 %v4797_v42, %s11800_s3  ;;  %v4467_v8 = vsel %vm932_vm0, %v12804_v55, 0.0  ;;  %s10613_s3 = smul.u32 48, %s11923_s15  ;;  %s13753_s15 = sshll.u32 %s12946_s17, 3 }
 0x2e7   : > { %10547 = vmatprep.subr.bf16.mxu0 %v11799_v20  ;;  %v4468_v57 = vrot.slane %v4467_v8, 4  ;;  %v4492_v39 = vsel %vm932_vm0, %v4479_v15, 0.0 }
 0x2e8   : > { %v4493_v28 = vrot.slane %v4492_v39, 4  ;;  %s12870_s28 = scalar_lea.vmem %s13745_s9, %s10613_s3  ;;  %s565_s3 = scalar_lea.vmem %s13763_s1, %s11940_s20 }
 0x2e9   : > { %v4469_v29 = vadd.f32 %v4468_v57, %v4467_v8  ;;  %s11802_s20 = smov 16  }
 0x2ea   : > { %v4494_v45 = vadd.f32 %v4493_v28, %v4492_v39 }
 0x2eb   : > { %v4470_v14 = vrot.slane %v4469_v29, 2 }
 0x2ec   : > { %v4495_v31 = vrot.slane %v4494_v45, 2 }
 0x2ed   : > { %v4471_v17 = vadd.f32 %v4470_v14, %v4469_v29 }
 0x2ee   : > { %v4496_v4 = vadd.f32 %v4495_v31, %v4494_v45 }
 0x2ef   : > { %v4472_v3 = vrot.slane %v4471_v17, 1 }
 0x2f0   : > { %v4497_v38 = vrot.slane %v4496_v4, 1 }
 0x2f1   : > { %v4473_v18 = vadd.f32 %v4472_v3, %v4471_v17  ;;  %v4452_v3 = vld [vmem:[%s12870_s28] ss:$8 sm:$0x7] }
 0x2f2   : > { %v4498_v50 = vadd.f32 %v4497_v38, %v4496_v4  ;;  %v4526_v4 = vrot.slane %v4452_v3, %v12101_v49  ;;  %v4518_v38 = vrot.slane %v4452_v3, %v12098_v48 }
 0x2f3   : > { %v4476_v23 = vmul.f32 0.125, %v4473_v18 }
 0x2f4   : > { %v4501_v36 = vmul.f32 0.125, %v4498_v50 }
 0x2f5   : > { %v4504_v25 = vmul.f32 %v4476_v23, %v4476_v23 }
 0x2f7   : > { %v4507_v63 = vsub.f32 %v4501_v36, %v4504_v25 }
 0x2f9   : > { %v4510_v42 = vadd.f32 1e-05, %v4507_v63 }
 0x2fb   : > { %11655 = vrsqrt.f32 %v4510_v42  ;;  %v4645_v42 = vld [vmem:[%s12810_s29 + $0x110] sm:$0xff] }
 0x305   : > { %v11656_v18 = vpop.eup %11655 }
 0x306   : > { %v4532_v50 = vmul.f32 %v11656_v18, %v4526_v4  ;;  %v4820_v4 = vld [vmem:[%s12870_s28 + $0x20] sm:$0xf] }
 0x308   : > { %v4544_v36 = vrot.slane %v4532_v50, %v12098_v48 }
 0x381   : > { %v12854_v30 = vpop.f32.mrb[12].mxu1 }
 0x382   : > { %v4455_v44 = vrot.slane %v12854_v30, 4  ;;  %v4477_v41 = vmul.f32 %v12854_v30, %v12854_v30  ;;  %v12859_v40 = vpop.f32.mrb[13].mxu1 }
 0x383   : > { %v4461_v0 = vrot.slane %v12859_v40, 4  ;;  %v4478_v7 = vmul.f32 %v12859_v40, %v12859_v40  ;;  %v4169_v62 = vpop.f32.mrb[14].mxu1 }
 0x384   : > { %v4456_v56 = vadd.f32 %v4455_v44, %v12854_v30  ;;  %v4480_v5 = vrot.slane %v4477_v41, 4  ;;  %v4170_v27 = vpop.f32.mrb[15].mxu1  ;;  %v4522_v44 = vrot.slane %v4452_v3, %v12106_v52  ;;  %v4817_v3 = vld [vmem:[%s12870_s28 + $0x8] sm:$0xf0] }
 0x385   : > { %v4462_v58 = vadd.f32 %v4461_v0, %v12859_v40  ;;  %v4486_v16 = vrot.slane %v4478_v7, 4  ;;  %v4859_v18 = vrot.slane %v4817_v3, 4  ;;  %v11182_v3 = vld [vmem:[%s12078_s18 + $0x218] ss:$52 sps:$4 sm:$0xff]  }
 0x386   : > { %v4457_v2 = vrot.slane %v4456_v56, 2  ;;  %v4481_v10 = vadd.f32 %v4480_v5, %v4477_v41  ;;  %v4550_v5 = vmul.f32 %v4532_v50, %v4476_v23  ;;  %v4547_v23 = vmul.f32 %v4544_v36, %v12804_v55  ;;  %v4800_v36 = vpop.permute.xlu1 %4799 }
 0x387   : > { %v4463_v35 = vrot.slane %v4462_v58, 2  ;;  %v4487_v9 = vadd.f32 %v4486_v16, %v4478_v7 }
 0x388   : > { %v4458_v32 = vadd.f32 %v4457_v2, %v4456_v56  ;;  %v4482_v33 = vrot.slane %v4481_v10, 2  ;;  %v4568_v16 = vrot.slane %v4550_v5, %v12235_v60 }
 0x389   : > { %v4464_v26 = vadd.f32 %v4463_v35, %v4462_v58  ;;  %v4488_v6 = vrot.slane %v4487_v9, 2  ;;  %v9706_v35 = vld [vmem:[%s12870_s28 + $0x1] ss:$8 sm:$0x7] }
 0x38a   : > { %v4459_v46 = vrot.slane %v4458_v32, 1  ;;  %v4483_v13 = vadd.f32 %v4482_v33, %v4481_v10 }
 0x38b   : > { %v4465_v22 = vrot.slane %v4464_v26, 1  ;;  %v4489_v47 = vadd.f32 %v4488_v6, %v4487_v9 }
 0x38c   : > { %v4460_v37 = vadd.f32 %v4459_v46, %v4458_v32  ;;  %v4484_v1 = vrot.slane %v4483_v13, 1 }
 0x38d   : > { %v4466_v34 = vadd.f32 %v4465_v22, %v4464_v26  ;;  %v4490_v12 = vrot.slane %v4489_v47, 1  ;;  %v4603_v22 = vpop.permute.xlu0 %4602 }
 0x38e   : > { %v4474_v24 = vmul.f32 0.125, %v4460_v37  ;;  %v4485_v19 = vadd.f32 %v4484_v1, %v4483_v13 }
 0x38f   : > { %v4475_v8 = vmul.f32 0.125, %v4466_v34  ;;  %v4491_v15 = vadd.f32 %v4490_v12, %v4489_v47  ;;  %v4643_v34 = vld [vmem:[%s12810_s29 + $0x100] sm:$0xff]  ;;  %v4644_v12 = vld [vmem:[%s12810_s29 + $0x108] sm:$0xff] }
 0x390   : > { %v4499_v57 = vmul.f32 0.125, %v4485_v19  ;;  %v4502_v39 = vmul.f32 %v4474_v24, %v4474_v24 }
 0x391   : > { %v4500_v29 = vmul.f32 0.125, %v4491_v15  ;;  %v4503_v28 = vmul.f32 %v4475_v8, %v4475_v8 }
 0x392   : > { %v4505_v14 = vsub.f32 %v4499_v57, %v4502_v39  ;;  %v4647_v57 = vld [vmem:[%s12810_s29 + $0x120] sm:$0xff]  ;;  %v4648_v39 = vld [vmem:[%s12810_s29 + $0x128] sm:$0xff] }
 0x393   : > { %v4506_v45 = vsub.f32 %v4500_v29, %v4503_v28  ;;  %v10554_v29 = vpack.c.bf16 %v4648_v39, %v4647_v57  ;;  %v4649_v28 = vld [vmem:[%s12810_s29 + $0x130] sm:$0xff]  ;;  %v11175_v57 = vld [vmem:[%s12078_s18 + $0x1a4] ss:$52 sps:$4 sm:$0xff]  }
 0x394   : > { %v4508_v17 = vadd.f32 1e-05, %v4505_v14  ;;  %v4650_v14 = vld [vmem:[%s12810_s29 + $0x138] sm:$0xff]  ;;  %v11178_v39 = vld [vmem:[%s12078_s18 + $0x1b4] ss:$52 sps:$4 sm:$0xff]  }
 0x395   : > { %v4509_v31 = vadd.f32 1e-05, %v4506_v45  ;;  %v10557_v45 = vpack.c.bf16 %v4650_v14, %v4649_v28  ;;  %v11176_v28 = vld [vmem:[%s12078_s18 + $0x1b0] ss:$52 sps:$4 sm:$0xff]  }
 0x396   : > { %11657 = vrsqrt.f32 %v4508_v17 }
 0x397   : > { %11659 = vrsqrt.f32 %v4509_v31 }
 0x3a0   : > { %v11658_v41 = vpop.eup %11657 }
 0x3a1   : > { %v11660_v0 = vpop.eup %11659  ;;  %v4530_v7 = vmul.f32 %v11658_v41, %v4518_v38  ;;  %v4860_v38 = vrot.slane %v4820_v4, 4  ;;  %v4819_v41 = vld [vmem:[%s12870_s28 + $0x18] sm:$0xf]  ;;  %v11187_v4 = vld [vmem:[%s12078_s18 + $0x274] ss:$52 sps:$4 sm:$0xff]  }
 0x3a2   : > { %v4531_v62 = vmul.f32 %v11660_v0, %v4522_v44  ;;  %v4816_v44 = vld [vmem:[%s12870_s28] sm:$0xf0]  ;;  %v4857_v0 = vrot.slane %v4819_v41, 4 }
 0x3a3   : > { %v4548_v56 = vmul.f32 %v4530_v7, %v4474_v24  ;;  %v4536_v25 = vrot.slane %v4530_v7, %v12098_v48  ;;  %v4856_v50 = vrot.slane %v4816_v44, 4  ;;  %v4861_v7 = vsel %vm4855_vm4, %v4859_v18, %v4860_v38  ;;  %v11190_v18 = vld [vmem:[%s12078_s18 + $0x284] ss:$52 sps:$4 sm:$0xff]   ;;  %v11188_v44 = vld [vmem:[%s12078_s18 + $0x280] ss:$52 sps:$4 sm:$0xff]  }
 0x3a4   : > { %v4549_v27 = vmul.f32 %v4531_v62, %v4475_v8  ;;  %v4540_v9 = vrot.slane %v4531_v62, %v12098_v48  ;;  %v4646_v8 = vld [vmem:[%s12810_s29 + $0x118] sm:$0xff]  ;;  %v11185_v38 = vld [vmem:[%s12078_s18 + $0x270] ss:$52 sps:$4 sm:$0xff]   ;;  %s12964_s29 = scalar_lea.vmem [#allocation2], %s13753_s15 }
 0x3a5   : > { %v4545_v26 = vmul.f32 %v4536_v25, %v12854_v30  ;;  %v10551_v15 = vpack.c.bf16 %v4646_v8, %v4645_v42  ;;  %v11172_v42 = vld [vmem:[%s12078_s18 + $0x14c] ss:$52 sps:$4 sm:$0xff]  }
 0x3a6   : > { %v4554_v58 = vcombine.low %v4548_v56, %v4549_v27  ;;  %v4546_v6 = vmul.f32 %v4540_v9, %v12859_v40  ;;  %v10548_v40 = vpack.c.bf16 %v4644_v12, %v4643_v34  ;;  %v11152_v9 = vld [vmem:[%s12078_s18 + $0x10] ss:$52 sps:$4 sm:$0xff]   ;;  %v11155_v34 = vld [vmem:[%s12078_s18 + $0x68] ss:$52 sps:$4 sm:$0xff]   ;;  %v11158_v12 = vld [vmem:[%s12078_s18 + $0x78] ss:$52 sps:$4 sm:$0xff]  }
 0x3a7   : > { %v11167_v8 = vld [vmem:[%s12078_s18 + $0x138] ss:$52 sps:$4 sm:$0xff]  }
 0x3a8   : > { %v4561_v2 = vrot.slane %v4554_v58, %v12235_v60 }
 0x3aa   : > { %v4569_v10 = vcombine.low %v4561_v2, %v4568_v16 }
 0x3ac   : > { %v4576_v32 = vrot.slane %v4569_v10, %v12235_v60 }
 0x3ae   : > { %v4578_v33 = vsub.f32 %v9706_v35, %v4576_v32  ;;  %v11154_v32 = vld [vmem:[%s12078_s18 + $0x14] ss:$52 sps:$4 sm:$0xff]  }
 0x3af   : > { %6938 = vmatprep.subr.bf16.mxu1 %v11154_v32  ;;  %v11217_v32 = vld [vmem:[%s12078_s18 + $0x47c] ss:$52 sps:$4 sm:$0xff]  }
 0x3b0   : > { %v4587_v46 = vrot.slane %v4578_v33, %v12106_v52  ;;  %v4583_v13 = vrot.slane %v4578_v33, %v12098_v48  ;;  %v4591_v63 = vrot.slane %v4578_v33, %v12101_v49  ;;  %v4818_v33 = vld [vmem:[%s12870_s28 + $0x10] sm:$0xf0]  ;;  %6939 = vmatpush1.bf16.msra.mxu1 %v11152_v9 }
 0x3b1   : > { %v11212_v9 = vld [vmem:[%s12078_s18 + $0x420] ss:$52 sps:$4 sm:$0xff]  }
 0x3b2   : > { %v4596_v47 = vadd.f32 %v4587_v46, %v4546_v6  ;;  %v4595_v37 = vadd.f32 %v4583_v13, %v4545_v26  ;;  %v4597_v1 = vadd.f32 %v4591_v63, %v4547_v23  ;;  %v4821_v23 = vld [vmem:[%s12870_s28 + $0x28] sm:$0xf]  ;;  %v4862_v26 = vrot.slane %v4818_v33, 4  ;;  %v11220_v33 = vld [vmem:[%s12078_s18 + $0x48c] ss:$52 sps:$4 sm:$0xff]  }
 0x3b3   : > { %v4863_v6 = vrot.slane %v4821_v23, 4  ;;  %v11215_v23 = vld [vmem:[%s12078_s18 + $0x478] ss:$52 sps:$4 sm:$0xff]  }
 0x3b4   : > { %v4605_v55 = vmul.f32 %v4603_v22, %v4595_v37  ;;  %v4606_v30 = vmul.f32 %v4603_v22, %v4596_v47  ;;  %vm4599_vm15 = vcmp.gt.f32.partialorder %v4596_v47, 0.0  ;;  %vm4598_vm2 = vcmp.gt.f32.partialorder %v4595_v37, 0.0 }
 0x3b5   : > { %v4607_v17 = vmul.f32 %v4603_v22, %v4597_v1  ;;  %vm4600_vm3 = vcmp.gt.f32.partialorder %v4597_v1, 0.0  ;;  %v4864_v63 = vsel %vm4855_vm4, %v4862_v26, %v4863_v6  ;;  %v11151_v22 = vld [vmem:[%s12078_s18 + $0x4] ss:$52 sps:$4 sm:$0xff]   ;;  %v11218_v26 = vld [vmem:[%s12078_s18 + $0x488] ss:$52 sps:$4 sm:$0xff]  }
 0x3b6   : > { %v4609_v24 = vsel %vm4599_vm15, %v4596_v47, %v4606_v30  ;;  %v4608_v19 = vsel %vm4598_vm2, %v4595_v37, %v4605_v55  ;;  %v11149_v47 = vld [vmem:[%s12078_s18] ss:$52 sps:$4 sm:$0xff]   ;;  %v11166_v30 = vld [vmem:[%s12078_s18 + $0xe4] ss:$52 sps:$4 sm:$0xff]  }
 0x3b7   : > { %4719 = vmatprep.mubr.f32.mxu0 %v4609_v24  ;;  %v4610_v31 = vsel %vm4600_vm3, %v4597_v1, %v4607_v17  ;;  %v11157_v37 = vld [vmem:[%s12078_s18 + $0x6c] ss:$52 sps:$4 sm:$0xff]   ;;  %v11160_v1 = vld [vmem:[%s12078_s18 + $0x7c] ss:$52 sps:$4 sm:$0xff]   ;;  %v11163_v55 = vld [vmem:[%s12078_s18 + $0xd4] ss:$52 sps:$4 sm:$0xff]  }
 0x3b8   : > { %4720 = vmatmul.mubr.f32.vlgmr.msra.gmra.mrb[44].mxu0 %v4608_v19  ;;  %6940 = vmatprep.subr.bf16.mxu1 %v11160_v1  ;;  %v11164_v24 = vld [vmem:[%s12078_s18 + $0xe0] ss:$52 sps:$4 sm:$0xff]   ;;  %v11169_v19 = vld [vmem:[%s12078_s18 + $0x13c] ss:$52 sps:$4 sm:$0xff]   ;;  %v11223_v6 = vld [vmem:[%s12078_s18 + $0x4e4] ss:$52 sps:$4 sm:$0xff]  }
 0x3b9   : > { %10549 = vmatpush3.bf16.msra.mxu0 %v10548_v40  ;;  %10483 = vmatprep.mubr.msk.f32.mxu0 %vm11796_vm1, %v13751_v54  ;;  %v11161_v40 = vld [vmem:[%s12078_s18 + $0xd0] ss:$52 sps:$4 sm:$0xff]   ;;  %v11230_v1 = vld [vmem:[%s12078_s18 + $0x558] ss:$52 sps:$4 sm:$0xff]  }
 0x3ba   : > { %10550 = vmatprep.subr.bf16.mxu0 %v11799_v20  ;;  %6941 = vmatpush1.bf16.msra.mxu1 %v11158_v12  ;;  %v11184_v17 = vld [vmem:[%s12078_s18 + $0x21c] ss:$52 sps:$4 sm:$0xff]  }
 0x3bb   : > { %6942 = vmatprep.subr.bf16.mxu1 %v11166_v30  ;;  %v11233_v12 = vld [vmem:[%s12078_s18 + $0x5b0] ss:$52 sps:$4 sm:$0xff]  }
 0x3bc   : > { %v11238_v30 = vld [vmem:[%s12078_s18 + $0x5c4] ss:$52 sps:$4 sm:$0xff]  }
 0x3bd   : > { %10552 = vmatpush3.bf16.msra.mxu0 %v10551_v15  ;;  %v11170_v15 = vld [vmem:[%s12078_s18 + $0x148] ss:$52 sps:$4 sm:$0xff]  }
 0x3be   : > { %10553 = vmatprep.subr.bf16.mxu0 %v11799_v20  ;;  %6943 = vmatpush1.bf16.msra.mxu1 %v11164_v24  ;;  %v11244_v24 = vld [vmem:[%s12078_s18 + $0x62c] ss:$52 sps:$4 sm:$0xff]  }
 0x3bf   : > { %6944 = vmatprep.subr.bf16.mxu1 %v11172_v42  ;;  %v11242_v42 = vld [vmem:[%s12078_s18 + $0x628] ss:$52 sps:$4 sm:$0xff]  }
 0x3c1   : > { %10555 = vmatpush3.bf16.msra.mxu0 %v10554_v29  ;;  %v11173_v29 = vld [vmem:[%s12078_s18 + $0x1a0] ss:$52 sps:$4 sm:$0xff]  }
 0x3c2   : > { %10556 = vmatprep.subr.bf16.mxu0 %v11799_v20  ;;  %v4858_v20 = vsel %vm4855_vm4, %v4856_v50, %v4857_v0  ;;  %6945 = vmatpush1.bf16.msra.mxu1 %v11170_v15  ;;  %v11193_v0 = vld [vmem:[%s12078_s18 + $0x2dc] ss:$52 sps:$4 sm:$0xff]   ;;  %v11250_v15 = vld [vmem:[%s12078_s18 + $0x694] ss:$52 sps:$4 sm:$0xff]  }
 0x3c3   : > { %6946 = vmatprep.subr.bf16.mxu1 %v11178_v39 }
 0x3c5   : > { %10558 = vmatpush3.bf16.msra.mxu0 %v10557_v45  ;;  %v11181_v45 = vld [vmem:[%s12078_s18 + $0x20c] ss:$52 sps:$4 sm:$0xff]  }
 0x3c6   : > { %4871 = vmatprep.subr.mxu0 %v4861_v7  ;;  %6947 = vmatpush1.bf16.msra.mxu1 %v11176_v28  ;;  %v11196_v7 = vld [vmem:[%s12078_s18 + $0x2ec] ss:$52 sps:$4 sm:$0xff]  }
 0x3c7   : > { %6948 = vmatprep.subr.bf16.mxu1 %v11184_v17 }
 0x3c8   : > { %10484 = vmatmul.mubr.msk.f32.vlgmr.msra.gmra.mrb[46].mxu0 %vm932_vm0, %v4610_v31  ;;  %v11179_v31 = vld [vmem:[%s12078_s18 + $0x208] ss:$52 sps:$4 sm:$0xff]  }
 0x3c9   : > { %4935 = vmatprep.mubr.f32.mxu0 %v13751_v54  ;;  %4872 = vmatpush1.msra.mxu0 %v4858_v20  ;;  %v11191_v20 = vld [vmem:[%s12078_s18 + $0x2d8] ss:$52 sps:$4 sm:$0xff]  }
 0x3ca   : > { %10486 = vmatprep.subr.mxu0 %v13751_v54  ;;  %6949 = vmatpush1.bf16.msra.mxu1 %v11182_v3 }
 0x3cb   : > { %6950 = vmatprep.subr.bf16.mxu1 %v11190_v18 }
 0x3ce   : > { %6951 = vmatpush1.bf16.msra.mxu1 %v11188_v44 }
 0x3cf   : > { %6952 = vmatprep.subr.bf16.mxu1 %v11196_v7 }
 0x48b   : > { %v10265_v62 = vpop.f32.mrb[44].mxu0 }
 0x48c   : > { %v10266_v56 = vpop.f32.mrb[45].mxu0 }
 0x48d   : > { %v10267_v5 = vadd.f32 %v10266_v56, %v10265_v62  ;;  %v11194_v62 = vld [vmem:[%s12078_s18 + $0x2e8] ss:$52 sps:$4 sm:$0xff]   ;;  %v11199_v56 = vld [vmem:[%s12078_s18 + $0x344] ss:$52 sps:$4 sm:$0xff]  }
 0x48e   : > { %6953 = vmatpush1.bf16.msra.mxu1 %v11194_v62 }
 0x48f   : > { %v4722_v27 = vadd.f32 %v12782_v61, %v10267_v5  ;;  %v4824_v61 = vld [vmem:[%s565_s3] sm:$0xff]  ;;  %v11202_v5 = vld [vmem:[%s12078_s18 + $0x354] ss:$52 sps:$4 sm:$0xff]  }
 0x490   : > { %6954 = vmatprep.subr.bf16.mxu1 %v11202_v5 }
 0x49b   : > { %v4791_v58 = vpop.f32.mrb[46].mxu0 }
 0x49c   : > { %v12912_v16 = vadd.f32 %v4791_v58, %v4722_v27  ;;  %v10485_v2 = vpop.f32.mrb[47].mxu0  ;;  %v11197_v27 = vld [vmem:[%s12078_s18 + $0x340] ss:$52 sps:$4 sm:$0xff]   ;;  %v11200_v58 = vld [vmem:[%s12078_s18 + $0x350] ss:$52 sps:$4 sm:$0xff]  }
 0x49d   : > { %6955 = vmatpush1.bf16.msra.mxu1 %v11200_v58  ;;  %v11208_v2 = vld [vmem:[%s12078_s18 + $0x3bc] ss:$52 sps:$4 sm:$0xff]  }
 0x49e   : > { %v4795_v10 = vmul.f32 1.442695, %v12912_v16  ;;  %6956 = vmatprep.subr.bf16.mxu1 %v11208_v2 }
 0x4a0   : > { %11661 = vpow2.f32 %v4795_v10  ;;  %v11203_v10 = vld [vmem:[%s12078_s18 + $0x3a8] ss:$52 sps:$4 sm:$0xff]  }
 0x4aa   : > { %v11662_v25 = vpop.eup %11661 }
 0x4ab   : > { %v4802_v35 = vmul.f32 %v11662_v25, %v4800_v36  ;;  %v11206_v36 = vld [vmem:[%s12078_s18 + $0x3b8] ss:$52 sps:$4 sm:$0xff]   ;;  %v11211_v25 = vld [vmem:[%s12078_s18 + $0x414] ss:$52 sps:$4 sm:$0xff]  }
 0x4ac   : > { %6957 = vmatpush1.bf16.msra.mxu1 %v11206_v36 }
 0x4ad   : > { %4804 = vrot.lane.b32.xlu1 %v4802_v35, %s11801_s0  ;;  %v11214_v35 = vld [vmem:[%s12078_s18 + $0x424] ss:$52 sps:$4 sm:$0xff]   ;;  %s9104_s0 = sshll.u32 %s12964_s29, 4  ;;  %s9105_s0 = int_to_ptr.vmem [resolvable:$true] %s9104_s0 }
 0x4ae   : > { %6958 = vmatprep.subr.bf16.mxu1 %v11214_v35 }
 0x4b0   : > { %6959 = vmatpush1.bf16.msra.mxu1 %v11212_v9 }
 0x4b1   : > { %4827 = vperm.xlu1 %10671, %v4824_v61   ;;  %v11209_v61 = vld [vmem:[%s12078_s18 + $0x410] ss:$52 sps:$4 sm:$0xff]   ;;  %6960 = vmatprep.subr.bf16.mxu1 %v11220_v33 }
 0x4b4   : > { %6961 = vmatpush1.bf16.msra.mxu1 %v11218_v26 }
 0x51f   : > { %v4805_v46 = vpop.permute.xlu1 %4804 }
 0x520   : > { %v4807_v13 = vadd.f32 %v4805_v46, %v12912_v16  ;;  %v11226_v46 = vld [vmem:[%s12078_s18 + $0x4f4] ss:$52 sps:$4 sm:$0xff]  }
 0x521   : > { %6962 = vmatprep.subr.bf16.mxu1 %v11226_v46 }
 0x522   : > { %4809 = vrot.lane.b32.xlu1 %v4807_v13, %s11802_s20  ;;  %9709 = vmatmul.mubr.msk.f32.vlgmr.msra.gmra.mrb[48].mxu0 %vm4868_vm5, %v4807_v13  ;;  %s9086_s20 = scalar_lea.sflag [#allocation3], %s12946_s17 }
 0x523   : > { %10487 = vmatpush3.msra.mxu0 %v4864_v63  ;;  %10488 = vmatprep.mubr.msk.f32.mxu0 %vm11796_vm1, %v13751_v54  ;;  %v11224_v63 = vld [vmem:[%s12078_s18 + $0x4f0] ss:$52 sps:$4 sm:$0xff]  }
 0x524   : > { %6774 = vmatprep.subr.bf16.mxu0 %v11151_v22  ;;  %6963 = vmatpush1.bf16.msra.mxu1 %v11224_v63  ;;  %v11229_v22 = vld [vmem:[%s12078_s18 + $0x54c] ss:$52 sps:$4 sm:$0xff]  }
 0x526   : > { %10489 = vmatmul.mubr.msk.f32.vlgmr.msra.gmra.mrb[50].mxu0 %vm4868_vm5, %v4807_v13  ;;  %v11221_v13 = vld [vmem:[%s12078_s18 + $0x4e0] ss:$52 sps:$4 sm:$0xff]  }
 0x527   : > { %6775 = vmatpush1.bf16.msra.mxu0 %v11149_v47  ;;  %v11232_v47 = vld [vmem:[%s12078_s18 + $0x55c] ss:$52 sps:$4 sm:$0xff]  }
 0x528   : > { %6776 = vmatprep.subr.bf16.mxu0 %v11157_v37  ;;  %v11227_v37 = vld [vmem:[%s12078_s18 + $0x548] ss:$52 sps:$4 sm:$0xff]   ;;  %6964 = vmatprep.subr.bf16.mxu1 %v11232_v47 }
 0x529   : > { %6965 = vmatpush1.bf16.msra.mxu1 %v11230_v1 }
 0x52a   : > { %6966 = vmatprep.subr.bf16.mxu1 %v11238_v30 }
 0x52b   : > { %6777 = vmatpush1.bf16.msra.mxu0 %v11155_v34  ;;  %v11235_v34 = vld [vmem:[%s12078_s18 + $0x5b4] ss:$52 sps:$4 sm:$0xff]  }
 0x52c   : > { %6778 = vmatprep.subr.bf16.mxu0 %v11163_v55  ;;  %v11236_v55 = vld [vmem:[%s12078_s18 + $0x5c0] ss:$52 sps:$4 sm:$0xff]  }
 0x52d   : > { %6967 = vmatpush1.bf16.msra.mxu1 %v11236_v55 }
 0x52e   : > { %6968 = vmatprep.subr.bf16.mxu1 %v11244_v24 }
 0x52f   : > { %6779 = vmatpush1.bf16.msra.mxu0 %v11161_v40  ;;  %v11241_v40 = vld [vmem:[%s12078_s18 + $0x61c] ss:$52 sps:$4 sm:$0xff]  }
 0x530   : > { %6780 = vmatprep.subr.bf16.mxu0 %v11169_v19  ;;  %v12948_v14 = vpop.permute.xlu1 %4827  ;;  %v11239_v19 = vld [vmem:[%s12078_s18 + $0x618] ss:$52 sps:$4 sm:$0xff]  }
 0x531   : > { %6969 = vmatpush1.bf16.msra.mxu1 %v11242_v42 }
 0x532   : > { %6979 = vmatprep.subr.bf16.mxu1 %v11250_v15 }
 0x533   : > { %6781 = vmatpush1.bf16.msra.mxu0 %v11167_v8  ;;  %v11247_v8 = vld [vmem:[%s12078_s18 + $0x684] ss:$52 sps:$4 sm:$0xff]  }
 0x534   : > { %6782 = vmatprep.subr.bf16.mxu0 %v11175_v57  ;;  %v9708_v57 = vld [vmem:[%s12870_s28 + $0x1c] ss:$8 sm:$0x7] }
 0x535   : > { %v4834_v39 = vrot.slane %v9708_v57, %v12098_v48 }
 0x537   : > { %6783 = vmatpush1.bf16.msra.mxu0 %v11173_v29  ;;  %v4838_v29 = vrot.slane %v9708_v57, %v12106_v52  ;;  %v4846_v28 = vmul.f32 %v4834_v39, %v12948_v14 }
 0x538   : > { %6784 = vmatprep.subr.bf16.mxu0 %v11181_v45  ;;  %v4842_v45 = vrot.slane %v9708_v57, %v12101_v49 }
 0x539   : > { %v4847_v17 = vmul.f32 %v4838_v29, %v12948_v14 }
 0x53a   : > { %v4848_v18 = vmul.f32 %v4842_v45, %v12948_v14 }
 0x53b   : > { %6785 = vmatpush1.bf16.msra.mxu0 %v11179_v31 }
 0x53c   : > { %6786 = vmatprep.subr.bf16.mxu0 %v11187_v4 }
 0x53f   : > { %6787 = vmatpush1.bf16.msra.mxu0 %v11185_v38 }
 0x540   : > { %6788 = vmatprep.subr.bf16.mxu0 %v11193_v0 }
 0x543   : > { %6789 = vmatpush1.bf16.msra.mxu0 %v11191_v20 }
 0x544   : > { %6790 = vmatprep.subr.bf16.mxu0 %v11199_v56 }
 0x547   : > { %6791 = vmatpush1.bf16.msra.mxu0 %v11197_v27 }
 0x594   : > { %v4810_v41 = vpop.permute.xlu1 %4809 }
 0x595   : > { %v4813_v50 = vsel %vm4812_vm6, %v12912_v16, %v4810_v41  ;;  %v11205_v16 = vld [vmem:[%s12078_s18 + $0x3ac] ss:$52 sps:$4 sm:$0xff]  }
 0x596   : > { %4815 = vst.msk [vmem:[%s12964_s29] sm:$0xff] %vm4814_vm7, %v4813_v50  ;;  %6792 = vmatprep.subr.bf16.mxu0 %v11205_v16 }
 0x597   : > { %6793 = vmatpush1.bf16.msra.mxu0 %v11203_v10 }
 0x598   : > { %6794 = vmatprep.subr.bf16.mxu0 %v11211_v25 }
 0x59b   : > { %6795 = vmatpush1.bf16.msra.mxu0 %v11209_v61 }
 0x59c   : > { %6796 = vmatprep.subr.bf16.mxu0 %v11217_v32 }
 0x59f   : > { %6797 = vmatpush1.bf16.msra.mxu0 %v11215_v23 }
 0x5a0   : > { %6798 = vmatprep.subr.bf16.mxu0 %v11223_v6 }
 0x5a3   : > { %6799 = vmatpush1.bf16.msra.mxu0 %v11221_v13 }
 0x5a4   : > { %6800 = vmatprep.subr.bf16.mxu0 %v11229_v22 }
 0x5a7   : > { %6801 = vmatpush1.bf16.msra.mxu0 %v11227_v37 }
 0x5a8   : > { %6802 = vmatprep.subr.bf16.mxu0 %v11235_v34 }
 0x5ab   : > { %6803 = vmatpush1.bf16.msra.mxu0 %v11233_v12 }
 0x5ac   : > { %6804 = vmatprep.subr.bf16.mxu0 %v11241_v40 }
 0x5af   : > { %6805 = vmatpush1.bf16.msra.mxu0 %v11239_v19 }
 0x5b0   : > { %6815 = vmatprep.subr.bf16.mxu0 %v11247_v8 }
 0x5f5   : > { %v4937_v31 = vpop.f32.mrb[48].mxu0 }
 0x5f6   : > { %v13009_v3 = vadd.f32 %v4937_v31, %v4846_v28  ;;  %v4939_v4 = vpop.f32.mrb[49].mxu0 }
 0x5f7   : > { %v13012_v38 = vadd.f32 %v4939_v4, %v4847_v17 }
 0x5f8   : > { %v5016_v44 = vrot.slane %v13009_v3, 4  ;;  %v5038_v41 = vmul.f32 %v13009_v3, %v13009_v3 }
 0x5f9   : > { %v5022_v50 = vrot.slane %v13012_v38, 4  ;;  %v5039_v0 = vmul.f32 %v13012_v38, %v13012_v38  ;;  %v5008_v7 = vpop.f32.mrb[50].mxu0 }
 0x5fa   : > { %v5017_v20 = vadd.f32 %v5016_v44, %v13009_v3  ;;  %v5041_v62 = vrot.slane %v5038_v41, 4  ;;  %v13021_v56 = vadd.f32 %v5008_v7, %v4848_v18  ;;  %v10490_v5 = vpop.f32.mrb[51].mxu0 }
 0x5fb   : > { %v5023_v14 = vadd.f32 %v5022_v50, %v13012_v38  ;;  %v5047_v27 = vrot.slane %v5039_v0, 4 }
 0x5fc   : > { %v5018_v58 = vrot.slane %v5017_v20, 2  ;;  %v5042_v16 = vadd.f32 %v5041_v62, %v5038_v41  ;;  %v5028_v2 = vsel %vm932_vm0, %v13021_v56, 0.0  ;;  %v5040_v10 = vmul.f32 %v13021_v56, %v13021_v56 }
 0x5fd   : > { %v5024_v36 = vrot.slane %v5023_v14, 2  ;;  %v5048_v25 = vadd.f32 %v5047_v27, %v5039_v0  ;;  %v5029_v35 = vrot.slane %v5028_v2, 4 }
 0x5fe   : > { %v5019_v61 = vadd.f32 %v5018_v58, %v5017_v20  ;;  %v5043_v9 = vrot.slane %v5042_v16, 2  ;;  %v5053_v32 = vsel %vm932_vm0, %v5040_v10, 0.0 }
 0x5ff   : > { %v5025_v33 = vadd.f32 %v5024_v36, %v5023_v14  ;;  %v5049_v23 = vrot.slane %v5048_v25, 2  ;;  %v5030_v26 = vadd.f32 %v5029_v35, %v5028_v2  ;;  %v5054_v6 = vrot.slane %v5053_v32, 4  ;;  %v9711_v14 = vld [vmem:[%s12870_s28 + $0x2] ss:$8 sm:$0x7] }
 0x600   : > { %v5020_v46 = vrot.slane %v5019_v61, 1  ;;  %v5044_v13 = vadd.f32 %v5043_v9, %v5042_v16  ;;  %v5079_v27 = vrot.slane %v9711_v14, %v12098_v48  ;;  %v5083_v58 = vrot.slane %v9711_v14, %v12106_v52 }
 0x601   : > { %v5026_v63 = vrot.slane %v5025_v33, 1  ;;  %v5050_v22 = vadd.f32 %v5049_v23, %v5048_v25  ;;  %v5031_v47 = vrot.slane %v5030_v26, 2  ;;  %v5055_v37 = vadd.f32 %v5054_v6, %v5053_v32 }
 0x602   : > { %v5021_v1 = vadd.f32 %v5020_v46, %v5019_v61  ;;  %v5045_v34 = vrot.slane %v5044_v13, 1  ;;  %v5087_v25 = vrot.slane %v9711_v14, %v12101_v49  ;;  %v11271_v14 = vld [vmem:[%s12078_s18 + $0xc] ss:$52 sps:$4 sm:$0xff]  }
 0x603   : > { %v5027_v12 = vadd.f32 %v5026_v63, %v5025_v33  ;;  %v5051_v55 = vrot.slane %v5050_v22, 1  ;;  %v5032_v30 = vadd.f32 %v5031_v47, %v5030_v26  ;;  %v5056_v40 = vrot.slane %v5055_v37, 2 }
 0x604   : > { %v5035_v24 = vmul.f32 0.125, %v5021_v1  ;;  %v5046_v19 = vadd.f32 %v5045_v34, %v5044_v13 }
 0x605   : > { %v5036_v42 = vmul.f32 0.125, %v5027_v12  ;;  %v5052_v8 = vadd.f32 %v5051_v55, %v5050_v22  ;;  %v5033_v15 = vrot.slane %v5032_v30, 1  ;;  %v5057_v57 = vadd.f32 %v5056_v40, %v5055_v37  ;;  %v9712_v22 = vld [vmem:[%s12870_s28 + $0x3] ss:$8 sm:$0x7] }
 0x606   : > { %v5060_v39 = vmul.f32 0.125, %v5046_v19  ;;  %v5063_v29 = vmul.f32 %v5035_v24, %v5035_v24 }
 0x607   : > { %v5061_v28 = vmul.f32 0.125, %v5052_v8  ;;  %v5064_v45 = vmul.f32 %v5036_v42, %v5036_v42  ;;  %v5034_v17 = vadd.f32 %v5033_v15, %v5032_v30  ;;  %v5058_v31 = vrot.slane %v5057_v57, 1 }
 0x608   : > { %v5066_v4 = vsub.f32 %v5060_v39, %v5063_v29  ;;  %v11245_v29 = vld [vmem:[%s12078_s18 + $0x680] ss:$52 sps:$4 sm:$0xff]  }
 0x609   : > { %v5067_v18 = vsub.f32 %v5061_v28, %v5064_v45  ;;  %v5037_v44 = vmul.f32 0.125, %v5034_v17  ;;  %v5059_v41 = vadd.f32 %v5058_v31, %v5057_v57  ;;  %v11248_v28 = vld [vmem:[%s12078_s18 + $0x690] ss:$52 sps:$4 sm:$0xff]   ;;  %v11253_v45 = vld [vmem:[%s12078_s18 + $0x6ec] ss:$52 sps:$4 sm:$0xff]  }
 0x60a   : > { %v5069_v50 = vadd.f32 1e-05, %v5066_v4  ;;  %v11256_v17 = vld [vmem:[%s12078_s18 + $0x6fc] ss:$52 sps:$4 sm:$0xff]   ;;  %v11254_v4 = vld [vmem:[%s12078_s18 + $0x6f8] ss:$52 sps:$4 sm:$0xff]  }
 0x60b   : > { %v5070_v0 = vadd.f32 1e-05, %v5067_v18  ;;  %v5062_v7 = vmul.f32 0.125, %v5059_v41  ;;  %v5065_v20 = vmul.f32 %v5037_v44, %v5037_v44  ;;  %v11251_v31 = vld [vmem:[%s12078_s18 + $0x6e8] ss:$52 sps:$4 sm:$0xff]  }
 0x60c   : > { %11663 = vrsqrt.f32 %v5069_v50  ;;  %v11259_v18 = vld [vmem:[%s12078_s18 + $0x754] ss:$52 sps:$4 sm:$0xff]   ;;  %v11257_v41 = vld [vmem:[%s12078_s18 + $0x750] ss:$52 sps:$4 sm:$0xff]  }
 0x60d   : > { %11665 = vrsqrt.f32 %v5070_v0  ;;  %v5068_v62 = vsub.f32 %v5062_v7, %v5065_v20  ;;  %v11260_v50 = vld [vmem:[%s12078_s18 + $0x760] ss:$52 sps:$4 sm:$0xff]   ;;  %v11265_v0 = vld [vmem:[%s12078_s18 + $0x7bc] ss:$52 sps:$4 sm:$0xff]  }
 0x60e   : > { %v11268_v7 = vld [vmem:[%s12078_s18 + $0x7cc] ss:$52 sps:$4 sm:$0xff]  }
 0x60f   : > { %v5071_v5 = vadd.f32 1e-05, %v5068_v62  ;;  %v11263_v62 = vld [vmem:[%s12078_s18 + $0x7b8] ss:$52 sps:$4 sm:$0xff]  }
 0x611   : > { %11667 = vrsqrt.f32 %v5071_v5  ;;  %v11266_v5 = vld [vmem:[%s12078_s18 + $0x7c8] ss:$52 sps:$4 sm:$0xff]  }
 0x616   : > { %v11664_v16 = vpop.eup %11663 }
 0x617   : > { %v11666_v2 = vpop.eup %11665  ;;  %v5091_v10 = vmul.f32 %v11664_v16, %v5079_v27  ;;  %v11274_v27 = vld [vmem:[%s12078_s18 + $0x24] ss:$52 sps:$4 sm:$0xff]   ;;  %v11269_v16 = vld [vmem:[%s12078_s18 + $0x8] ss:$52 sps:$4 sm:$0xff]  }
 0x618   : > { %v5092_v36 = vmul.f32 %v11666_v2, %v5083_v58 }
 0x619   : > { %v5109_v35 = vmul.f32 %v5091_v10, %v5035_v24  ;;  %v5097_v13 = vrot.slane %v5091_v10, %v12098_v48  ;;  %v11272_v10 = vld [vmem:[%s12078_s18 + $0x20] ss:$52 sps:$4 sm:$0xff]  }
 0x61a   : > { %v5110_v61 = vmul.f32 %v5092_v36, %v5036_v42  ;;  %v5101_v63 = vrot.slane %v5092_v36, %v12098_v48  ;;  %v11277_v36 = vld [vmem:[%s12078_s18 + $0x74] ss:$52 sps:$4 sm:$0xff]  }
 0x61b   : > { %v11668_v9 = vpop.eup %11667  ;;  %v5106_v34 = vmul.f32 %v5097_v13, %v13009_v3  ;;  %v11290_v13 = vld [vmem:[%s12078_s18 + $0x158] ss:$52 sps:$4 sm:$0xff]  }
 0x61c   : > { %v5115_v32 = vcombine.low %v5109_v35, %v5110_v61  ;;  %v5093_v33 = vmul.f32 %v11668_v9, %v5087_v25  ;;  %v5107_v12 = vmul.f32 %v5101_v63, %v13012_v38  ;;  %v11280_v25 = vld [vmem:[%s12078_s18 + $0x8c] ss:$52 sps:$4 sm:$0xff]   ;;  %v11275_v35 = vld [vmem:[%s12078_s18 + $0x70] ss:$52 sps:$4 sm:$0xff]   ;;  %v11278_v61 = vld [vmem:[%s12078_s18 + $0x88] ss:$52 sps:$4 sm:$0xff]  }
 0x61d   : > { %v11283_v9 = vld [vmem:[%s12078_s18 + $0xdc] ss:$52 sps:$4 sm:$0xff]   ;;  %v11295_v63 = vld [vmem:[%s12078_s18 + $0x1ac] ss:$52 sps:$4 sm:$0xff]  }
 0x61e   : > { %v5111_v23 = vmul.f32 %v5093_v33, %v5037_v44  ;;  %v5122_v26 = vrot.slane %v5115_v32, %v12235_v60  ;;  %v5105_v47 = vrot.slane %v5093_v33, %v12098_v48  ;;  %v11262_v44 = vld [vmem:[%s12078_s18 + $0x764] ss:$52 sps:$4 sm:$0xff]   ;;  %v11286_v32 = vld [vmem:[%s12078_s18 + $0xf4] ss:$52 sps:$4 sm:$0xff]  }
 0x61f   : > { %v11281_v33 = vld [vmem:[%s12078_s18 + $0xd8] ss:$52 sps:$4 sm:$0xff]  }
 0x620   : > { %v5129_v6 = vrot.slane %v5111_v23, %v12235_v60  ;;  %v5108_v55 = vmul.f32 %v5105_v47, %v13021_v56  ;;  %v11284_v23 = vld [vmem:[%s12078_s18 + $0xf0] ss:$52 sps:$4 sm:$0xff]   ;;  %v11293_v47 = vld [vmem:[%s12078_s18 + $0x1a8] ss:$52 sps:$4 sm:$0xff]  }
 0x622   : > { %v5130_v46 = vcombine.low %v5122_v26, %v5129_v6  ;;  %v11289_v26 = vld [vmem:[%s12078_s18 + $0x144] ss:$52 sps:$4 sm:$0xff]   ;;  %v11292_v6 = vld [vmem:[%s12078_s18 + $0x15c] ss:$52 sps:$4 sm:$0xff]  }
 0x624   : > { %v5137_v37 = vrot.slane %v5130_v46, %v12235_v60  ;;  %v11287_v46 = vld [vmem:[%s12078_s18 + $0x140] ss:$52 sps:$4 sm:$0xff]  }
 0x626   : > { %v5139_v1 = vsub.f32 %v9712_v22, %v5137_v37  ;;  %v11298_v22 = vld [vmem:[%s12078_s18 + $0x1c4] ss:$52 sps:$4 sm:$0xff]   ;;  %v11296_v37 = vld [vmem:[%s12078_s18 + $0x1c0] ss:$52 sps:$4 sm:$0xff]  }
 0x628   : > { %v5144_v30 = vrot.slane %v5139_v1, %v12098_v48  ;;  %v5148_v40 = vrot.slane %v5139_v1, %v12106_v52  ;;  %v5152_v24 = vrot.slane %v5139_v1, %v12101_v49  ;;  %v11301_v1 = vld [vmem:[%s12078_s18 + $0x214] ss:$52 sps:$4 sm:$0xff]  }
 0x62a   : > { %v5156_v19 = vadd.f32 %v5144_v30, %v5106_v34  ;;  %v5157_v42 = vadd.f32 %v5148_v40, %v5107_v12  ;;  %v5158_v8 = vadd.f32 %v5152_v24, %v5108_v55  ;;  %v11304_v34 = vld [vmem:[%s12078_s18 + $0x22c] ss:$52 sps:$4 sm:$0xff]   ;;  %v11299_v12 = vld [vmem:[%s12078_s18 + $0x210] ss:$52 sps:$4 sm:$0xff]   ;;  %v11302_v55 = vld [vmem:[%s12078_s18 + $0x228] ss:$52 sps:$4 sm:$0xff]  }
 0x62b   : > { %v11307_v30 = vld [vmem:[%s12078_s18 + $0x27c] ss:$52 sps:$4 sm:$0xff]   ;;  %v11310_v40 = vld [vmem:[%s12078_s18 + $0x294] ss:$52 sps:$4 sm:$0xff]   ;;  %v11305_v24 = vld [vmem:[%s12078_s18 + $0x278] ss:$52 sps:$4 sm:$0xff]  }
 0x62c   : > { %vm5159_vm8 = vcmp.gt.f32.partialorder %v5156_v19, 0.0  ;;  %vm5160_vm9 = vcmp.gt.f32.partialorder %v5157_v42, 0.0  ;;  %v5162_v3 = vmul.f32 0.2, %v5156_v19  ;;  %v5163_v38 = vmul.f32 0.2, %v5157_v42 }
 0x62d   : > { %v5164_v20 = vmul.f32 0.2, %v5158_v8  ;;  %vm5161_vm10 = vcmp.gt.f32.partialorder %v5158_v8, 0.0 }
 0x62e   : > { %v5165_v15 = vsel %vm5159_vm8, %v5156_v19, %v5162_v3  ;;  %v5166_v56 = vsel %vm5160_vm9, %v5157_v42, %v5163_v38  ;;  %v11308_v19 = vld [vmem:[%s12078_s18 + $0x290] ss:$52 sps:$4 sm:$0xff]   ;;  %v11311_v3 = vld [vmem:[%s12078_s18 + $0x2e0] ss:$52 sps:$4 sm:$0xff]   ;;  %v11314_v38 = vld [vmem:[%s12078_s18 + $0x2f8] ss:$52 sps:$4 sm:$0xff]  }
 0x62f   : > { %v13046_v57 = vpack.c.bf16 %v5165_v15, %v5165_v15  ;;  %v13048_v39 = vpack.c.bf16 %v5166_v56, %v5166_v56  ;;  %v5167_v58 = vsel %vm5161_vm10, %v5158_v8, %v5164_v20  ;;  %v11313_v42 = vld [vmem:[%s12078_s18 + $0x2e4] ss:$52 sps:$4 sm:$0xff]   ;;  %v11316_v8 = vld [vmem:[%s12078_s18 + $0x2fc] ss:$52 sps:$4 sm:$0xff]   ;;  %v11319_v15 = vld [vmem:[%s12078_s18 + $0x34c] ss:$52 sps:$4 sm:$0xff]  }
 0x630   : > { %v13073_v2 = vpack.c.bf16 %v5167_v58, %v5167_v58  ;;  %v11322_v56 = vld [vmem:[%s12078_s18 + $0x364] ss:$52 sps:$4 sm:$0xff]   ;;  %v11335_v20 = vld [vmem:[%s12078_s18 + $0x480] ss:$52 sps:$4 sm:$0xff]  }
 0x631   : > { %6806 = vmatprep.mubr.bf16.mxu0 %v13048_v39  ;;  %6970 = vmatprep.mubr.bf16.mxu1 %v13048_v39  ;;  %v11344_v58 = vld [vmem:[%s12078_s18 + $0x500] ss:$52 sps:$4 sm:$0xff]  }
 0x632   : > { %6807 = vmatmul.mubr.bf16.vlgmr.msra.gmra.mrb[52].mxu0 %v13046_v57  ;;  %6971 = vmatmul.mubr.bf16.vlgmr.msra.gmra.mrb[16].mxu1 %v13046_v57 }
 0x633   : > { %6816 = vmatpush1.bf16.msra.mxu0 %v11245_v29  ;;  %6980 = vmatpush1.bf16.msra.mxu1 %v11248_v28  ;;  %v11317_v29 = vld [vmem:[%s12078_s18 + $0x348] ss:$52 sps:$4 sm:$0xff]   ;;  %v11320_v28 = vld [vmem:[%s12078_s18 + $0x360] ss:$52 sps:$4 sm:$0xff]  }
 0x634   : > { %6817 = vmatprep.subr.bf16.mxu0 %v11253_v45  ;;  %6981 = vmatprep.subr.bf16.mxu1 %v11256_v17  ;;  %v11325_v45 = vld [vmem:[%s12078_s18 + $0x3b4] ss:$52 sps:$4 sm:$0xff]   ;;  %v11328_v17 = vld [vmem:[%s12078_s18 + $0x3cc] ss:$52 sps:$4 sm:$0xff]  }
 0x635   : > { %6847 = vmatprep.mubr.bf16.mxu0 %v13762_v51  ;;  %7011 = vmatprep.mubr.bf16.mxu1 %v13762_v51 }
 0x637   : > { %6818 = vmatpush1.bf16.msra.mxu0 %v11251_v31  ;;  %6982 = vmatpush1.bf16.msra.mxu1 %v11254_v4  ;;  %v11323_v31 = vld [vmem:[%s12078_s18 + $0x3b0] ss:$52 sps:$4 sm:$0xff]   ;;  %v11326_v4 = vld [vmem:[%s12078_s18 + $0x3c8] ss:$52 sps:$4 sm:$0xff]  }
 0x638   : > { %6819 = vmatprep.subr.bf16.mxu0 %v11259_v18  ;;  %6983 = vmatprep.subr.bf16.mxu1 %v11262_v44  ;;  %v11331_v18 = vld [vmem:[%s12078_s18 + $0x41c] ss:$52 sps:$4 sm:$0xff]   ;;  %v11334_v44 = vld [vmem:[%s12078_s18 + $0x434] ss:$52 sps:$4 sm:$0xff]  }
 0x63b   : > { %6820 = vmatpush1.bf16.msra.mxu0 %v11257_v41  ;;  %6984 = vmatpush1.bf16.msra.mxu1 %v11260_v50  ;;  %v11329_v41 = vld [vmem:[%s12078_s18 + $0x418] ss:$52 sps:$4 sm:$0xff]   ;;  %v11332_v50 = vld [vmem:[%s12078_s18 + $0x430] ss:$52 sps:$4 sm:$0xff]  }
 0x63c   : > { %6821 = vmatprep.subr.bf16.mxu0 %v11265_v0  ;;  %6985 = vmatprep.subr.bf16.mxu1 %v11268_v7  ;;  %v11337_v0 = vld [vmem:[%s12078_s18 + $0x484] ss:$52 sps:$4 sm:$0xff]   ;;  %v11340_v7 = vld [vmem:[%s12078_s18 + $0x49c] ss:$52 sps:$4 sm:$0xff]  }
 0x63f   : > { %6822 = vmatpush1.bf16.msra.mxu0 %v11263_v62  ;;  %6986 = vmatpush1.bf16.msra.mxu1 %v11266_v5  ;;  %v11338_v62 = vld [vmem:[%s12078_s18 + $0x498] ss:$52 sps:$4 sm:$0xff]  }
 0x640   : > { %6856 = vmatprep.subr.bf16.mxu0 %v11271_v14  ;;  %7102 = vmatprep.subr.bf16.mxu1 %v11274_v27  ;;  %v11343_v5 = vld [vmem:[%s12078_s18 + $0x4ec] ss:$52 sps:$4 sm:$0xff]   ;;  %v11346_v14 = vld [vmem:[%s12078_s18 + $0x504] ss:$52 sps:$4 sm:$0xff]   ;;  %v11341_v27 = vld [vmem:[%s12078_s18 + $0x4e8] ss:$52 sps:$4 sm:$0xff]  }
 0x642   : > { %9973 = vmatmul.mubr.msk.bf16.vlgmr.msra.gmra.mrb[52].mxu0 %vm932_vm0, %v13073_v2  ;;  %9975 = vmatmul.mubr.msk.bf16.vlgmr.msra.gmra.mrb[16].mxu1 %vm932_vm0, %v13073_v2 }
 0x643   : > { %6857 = vmatpush1.bf16.msra.mxu0 %v11269_v16  ;;  %6888 = vmatprep.mubr.bf16.mxu0 %v13048_v39  ;;  %v11349_v16 = vld [vmem:[%s12078_s18 + $0x554] ss:$52 sps:$4 sm:$0xff]  }
 0x644   : > { %7103 = vmatpush1.bf16.msra.mxu1 %v11272_v10  ;;  %7134 = vmatprep.mubr.bf16.mxu1 %v13048_v39  ;;  %v11352_v10 = vld [vmem:[%s12078_s18 + $0x56c] ss:$52 sps:$4 sm:$0xff]  }
 0x645   : > { %6858 = vmatprep.subr.bf16.mxu0 %v11277_v36  ;;  %7104 = vmatprep.subr.bf16.mxu1 %v11280_v25  ;;  %v11347_v36 = vld [vmem:[%s12078_s18 + $0x550] ss:$52 sps:$4 sm:$0xff]   ;;  %v11350_v25 = vld [vmem:[%s12078_s18 + $0x568] ss:$52 sps:$4 sm:$0xff]  }
 0x647   : > { %6859 = vmatpush1.bf16.msra.mxu0 %v11275_v35  ;;  %v11355_v35 = vld [vmem:[%s12078_s18 + $0x5bc] ss:$52 sps:$4 sm:$0xff]  }
 0x648   : > { %7105 = vmatpush1.bf16.msra.mxu1 %v11278_v61  ;;  %6860 = vmatprep.subr.bf16.mxu0 %v11283_v9  ;;  %v11358_v61 = vld [vmem:[%s12078_s18 + $0x5d4] ss:$52 sps:$4 sm:$0xff]   ;;  %v11353_v9 = vld [vmem:[%s12078_s18 + $0x5b8] ss:$52 sps:$4 sm:$0xff]  }
 0x649   : > { %7106 = vmatprep.subr.bf16.mxu1 %v11286_v32  ;;  %v11356_v32 = vld [vmem:[%s12078_s18 + $0x5d0] ss:$52 sps:$4 sm:$0xff]  }
 0x64b   : > { %6861 = vmatpush1.bf16.msra.mxu0 %v11281_v33  ;;  %v11361_v33 = vld [vmem:[%s12078_s18 + $0x624] ss:$52 sps:$4 sm:$0xff]  }
 0x64c   : > { %7107 = vmatpush1.bf16.msra.mxu1 %v11284_v23  ;;  %6862 = vmatprep.subr.bf16.mxu0 %v11289_v26  ;;  %v11364_v23 = vld [vmem:[%s12078_s18 + $0x63c] ss:$52 sps:$4 sm:$0xff]   ;;  %v11359_v26 = vld [vmem:[%s12078_s18 + $0x620] ss:$52 sps:$4 sm:$0xff]  }
 0x64d   : > { %7108 = vmatprep.subr.bf16.mxu1 %v11292_v6  ;;  %v11362_v6 = vld [vmem:[%s12078_s18 + $0x638] ss:$52 sps:$4 sm:$0xff]  }
 0x64f   : > { %6863 = vmatpush1.bf16.msra.mxu0 %v11287_v46  ;;  %v11367_v46 = vld [vmem:[%s12078_s18 + $0x68c] ss:$52 sps:$4 sm:$0xff]  }
 0x650   : > { %7109 = vmatpush1.bf16.msra.mxu1 %v11290_v13  ;;  %6864 = vmatprep.subr.bf16.mxu0 %v11295_v63  ;;  %v11370_v13 = vld [vmem:[%s12078_s18 + $0x6a4] ss:$52 sps:$4 sm:$0xff]   ;;  %v11365_v63 = vld [vmem:[%s12078_s18 + $0x688] ss:$52 sps:$4 sm:$0xff]  }
 0x651   : > { %7110 = vmatprep.subr.bf16.mxu1 %v11298_v22  ;;  %v11368_v22 = vld [vmem:[%s12078_s18 + $0x6a0] ss:$52 sps:$4 sm:$0xff]  }
 0x653   : > { %6865 = vmatpush1.bf16.msra.mxu0 %v11293_v47  ;;  %v11373_v47 = vld [vmem:[%s12078_s18 + $0x6f4] ss:$52 sps:$4 sm:$0xff]  }
 0x654   : > { %7111 = vmatpush1.bf16.msra.mxu1 %v11296_v37  ;;  %6866 = vmatprep.subr.bf16.mxu0 %v11301_v1  ;;  %v11376_v37 = vld [vmem:[%s12078_s18 + $0x70c] ss:$52 sps:$4 sm:$0xff]   ;;  %v11371_v1 = vld [vmem:[%s12078_s18 + $0x6f0] ss:$52 sps:$4 sm:$0xff]  }
 0x655   : > { %7112 = vmatprep.subr.bf16.mxu1 %v11304_v34  ;;  %v11374_v34 = vld [vmem:[%s12078_s18 + $0x708] ss:$52 sps:$4 sm:$0xff]  }
 0x657   : > { %6867 = vmatpush1.bf16.msra.mxu0 %v11299_v12  ;;  %v11379_v12 = vld [vmem:[%s12078_s18 + $0x75c] ss:$52 sps:$4 sm:$0xff]  }
 0x658   : > { %7113 = vmatpush1.bf16.msra.mxu1 %v11302_v55  ;;  %6868 = vmatprep.subr.bf16.mxu0 %v11307_v30  ;;  %v11382_v55 = vld [vmem:[%s12078_s18 + $0x774] ss:$52 sps:$4 sm:$0xff]   ;;  %v11377_v30 = vld [vmem:[%s12078_s18 + $0x758] ss:$52 sps:$4 sm:$0xff]  }
 0x659   : > { %7114 = vmatprep.subr.bf16.mxu1 %v11310_v40  ;;  %v11380_v40 = vld [vmem:[%s12078_s18 + $0x770] ss:$52 sps:$4 sm:$0xff]  }
 0x65b   : > { %6869 = vmatpush1.bf16.msra.mxu0 %v11305_v24  ;;  %v11385_v24 = vld [vmem:[%s12078_s18 + $0x7c4] ss:$52 sps:$4 sm:$0xff]  }
 0x65c   : > { %7115 = vmatpush1.bf16.msra.mxu1 %v11308_v19  ;;  %6870 = vmatprep.subr.bf16.mxu0 %v11313_v42  ;;  %v11388_v19 = vld [vmem:[%s12078_s18 + $0x7dc] ss:$52 sps:$4 sm:$0xff]   ;;  %v11383_v42 = vld [vmem:[%s12078_s18 + $0x7c0] ss:$52 sps:$4 sm:$0xff]  }
 0x65d   : > { %7116 = vmatprep.subr.bf16.mxu1 %v11316_v8  ;;  %v11386_v8 = vld [vmem:[%s12078_s18 + $0x7d8] ss:$52 sps:$4 sm:$0xff]  }
 0x65f   : > { %6871 = vmatpush1.bf16.msra.mxu0 %v11311_v3  ;;  %v11391_v3 = vld [vmem:[%s12078_s18 + $0x1c] ss:$52 sps:$4 sm:$0xff]  }
 0x660   : > { %7117 = vmatpush1.bf16.msra.mxu1 %v11314_v38  ;;  %6872 = vmatprep.subr.bf16.mxu0 %v11319_v15  ;;  %v11392_v38 = vld [vmem:[%s12078_s18 + $0x370] ss:$52 sps:$4 sm:$0xff]   ;;  %v11389_v15 = vld [vmem:[%s12078_s18 + $0x18] ss:$52 sps:$4 sm:$0xff]  }
 0x661   : > { %7118 = vmatprep.subr.bf16.mxu1 %v11322_v56  ;;  %v11393_v56 = vld [vmem:[%s12078_s18 + $0x30] ss:$52 sps:$4 sm:$0xff]  }
 0x663   : > { %6873 = vmatpush1.bf16.msra.mxu0 %v11317_v29  ;;  %v11396_v29 = vld [vmem:[%s12078_s18 + $0x84] ss:$52 sps:$4 sm:$0xff]  }
 0x664   : > { %7119 = vmatpush1.bf16.msra.mxu1 %v11320_v28  ;;  %6874 = vmatprep.subr.bf16.mxu0 %v11325_v45  ;;  %v11397_v28 = vld [vmem:[%s12078_s18 + $0x3d8] ss:$52 sps:$4 sm:$0xff]   ;;  %v11394_v45 = vld [vmem:[%s12078_s18 + $0x80] ss:$52 sps:$4 sm:$0xff]  }
 0x665   : > { %7120 = vmatprep.subr.bf16.mxu1 %v11328_v17  ;;  %v11398_v17 = vld [vmem:[%s12078_s18 + $0x98] ss:$52 sps:$4 sm:$0xff]  }
 0x667   : > { %6875 = vmatpush1.bf16.msra.mxu0 %v11323_v31  ;;  %v11401_v31 = vld [vmem:[%s12078_s18 + $0xec] ss:$52 sps:$4 sm:$0xff]  }
 0x668   : > { %7121 = vmatpush1.bf16.msra.mxu1 %v11326_v4  ;;  %6876 = vmatprep.subr.bf16.mxu0 %v11331_v18  ;;  %v11402_v4 = vld [vmem:[%s12078_s18 + $0x440] ss:$52 sps:$4 sm:$0xff]   ;;  %v11399_v18 = vld [vmem:[%s12078_s18 + $0xe8] ss:$52 sps:$4 sm:$0xff]  }
 0x669   : > { %7122 = vmatprep.subr.bf16.mxu1 %v11334_v44  ;;  %v11403_v44 = vld [vmem:[%s12078_s18 + $0x100] ss:$52 sps:$4 sm:$0xff]  }
 0x66b   : > { %6877 = vmatpush1.bf16.msra.mxu0 %v11329_v41  ;;  %v11406_v41 = vld [vmem:[%s12078_s18 + $0x154] ss:$52 sps:$4 sm:$0xff]  }
 0x66c   : > { %7123 = vmatpush1.bf16.msra.mxu1 %v11332_v50  ;;  %6878 = vmatprep.subr.bf16.mxu0 %v11337_v0  ;;  %v11407_v50 = vld [vmem:[%s12078_s18 + $0x4a8] ss:$52 sps:$4 sm:$0xff]   ;;  %v11404_v0 = vld [vmem:[%s12078_s18 + $0x150] ss:$52 sps:$4 sm:$0xff]  }
 0x66d   : > { %7124 = vmatprep.subr.bf16.mxu1 %v11340_v7  ;;  %v11408_v7 = vld [vmem:[%s12078_s18 + $0x168] ss:$52 sps:$4 sm:$0xff]  }
 0x66f   : > { %6879 = vmatpush1.bf16.msra.mxu0 %v11335_v20  ;;  %v11411_v20 = vld [vmem:[%s12078_s18 + $0x1bc] ss:$52 sps:$4 sm:$0xff]  }
 0x670   : > { %7125 = vmatpush1.bf16.msra.mxu1 %v11338_v62  ;;  %6880 = vmatprep.subr.bf16.mxu0 %v11343_v5  ;;  %v11412_v62 = vld [vmem:[%s12078_s18 + $0x510] ss:$52 sps:$4 sm:$0xff]   ;;  %v11409_v5 = vld [vmem:[%s12078_s18 + $0x1b8] ss:$52 sps:$4 sm:$0xff]  }
 0x671   : > { %7126 = vmatprep.subr.bf16.mxu1 %v11346_v14  ;;  %v11413_v14 = vld [vmem:[%s12078_s18 + $0x1d0] ss:$52 sps:$4 sm:$0xff]  }
 0x673   : > { %6881 = vmatpush1.bf16.msra.mxu0 %v11341_v27  ;;  %v11416_v27 = vld [vmem:[%s12078_s18 + $0x224] ss:$52 sps:$4 sm:$0xff]  }
 0x674   : > { %7127 = vmatpush1.bf16.msra.mxu1 %v11344_v58  ;;  %6882 = vmatprep.subr.bf16.mxu0 %v11349_v16  ;;  %v11417_v58 = vld [vmem:[%s12078_s18 + $0x578] ss:$52 sps:$4 sm:$0xff]   ;;  %v11414_v16 = vld [vmem:[%s12078_s18 + $0x220] ss:$52 sps:$4 sm:$0xff]  }
 0x675   : > { %7128 = vmatprep.subr.bf16.mxu1 %v11352_v10  ;;  %v11418_v10 = vld [vmem:[%s12078_s18 + $0x238] ss:$52 sps:$4 sm:$0xff]  }
 0x677   : > { %6883 = vmatpush1.bf16.msra.mxu0 %v11347_v36  ;;  %v11421_v36 = vld [vmem:[%s12078_s18 + $0x28c] ss:$52 sps:$4 sm:$0xff]  }
 0x678   : > { %7129 = vmatpush1.bf16.msra.mxu1 %v11350_v25  ;;  %6884 = vmatprep.subr.bf16.mxu0 %v11355_v35  ;;  %v11422_v25 = vld [vmem:[%s12078_s18 + $0x5e0] ss:$52 sps:$4 sm:$0xff]   ;;  %v11419_v35 = vld [vmem:[%s12078_s18 + $0x288] ss:$52 sps:$4 sm:$0xff]  }
 0x679   : > { %7130 = vmatprep.subr.bf16.mxu1 %v11358_v61  ;;  %v11423_v61 = vld [vmem:[%s12078_s18 + $0x2a0] ss:$52 sps:$4 sm:$0xff]  }
 0x67b   : > { %6885 = vmatpush1.bf16.msra.mxu0 %v11353_v9  ;;  %v11426_v9 = vld [vmem:[%s12078_s18 + $0x2f4] ss:$52 sps:$4 sm:$0xff]  }
 0x67c   : > { %7131 = vmatpush1.bf16.msra.mxu1 %v11356_v32  ;;  %6886 = vmatprep.subr.bf16.mxu0 %v11361_v33  ;;  %v11427_v32 = vld [vmem:[%s12078_s18 + $0x648] ss:$52 sps:$4 sm:$0xff]   ;;  %v11424_v33 = vld [vmem:[%s12078_s18 + $0x2f0] ss:$52 sps:$4 sm:$0xff]  }
 0x67d   : > { %7132 = vmatprep.subr.bf16.mxu1 %v11364_v23  ;;  %v11428_v23 = vld [vmem:[%s12078_s18 + $0x308] ss:$52 sps:$4 sm:$0xff]  }
 0x67f   : > { %6887 = vmatpush1.bf16.msra.mxu0 %v11359_v26  ;;  %v11431_v26 = vld [vmem:[%s12078_s18 + $0x35c] ss:$52 sps:$4 sm:$0xff]  }
 0x680   : > { %7133 = vmatpush1.bf16.msra.mxu1 %v11362_v6  ;;  %6897 = vmatprep.subr.bf16.mxu0 %v11367_v46  ;;  %v11429_v6 = vld [vmem:[%s12078_s18 + $0x358] ss:$52 sps:$4 sm:$0xff]   ;;  %v11432_v46 = vld [vmem:[%s12078_s18 + $0x6b0] ss:$52 sps:$4 sm:$0xff]  }
 0x681   : > { %7143 = vmatprep.subr.bf16.mxu1 %v11370_v13  ;;  %v11435_v13 = vld [vmem:[%s12078_s18 + $0x3c4] ss:$52 sps:$4 sm:$0xff]  }
 0x682   : > { %6889 = vmatmul.mubr.bf16.vlgmr.msra.gmra.mrb[56].mxu0 %v13046_v57 }
 0x683   : > { %7135 = vmatmul.mubr.bf16.vlgmr.msra.gmra.mrb[20].mxu1 %v13046_v57  ;;  %6898 = vmatpush1.bf16.msra.mxu0 %v11365_v63  ;;  %v11433_v63 = vld [vmem:[%s12078_s18 + $0x3c0] ss:$52 sps:$4 sm:$0xff]  }
 0x684   : > { %7144 = vmatpush1.bf16.msra.mxu1 %v11368_v22  ;;  %6899 = vmatprep.subr.bf16.mxu0 %v11373_v47  ;;  %v11436_v22 = vld [vmem:[%s12078_s18 + $0x718] ss:$52 sps:$4 sm:$0xff]  }
 0x685   : > { %7145 = vmatprep.subr.bf16.mxu1 %v11376_v37  ;;  %6929 = vmatprep.mubr.bf16.mxu0 %v13762_v51  ;;  %v11439_v47 = vld [vmem:[%s12078_s18 + $0x42c] ss:$52 sps:$4 sm:$0xff]   ;;  %v11437_v37 = vld [vmem:[%s12078_s18 + $0x428] ss:$52 sps:$4 sm:$0xff]  }
 0x686   : > { %7175 = vmatprep.mubr.bf16.mxu1 %v13762_v51 }
 0x687   : > { %6900 = vmatpush1.bf16.msra.mxu0 %v11371_v1  ;;  %v11440_v1 = vld [vmem:[%s12078_s18 + $0x780] ss:$52 sps:$4 sm:$0xff]  }
 0x688   : > { %7146 = vmatpush1.bf16.msra.mxu1 %v11374_v34  ;;  %6901 = vmatprep.subr.bf16.mxu0 %v11379_v12  ;;  %v11443_v34 = vld [vmem:[%s12078_s18 + $0x494] ss:$52 sps:$4 sm:$0xff]   ;;  %v11441_v12 = vld [vmem:[%s12078_s18 + $0x490] ss:$52 sps:$4 sm:$0xff]  }
 0x689   : > { %7147 = vmatprep.subr.bf16.mxu1 %v11382_v55  ;;  %v11444_v55 = vld [vmem:[%s12078_s18 + $0x7e8] ss:$52 sps:$4 sm:$0xff]  }
 0x68b   : > { %6902 = vmatpush1.bf16.msra.mxu0 %v11377_v30  ;;  %v11447_v30 = vld [vmem:[%s12078_s18 + $0x4fc] ss:$52 sps:$4 sm:$0xff]  }
 0x68c   : > { %7148 = vmatpush1.bf16.msra.mxu1 %v11380_v40  ;;  %6903 = vmatprep.subr.bf16.mxu0 %v11385_v24  ;;  %v11445_v40 = vld [vmem:[%s12078_s18 + $0x4f8] ss:$52 sps:$4 sm:$0xff]  }
 0x68d   : > { %7149 = vmatprep.subr.bf16.mxu1 %v11388_v19  ;;  %v11450_v24 = vld [vmem:[%s12078_s18 + $0x564] ss:$52 sps:$4 sm:$0xff]   ;;  %v11448_v19 = vld [vmem:[%s12078_s18 + $0x560] ss:$52 sps:$4 sm:$0xff]  }
 0x68f   : > { %6904 = vmatpush1.bf16.msra.mxu0 %v11383_v42  ;;  %v11453_v42 = vld [vmem:[%s12078_s18 + $0x5cc] ss:$52 sps:$4 sm:$0xff]  }
 0x690   : > { %7150 = vmatpush1.bf16.msra.mxu1 %v11386_v8  ;;  %7020 = vmatprep.subr.bf16.mxu0 %v11391_v3  ;;  %v11451_v8 = vld [vmem:[%s12078_s18 + $0x5c8] ss:$52 sps:$4 sm:$0xff]  }
 0x691   : > { %10279 = vmatprep.subr.bf16.mxu1 %v11392_v38  ;;  %v11456_v3 = vld [vmem:[%s12078_s18 + $0x634] ss:$52 sps:$4 sm:$0xff]   ;;  %v11454_v38 = vld [vmem:[%s12078_s18 + $0x630] ss:$52 sps:$4 sm:$0xff]  }
 0x692   : > { %9974 = vmatmul.mubr.msk.bf16.vlgmr.msra.gmra.mrb[56].mxu0 %vm932_vm0, %v13073_v2 }
 0x693   : > { %9977 = vmatmul.mubr.msk.bf16.vlgmr.msra.gmra.mrb[20].mxu1 %vm932_vm0, %v13073_v2  ;;  %7021 = vmatpush1.bf16.msra.mxu0 %v11389_v15  ;;  %v11459_v15 = vld [vmem:[%s12078_s18 + $0x69c] ss:$52 sps:$4 sm:$0xff]  }
 0x694   : > { %7052 = vmatprep.mubr.bf16.mxu0 %v13048_v39  ;;  %10280 = vmatpush3.bf16.msra.mxu1 %v11393_v56  ;;  %v11457_v56 = vld [vmem:[%s12078_s18 + $0x698] ss:$52 sps:$4 sm:$0xff]  }
 0x695   : > { %7298 = vmatprep.mubr.bf16.mxu1 %v13048_v39  ;;  %7022 = vmatprep.subr.bf16.mxu0 %v11396_v29  ;;  %v11462_v29 = vld [vmem:[%s12078_s18 + $0x704] ss:$52 sps:$4 sm:$0xff]  }
 0x696   : > { %10281 = vmatprep.subr.bf16.mxu1 %v11397_v28  ;;  %v11460_v28 = vld [vmem:[%s12078_s18 + $0x700] ss:$52 sps:$4 sm:$0xff]  }
 0x697   : > { %7023 = vmatpush1.bf16.msra.mxu0 %v11394_v45  ;;  %v11465_v45 = vld [vmem:[%s12078_s18 + $0x76c] ss:$52 sps:$4 sm:$0xff]  }
 0x698   : > { %10282 = vmatpush3.bf16.msra.mxu1 %v11398_v17  ;;  %7024 = vmatprep.subr.bf16.mxu0 %v11401_v31  ;;  %v11463_v17 = vld [vmem:[%s12078_s18 + $0x768] ss:$52 sps:$4 sm:$0xff]  }
 0x699   : > { %10283 = vmatprep.subr.bf16.mxu1 %v11402_v4  ;;  %v11468_v31 = vld [vmem:[%s12078_s18 + $0x7d4] ss:$52 sps:$4 sm:$0xff]   ;;  %v11466_v4 = vld [vmem:[%s12078_s18 + $0x7d0] ss:$52 sps:$4 sm:$0xff]  }
 0x69b   : > { %7025 = vmatpush1.bf16.msra.mxu0 %v11399_v18  ;;  %v11471_v18 = vld [vmem:[%s12078_s18 + $0x2c] ss:$52 sps:$4 sm:$0xff]  }
 0x69c   : > { %10284 = vmatpush3.bf16.msra.mxu1 %v11403_v44  ;;  %7026 = vmatprep.subr.bf16.mxu0 %v11406_v41  ;;  %v11469_v44 = vld [vmem:[%s12078_s18 + $0x28] ss:$52 sps:$4 sm:$0xff]  }
 0x69d   : > { %10285 = vmatprep.subr.bf16.mxu1 %v11407_v50  ;;  %v11474_v41 = vld [vmem:[%s12078_s18 + $0x94] ss:$52 sps:$4 sm:$0xff]   ;;  %v11472_v50 = vld [vmem:[%s12078_s18 + $0x90] ss:$52 sps:$4 sm:$0xff]  }
 0x69f   : > { %7027 = vmatpush1.bf16.msra.mxu0 %v11404_v0  ;;  %v11477_v0 = vld [vmem:[%s12078_s18 + $0xfc] ss:$52 sps:$4 sm:$0xff]  }
 0x6a0   : > { %10286 = vmatpush3.bf16.msra.mxu1 %v11408_v7  ;;  %7028 = vmatprep.subr.bf16.mxu0 %v11411_v20  ;;  %v11475_v7 = vld [vmem:[%s12078_s18 + $0xf8] ss:$52 sps:$4 sm:$0xff]  }
 0x6a1   : > { %10287 = vmatprep.subr.bf16.mxu1 %v11412_v62  ;;  %v11480_v20 = vld [vmem:[%s12078_s18 + $0x164] ss:$52 sps:$4 sm:$0xff]   ;;  %v11478_v62 = vld [vmem:[%s12078_s18 + $0x160] ss:$52 sps:$4 sm:$0xff]  }
 0x6a3   : > { %7029 = vmatpush1.bf16.msra.mxu0 %v11409_v5  ;;  %v11483_v5 = vld [vmem:[%s12078_s18 + $0x1cc] ss:$52 sps:$4 sm:$0xff]  }
 0x6a4   : > { %10288 = vmatpush3.bf16.msra.mxu1 %v11413_v14  ;;  %7030 = vmatprep.subr.bf16.mxu0 %v11416_v27  ;;  %v11481_v14 = vld [vmem:[%s12078_s18 + $0x1c8] ss:$52 sps:$4 sm:$0xff]   ;;  %v11484_v27 = vld [vmem:[%s12078_s18 + $0x230] ss:$52 sps:$4 sm:$0xff]  }
 0x6a5   : > { %10289 = vmatprep.subr.bf16.mxu1 %v11417_v58  ;;  %v11489_v58 = vld [vmem:[%s12078_s18 + $0x29c] ss:$52 sps:$4 sm:$0xff]  }
 0x6a7   : > { %7031 = vmatpush1.bf16.msra.mxu0 %v11414_v16  ;;  %v11487_v16 = vld [vmem:[%s12078_s18 + $0x298] ss:$52 sps:$4 sm:$0xff]  }
 0x6a8   : > { %10290 = vmatpush3.bf16.msra.mxu1 %v11418_v10  ;;  %7032 = vmatprep.subr.bf16.mxu0 %v11421_v36  ;;  %v11492_v10 = vld [vmem:[%s12078_s18 + $0x304] ss:$52 sps:$4 sm:$0xff]   ;;  %v11490_v36 = vld [vmem:[%s12078_s18 + $0x300] ss:$52 sps:$4 sm:$0xff]  }
 0x6a9   : > { %10291 = vmatprep.subr.bf16.mxu1 %v11422_v25  ;;  %v11495_v25 = vld [vmem:[%s12078_s18 + $0x36c] ss:$52 sps:$4 sm:$0xff]  }
 0x6ab   : > { %7033 = vmatpush1.bf16.msra.mxu0 %v11419_v35  ;;  %v11493_v35 = vld [vmem:[%s12078_s18 + $0x368] ss:$52 sps:$4 sm:$0xff]  }
 0x6ac   : > { %10292 = vmatpush3.bf16.msra.mxu1 %v11423_v61  ;;  %7034 = vmatprep.subr.bf16.mxu0 %v11426_v9  ;;  %v11498_v61 = vld [vmem:[%s12078_s18 + $0x3d4] ss:$52 sps:$4 sm:$0xff]   ;;  %v11496_v9 = vld [vmem:[%s12078_s18 + $0x3d0] ss:$52 sps:$4 sm:$0xff]  }
 0x6ad   : > { %10293 = vmatprep.subr.bf16.mxu1 %v11427_v32  ;;  %v11501_v32 = vld [vmem:[%s12078_s18 + $0x43c] ss:$52 sps:$4 sm:$0xff]  }
 0x6af   : > { %7035 = vmatpush1.bf16.msra.mxu0 %v11424_v33  ;;  %v11499_v33 = vld [vmem:[%s12078_s18 + $0x438] ss:$52 sps:$4 sm:$0xff]  }
 0x6b0   : > { %10294 = vmatpush3.bf16.msra.mxu1 %v11428_v23  ;;  %7036 = vmatprep.subr.bf16.mxu0 %v11431_v26  ;;  %v11504_v23 = vld [vmem:[%s12078_s18 + $0x4a4] ss:$52 sps:$4 sm:$0xff]   ;;  %v11502_v26 = vld [vmem:[%s12078_s18 + $0x4a0] ss:$52 sps:$4 sm:$0xff]  }
 0x6b1   : > { %10491 = vmatprep.subr.bf16.mxu1 %v13751_v54 }
 0x6b3   : > { %7299 = vmatmul.mubr.bf16.vlgmr.msra.gmra.mrb[24].mxu1 %v13046_v57  ;;  %7037 = vmatpush1.bf16.msra.mxu0 %v11429_v6  ;;  %v11507_v6 = vld [vmem:[%s12078_s18 + $0x50c] ss:$52 sps:$4 sm:$0xff]  }
 0x6b4   : > { %10492 = vmatpush3.bf16.msra.mxu1 %v11432_v46  ;;  %7038 = vmatprep.subr.bf16.mxu0 %v11435_v13  ;;  %v11505_v46 = vld [vmem:[%s12078_s18 + $0x508] ss:$52 sps:$4 sm:$0xff]  }
 0x6b5   : > { %10493 = vmatprep.subr.bf16.mxu1 %v13751_v54  ;;  %10499 = vmatprep.mubr.msk.bf16.mxu1 %vm11796_vm1, %v13751_v54  ;;  %v11510_v13 = vld [vmem:[%s12078_s18 + $0x574] ss:$52 sps:$4 sm:$0xff]  }
 0x6b7   : > { %7039 = vmatpush1.bf16.msra.mxu0 %v11433_v63  ;;  %v11508_v63 = vld [vmem:[%s12078_s18 + $0x570] ss:$52 sps:$4 sm:$0xff]  }
 0x6b8   : > { %10494 = vmatpush3.bf16.msra.mxu1 %v11436_v22  ;;  %7040 = vmatprep.subr.bf16.mxu0 %v11439_v47  ;;  %v11513_v22 = vld [vmem:[%s12078_s18 + $0x5dc] ss:$52 sps:$4 sm:$0xff]  }
 0x6b9   : > { %10495 = vmatprep.subr.bf16.mxu1 %v13751_v54 }
 0x6bb   : > { %7041 = vmatpush1.bf16.msra.mxu0 %v11437_v37 }
 0x6bc   : > { %10496 = vmatpush3.bf16.msra.mxu1 %v11440_v1  ;;  %7042 = vmatprep.subr.bf16.mxu0 %v11443_v34 }
 0x6bd   : > { %10497 = vmatprep.subr.bf16.mxu1 %v13751_v54 }
 0x6bf   : > { %7043 = vmatpush1.bf16.msra.mxu0 %v11441_v12 }
 0x6c0   : > { %10498 = vmatpush3.bf16.msra.mxu1 %v11444_v55  ;;  %7044 = vmatprep.subr.bf16.mxu0 %v11447_v30 }
 0x6c3   : > { %10500 = vmatmul.mubr.msk.bf16.vlgmr.msra.gmra.mrb[28].mxu1 %vm932_vm0, %v13073_v2  ;;  %7045 = vmatpush1.bf16.msra.mxu0 %v11445_v40 }
 0x6c4   : > { %7046 = vmatprep.subr.bf16.mxu0 %v11450_v24 }
 0x6c7   : > { %7047 = vmatpush1.bf16.msra.mxu0 %v11448_v19 }
 0x6c8   : > { %7048 = vmatprep.subr.bf16.mxu0 %v11453_v42 }
 0x6cb   : > { %7049 = vmatpush1.bf16.msra.mxu0 %v11451_v8 }
 0x6cc   : > { %7050 = vmatprep.subr.bf16.mxu0 %v11456_v3 }
 0x6cf   : > { %7051 = vmatpush1.bf16.msra.mxu0 %v11454_v38 }
 0x6d0   : > { %7061 = vmatprep.subr.bf16.mxu0 %v11459_v15  ;;  %v11511_v15 = vld [vmem:[%s12078_s18 + $0x5d8] ss:$52 sps:$4 sm:$0xff]  }
 0x6d2   : > { %7053 = vmatmul.mubr.bf16.vlgmr.msra.gmra.mrb[60].mxu0 %v13046_v57 }
 0x6d3   : > { %7062 = vmatpush1.bf16.msra.mxu0 %v11457_v56  ;;  %7093 = vmatprep.mubr.bf16.mxu0 %v13762_v51 }
 0x6d4   : > { %7063 = vmatprep.subr.bf16.mxu0 %v11462_v29 }
 0x6d7   : > { %7064 = vmatpush1.bf16.msra.mxu0 %v11460_v28 }
 0x6d8   : > { %7065 = vmatprep.subr.bf16.mxu0 %v11465_v45 }
 0x6db   : > { %7066 = vmatpush1.bf16.msra.mxu0 %v11463_v17 }
 0x6dc   : > { %7067 = vmatprep.subr.bf16.mxu0 %v11468_v31 }
 0x6df   : > { %7068 = vmatpush1.bf16.msra.mxu0 %v11466_v4  ;;  %v11516_v4 = vld [vmem:[%s12078_s18 + $0x644] ss:$52 sps:$4 sm:$0xff]  }
 0x6e0   : > { %7184 = vmatprep.subr.bf16.mxu0 %v11471_v18 }
 0x6e2   : > { %9976 = vmatmul.mubr.msk.bf16.vlgmr.msra.gmra.mrb[60].mxu0 %vm932_vm0, %v13073_v2 }
 0x6e3   : > { %7185 = vmatpush1.bf16.msra.mxu0 %v11469_v44  ;;  %7216 = vmatprep.mubr.bf16.mxu0 %v13048_v39  ;;  %v11486_v39 = vld [vmem:[%s12078_s18 + $0x234] ss:$52 sps:$4 sm:$0xff]  }
 0x6e4   : > { %7186 = vmatprep.subr.bf16.mxu0 %v11474_v41 }
 0x6e7   : > { %7187 = vmatpush1.bf16.msra.mxu0 %v11472_v50 }
 0x6e8   : > { %7188 = vmatprep.subr.bf16.mxu0 %v11477_v0 }
 0x6eb   : > { %7189 = vmatpush1.bf16.msra.mxu0 %v11475_v7 }
 0x6ec   : > { %7190 = vmatprep.subr.bf16.mxu0 %v11480_v20 }
 0x6ef   : > { %7191 = vmatpush1.bf16.msra.mxu0 %v11478_v62 }
 0x6f0   : > { %7192 = vmatprep.subr.bf16.mxu0 %v11483_v5 }
 0x6f3   : > { %7193 = vmatpush1.bf16.msra.mxu0 %v11481_v14 }
 0x6f4   : > { %7194 = vmatprep.subr.bf16.mxu0 %v11486_v39 }
 0x6f7   : > { %7195 = vmatpush1.bf16.msra.mxu0 %v11484_v27 }
 0x6f8   : > { %7196 = vmatprep.subr.bf16.mxu0 %v11489_v58  ;;  %v11514_v58 = vld [vmem:[%s12078_s18 + $0x640] ss:$52 sps:$4 sm:$0xff]  }
 0x6fb   : > { %7197 = vmatpush1.bf16.msra.mxu0 %v11487_v16 }
 0x6fc   : > { %7198 = vmatprep.subr.bf16.mxu0 %v11492_v10 }
 0x6ff   : > { %7199 = vmatpush1.bf16.msra.mxu0 %v11490_v36 }
 0x700   : > { %7200 = vmatprep.subr.bf16.mxu0 %v11495_v25 }
 0x703   : > { %7201 = vmatpush1.bf16.msra.mxu0 %v11493_v35  ;;  %v11519_v35 = vld [vmem:[%s12078_s18 + $0x6ac] ss:$52 sps:$4 sm:$0xff]  }
 0x704   : > { %7202 = vmatprep.subr.bf16.mxu0 %v11498_v61 }
 0x707   : > { %7203 = vmatpush1.bf16.msra.mxu0 %v11496_v9 }
 0x708   : > { %7204 = vmatprep.subr.bf16.mxu0 %v11501_v32 }
 0x70b   : > { %7205 = vmatpush1.bf16.msra.mxu0 %v11499_v33 }
 0x70c   : > { %7206 = vmatprep.subr.bf16.mxu0 %v11504_v23 }
 0x70f   : > { %7207 = vmatpush1.bf16.msra.mxu0 %v11502_v26 }
 0x710   : > { %7208 = vmatprep.subr.bf16.mxu0 %v11507_v6 }
 0x713   : > { %7209 = vmatpush1.bf16.msra.mxu0 %v11505_v46 }
 0x714   : > { %7210 = vmatprep.subr.bf16.mxu0 %v11510_v13 }
 0x715   : > { %v13271_v47 = vpop.f32.mrb[52].mxu0  ;;  %v13273_v37 = vpop.f32.mrb[16].mxu1 }
 0x716   : > { %v7354_v1 = vrot.slane %v13271_v47, 4  ;;  %v7446_v34 = vmul.f32 %v13271_v47, %v13271_v47  ;;  %v7378_v12 = vrot.slane %v13273_v37, 4  ;;  %v7450_v55 = vmul.f32 %v13273_v37, %v13273_v37  ;;  %v13281_v30 = vpop.f32.mrb[53].mxu0  ;;  %v13283_v40 = vpop.f32.mrb[17].mxu1 }
 0x717   : > { %v7360_v24 = vrot.slane %v13281_v30, 4  ;;  %v7447_v19 = vmul.f32 %v13281_v30, %v13281_v30  ;;  %v7384_v42 = vrot.slane %v13283_v40, 4  ;;  %v7451_v8 = vmul.f32 %v13283_v40, %v13283_v40  ;;  %v6853_v3 = vpop.f32.mrb[54].mxu0  ;;  %v7017_v38 = vpop.f32.mrb[18].mxu1  ;;  %7211 = vmatpush1.bf16.msra.mxu0 %v11508_v63 }
 0x718   : > { %v7355_v56 = vadd.f32 %v7354_v1, %v13271_v47  ;;  %v7459_v29 = vrot.slane %v7446_v34, 4  ;;  %v7379_v28 = vadd.f32 %v7378_v12, %v13273_v37  ;;  %v7483_v45 = vrot.slane %v7450_v55, 4  ;;  %v6854_v17 = vpop.f32.mrb[55].mxu0  ;;  %v7018_v31 = vpop.f32.mrb[19].mxu1  ;;  %7212 = vmatprep.subr.bf16.mxu0 %v11513_v22 }
 0x719   : > { %v7361_v18 = vadd.f32 %v7360_v24, %v13281_v30  ;;  %v7465_v44 = vrot.slane %v7447_v19, 4  ;;  %v7385_v41 = vadd.f32 %v7384_v42, %v13283_v40  ;;  %v7489_v50 = vrot.slane %v7451_v8, 4  ;;  %v11522_v42 = vld [vmem:[%s12078_s18 + $0x714] ss:$52 sps:$4 sm:$0xff]  }
 0x71a   : > { %v7356_v0 = vrot.slane %v7355_v56, 2  ;;  %v7460_v7 = vadd.f32 %v7459_v29, %v7446_v34  ;;  %v7380_v20 = vrot.slane %v7379_v28, 2  ;;  %v7484_v62 = vadd.f32 %v7483_v45, %v7450_v55  ;;  %v11517_v34 = vld [vmem:[%s12078_s18 + $0x6a8] ss:$52 sps:$4 sm:$0xff]  }
 0x71b   : > { %v7362_v5 = vrot.slane %v7361_v18, 2  ;;  %v7466_v14 = vadd.f32 %v7465_v44, %v7447_v19  ;;  %v7386_v39 = vrot.slane %v7385_v41, 2  ;;  %v7490_v27 = vadd.f32 %v7489_v50, %v7451_v8  ;;  %7213 = vmatpush1.bf16.msra.mxu0 %v11511_v15  ;;  %v11520_v44 = vld [vmem:[%s12078_s18 + $0x710] ss:$52 sps:$4 sm:$0xff]  }
 0x71c   : > { %v7357_v16 = vadd.f32 %v7356_v0, %v7355_v56  ;;  %v7461_v10 = vrot.slane %v7460_v7, 2  ;;  %v7381_v36 = vadd.f32 %v7380_v20, %v7379_v28  ;;  %v7485_v25 = vrot.slane %v7484_v62, 2  ;;  %7214 = vmatprep.subr.bf16.mxu0 %v11516_v4  ;;  %v11525_v20 = vld [vmem:[%s12078_s18 + $0x77c] ss:$52 sps:$4 sm:$0xff]  }
 0x71d   : > { %v7363_v61 = vadd.f32 %v7362_v5, %v7361_v18  ;;  %v7467_v9 = vrot.slane %v7466_v14, 2  ;;  %v7387_v32 = vadd.f32 %v7386_v39, %v7385_v41  ;;  %v7491_v33 = vrot.slane %v7490_v27, 2 }
 0x71e   : > { %v7358_v23 = vrot.slane %v7357_v16, 1  ;;  %v7462_v26 = vadd.f32 %v7461_v10, %v7460_v7  ;;  %v7382_v6 = vrot.slane %v7381_v36, 1  ;;  %v7486_v46 = vadd.f32 %v7485_v25, %v7484_v62  ;;  %v11528_v25 = vld [vmem:[%s12078_s18 + $0x7e4] ss:$52 sps:$4 sm:$0xff]  }
 0x71f   : > { %v7364_v13 = vrot.slane %v7363_v61, 1  ;;  %v7468_v63 = vadd.f32 %v7467_v9, %v7466_v14  ;;  %v7388_v22 = vrot.slane %v7387_v32, 1  ;;  %v7492_v1 = vadd.f32 %v7491_v33, %v7490_v27  ;;  %7215 = vmatpush1.bf16.msra.mxu0 %v11514_v58  ;;  %v11526_v9 = vld [vmem:[%s12078_s18 + $0x7e0] ss:$52 sps:$4 sm:$0xff]  }
 0x720   : > { %v7359_v12 = vadd.f32 %v7358_v23, %v7357_v16  ;;  %v7463_v55 = vrot.slane %v7462_v26, 1  ;;  %v7383_v24 = vadd.f32 %v7382_v6, %v7381_v36  ;;  %v7487_v19 = vrot.slane %v7486_v46, 1  ;;  %7225 = vmatprep.subr.bf16.mxu0 %v11519_v35 }
 0x721   : > { %v7365_v8 = vadd.f32 %v7364_v13, %v7363_v61  ;;  %v7469_v3 = vrot.slane %v7468_v63, 1  ;;  %v7389_v38 = vadd.f32 %v7388_v22, %v7387_v32  ;;  %v7493_v15 = vrot.slane %v7492_v1, 1  ;;  %v13309_v32 = vld [vmem:[%s12092_s16 + $0x2] ss:$4 sm:$0xff] }
 0x722   : > { %v7433_v56 = vmul.f32 0.125, %v7359_v12  ;;  %v7464_v29 = vadd.f32 %v7463_v55, %v7462_v26  ;;  %v7437_v28 = vmul.f32 0.125, %v7383_v24  ;;  %v7488_v45 = vadd.f32 %v7487_v19, %v7486_v46  ;;  %7217 = vmatmul.mubr.bf16.vlgmr.msra.gmra.mrb[64].mxu0 %v13046_v57 }
 0x723   : > { %v7434_v17 = vmul.f32 0.125, %v7365_v8  ;;  %v7470_v31 = vadd.f32 %v7469_v3, %v7468_v63  ;;  %v7438_v4 = vmul.f32 0.125, %v7389_v38  ;;  %v7494_v18 = vadd.f32 %v7493_v15, %v7492_v1  ;;  %7226 = vmatpush1.bf16.msra.mxu0 %v11517_v34  ;;  %7257 = vmatprep.mubr.bf16.mxu0 %v13762_v51  ;;  %v11523_v51 = vld [vmem:[%s12078_s18 + $0x778] ss:$52 sps:$4 sm:$0xff]   ;;  %v11529_v38 = vld [vmem:[%s12500_s19 + $0x40] sm:$0xff]   ;;  %s11803_s18 = smov 112  }
 0x724   : > { %v7538_v41 = vmul.f32 0.125, %v7464_v29  ;;  %v7551_v50 = vmul.f32 %v7433_v56, %v7433_v56  ;;  %v7542_v0 = vmul.f32 0.125, %v7488_v45  ;;  %v7555_v7 = vmul.f32 %v7437_v28, %v7437_v28  ;;  %7227 = vmatprep.subr.bf16.mxu0 %v11522_v42  ;;  %v11530_v15 = vld [vmem:[%s12500_s19 + $0xc0] sm:$0xff]   ;;  %v11534_v45 = vld [vmem:[%s12500_s19 + $0xc8] sm:$0xff]  }
 0x725   : > { %v7539_v62 = vmul.f32 0.125, %v7470_v31  ;;  %v7552_v5 = vmul.f32 %v7434_v17, %v7434_v17  ;;  %v7543_v14 = vmul.f32 0.125, %v7494_v18  ;;  %v7556_v57 = vmul.f32 %v7438_v4, %v7438_v4  ;;  %v11532_v29 = vld [vmem:[%s12500_s19 + $0x80] sm:$0xff]   ;;  %10328 = vmatprep.subr.bf16.mxu1 %v11530_v15  ;;  %v11536_v31 = vld [vmem:[%s12500_s19 + $0x88] sm:$0xff]   ;;  %v11538_v18 = vld [vmem:[%s12500_s19 + $0xd0] sm:$0xff]  }
 0x726   : > { %v7564_v39 = vsub.f32 %v7538_v41, %v7551_v50  ;;  %v7568_v27 = vsub.f32 %v7542_v0, %v7555_v7  ;;  %v7608_v33 = vrot.slane %v13309_v32, %v12098_v48  ;;  %v7624_v23 = vrot.slane %v13309_v32, %v12182_v21  ;;  %10329 = vmatpush3.bf16.msra.mxu1 %v11532_v29  ;;  %v11540_v41 = vld [vmem:[%s12500_s19 + $0x90] sm:$0xff]   ;;  %v11541_v50 = vld [vmem:[%s12500_s19 + $0x58] sm:$0xff]  }
 0x727   : > { %v7565_v58 = vsub.f32 %v7539_v62, %v7552_v5  ;;  %v7569_v16 = vsub.f32 %v7543_v14, %v7556_v57  ;;  %7228 = vmatpush1.bf16.msra.mxu0 %v11520_v44  ;;  %v7612_v26 = vrot.slane %v13309_v32, %v12106_v52  ;;  %v7628_v46 = vrot.slane %v13309_v32, %v12248_v11  ;;  %v11539_v44 = vld [vmem:[%s12500_s19 + $0x10] sm:$0xff]   ;;  %v11542_v0 = vld [vmem:[%s12500_s19 + $0xd8] sm:$0xff]  }
 0x728   : > { %v7577_v10 = vadd.f32 1e-05, %v7564_v39  ;;  %v7581_v36 = vadd.f32 1e-05, %v7568_v27  ;;  %7229 = vmatprep.subr.bf16.mxu0 %v11525_v20  ;;  %10330 = vmatprep.subr.bf16.mxu1 %v11534_v45  ;;  %v11543_v7 = vld [vmem:[%s12500_s19 + $0x18] sm:$0xff]   ;;  %v11545_v27 = vld [vmem:[%s12500_s19 + $0x60] sm:$0xff]  }
 0x729   : > { %v7578_v35 = vadd.f32 1e-05, %v7565_v58  ;;  %v7582_v61 = vadd.f32 1e-05, %v7569_v16  ;;  %v11544_v20 = vld [vmem:[%s12500_s19 + $0x98] sm:$0xff]   ;;  %v11546_v58 = vld [vmem:[%s12500_s19 + $0xe0] sm:$0xff]  }
 0x72a   : > { %11669 = vrsqrt.f32 %v7577_v10  ;;  %10331 = vmatpush3.bf16.msra.mxu1 %v11536_v31  ;;  %v11551_v45 = vld [vmem:[%s12500_s19 + $0x28] sm:$0xff]  }
 0x72b   : > { %11671 = vrsqrt.f32 %v7581_v36  ;;  %7230 = vmatpush1.bf16.msra.mxu0 %v11523_v51  ;;  %10332 = vmatprep.subr.bf16.mxu1 %v11538_v18 }
 0x72c   : > { %11673 = vrsqrt.f32 %v7578_v35  ;;  %7231 = vmatprep.subr.bf16.mxu0 %v11528_v25 }
 0x72d   : > { %11675 = vrsqrt.f32 %v7582_v61  ;;  %v11547_v61 = vld [vmem:[%s12500_s19 + $0x20] sm:$0xff]  }
 0x72e   : > { %10333 = vmatpush3.bf16.msra.mxu1 %v11540_v41  ;;  %v11553_v41 = vld [vmem:[%s12500_s19 + $0x70] sm:$0xff]  }
 0x72f   : > { %7232 = vmatpush1.bf16.msra.mxu0 %v11526_v9  ;;  %10334 = vmatprep.subr.bf16.mxu1 %v11542_v0  ;;  %v11548_v9 = vld [vmem:[%s12500_s19 + $0xa0] sm:$0xff]  }
 0x730   : > { %10306 = vmatprep.subr.bf16.mxu0 %v11529_v38 }
 0x732   : > { %9978 = vmatmul.mubr.msk.bf16.vlgmr.msra.gmra.mrb[64].mxu0 %vm932_vm0, %v13073_v2  ;;  %10335 = vmatpush3.bf16.msra.mxu1 %v11544_v20 }
 0x733   : > { %10336 = vmatprep.subr.bf16.mxu1 %v11546_v58 }
 0x734   : > { %v11670_v6 = vpop.eup %11669 }
 0x735   : > { %v11672_v13 = vpop.eup %11671  ;;  %v13321_v63 = vmul.f32 %v11670_v6, %v7608_v33 }
 0x736   : > { %v11674_v22 = vpop.eup %11673  ;;  %v13323_v1 = vmul.f32 %v11672_v13, %v7624_v23  ;;  %10337 = vmatpush3.bf16.msra.mxu1 %v11548_v9 }
 0x737   : > { %v11676_v34 = vpop.eup %11675  ;;  %v13326_v2 = vmul.f32 %v13321_v63, %v7433_v56  ;;  %v13328_v12 = vmul.f32 %v11674_v22, %v7612_v26  ;;  %v11531_v56 = vld [vmem:[%s12500_s19] sm:$0xff]   ;;  %v11549_v22 = vld [vmem:[%s12500_s19 + $0x68] sm:$0xff]  }
 0x738   : > { %v13331_v55 = vmul.f32 %v13323_v1, %v7437_v28  ;;  %v13333_v24 = vmul.f32 %v11676_v34, %v7628_v46  ;;  %10307 = vmatpush3.bf16.msra.mxu0 %v11531_v56  ;;  %v11533_v28 = vld [vmem:[%s12500_s19 + $0x48] sm:$0xff]  }
 0x739   : > { %v13336_v19 = vmul.f32 %v13328_v12, %v7434_v17  ;;  %v11535_v17 = vld [vmem:[%s12500_s19 + $0x8] sm:$0xff]   ;;  %10308 = vmatprep.subr.bf16.mxu0 %v11533_v28 }
 0x73a   : > { %v13339_v42 = vmul.f32 %v13333_v24, %v7438_v4  ;;  %v11537_v4 = vld [vmem:[%s12500_s19 + $0x50] sm:$0xff]   ;;  %v11550_v34 = vld [vmem:[%s12500_s19 + $0xe8] sm:$0xff]  }
 0x73b   : > { %v7774_v8 = vcombine.low %v13326_v2, %v13336_v19  ;;  %10338 = vmatprep.subr.bf16.mxu1 %v11550_v34 }
 0x73c   : > { %v7776_v3 = vcombine.low %v13331_v55, %v13339_v42  ;;  %10309 = vmatpush3.bf16.msra.mxu0 %v11535_v17  ;;  %v11552_v17 = vld [vmem:[%s12500_s19 + $0xa8] sm:$0xff]  }
 0x73d   : > { %10310 = vmatprep.subr.bf16.mxu0 %v11537_v4  ;;  %10339 = vmatpush3.bf16.msra.mxu1 %v11552_v17 }
 0x740   : > { %10311 = vmatpush3.bf16.msra.mxu0 %v11539_v44 }
 0x741   : > { %10312 = vmatprep.subr.bf16.mxu0 %v11541_v50  ;;  %v11554_v50 = vld [vmem:[%s12500_s19 + $0xf0] sm:$0xff]  }
 0x742   : > { %10340 = vmatprep.subr.bf16.mxu1 %v11554_v50 }
 0x744   : > { %10313 = vmatpush3.bf16.msra.mxu0 %v11543_v7 }
 0x745   : > { %10314 = vmatprep.subr.bf16.mxu0 %v11545_v27 }
 0x748   : > { %10315 = vmatpush3.bf16.msra.mxu0 %v11547_v61 }
 0x749   : > { %10316 = vmatprep.subr.bf16.mxu0 %v11549_v22 }
 0x74c   : > { %10317 = vmatpush3.bf16.msra.mxu0 %v11551_v45 }
 0x74d   : > { %10318 = vmatprep.subr.bf16.mxu0 %v11553_v41  ;;  %v11560_v41 = vld [vmem:[%s12500_s19 + $0xb8] sm:$0xff]  }
 0x765   : > { %v13361_v62 = vpop.f32.mrb[56].mxu0 }
 0x766   : > { %v7366_v5 = vrot.slane %v13361_v62, 4  ;;  %v7448_v14 = vmul.f32 %v13361_v62, %v13361_v62  ;;  %v13366_v57 = vpop.f32.mrb[20].mxu1  ;;  %v13368_v39 = vpop.f32.mrb[57].mxu0 }
 0x767   : > { %v7402_v16 = vrot.slane %v13366_v57, 4  ;;  %v7454_v51 = vmul.f32 %v13366_v57, %v13366_v57  ;;  %v7372_v10 = vrot.slane %v13368_v39, 4  ;;  %v7449_v36 = vmul.f32 %v13368_v39, %v13368_v39  ;;  %v13378_v25 = vpop.f32.mrb[21].mxu1  ;;  %v6935_v35 = vpop.f32.mrb[58].mxu0 }
 0x768   : > { %v7367_v33 = vadd.f32 %v7366_v5, %v13361_v62  ;;  %v7471_v23 = vrot.slane %v7448_v14, 4  ;;  %v7408_v26 = vrot.slane %v13378_v25, 4  ;;  %v7455_v6 = vmul.f32 %v13378_v25, %v13378_v25  ;;  %v7181_v46 = vpop.f32.mrb[22].mxu1  ;;  %v6936_v13 = vpop.f32.mrb[59].mxu0 }
 0x769   : > { %v7403_v38 = vadd.f32 %v7402_v16, %v13366_v57  ;;  %v7507_v15 = vrot.slane %v7454_v51, 4  ;;  %v7373_v56 = vadd.f32 %v7372_v10, %v13368_v39  ;;  %v7477_v29 = vrot.slane %v7449_v36, 4  ;;  %v7182_v28 = vpop.f32.mrb[23].mxu1 }
 0x76a   : > { %v7368_v31 = vrot.slane %v7367_v33, 2  ;;  %v7472_v4 = vadd.f32 %v7471_v23, %v7448_v14  ;;  %v7409_v18 = vadd.f32 %v7408_v26, %v13378_v25  ;;  %v7513_v44 = vrot.slane %v7455_v6, 4  ;;  %v11555_v23 = vld [vmem:[%s12500_s19 + $0x30] sm:$0xff]  }
 0x76b   : > { %v7404_v0 = vrot.slane %v7403_v38, 2  ;;  %v7508_v7 = vadd.f32 %v7507_v15, %v7454_v51  ;;  %v7374_v20 = vrot.slane %v7373_v56, 2  ;;  %v7478_v5 = vadd.f32 %v7477_v29, %v7449_v36  ;;  %v11556_v26 = vld [vmem:[%s12500_s19 + $0xb0] sm:$0xff]   ;;  %v11557_v36 = vld [vmem:[%s12500_s19 + $0x78] sm:$0xff]   ;;  %10319 = vmatpush3.bf16.msra.mxu0 %v11555_v23 }
 0x76c   : > { %v7369_v27 = vadd.f32 %v7368_v31, %v7367_v33  ;;  %v7473_v58 = vrot.slane %v7472_v4, 2  ;;  %v7410_v16 = vrot.slane %v7409_v18, 2  ;;  %v7514_v10 = vadd.f32 %v7513_v44, %v7455_v6  ;;  %v11558_v33 = vld [vmem:[%s12500_s19 + $0xf8] sm:$0xff]   ;;  %10341 = vmatpush3.bf16.msra.mxu1 %v11556_v26  ;;  %10320 = vmatprep.subr.bf16.mxu0 %v11557_v36 }
 0x76d   : > { %v7405_v14 = vadd.f32 %v7404_v0, %v7403_v38  ;;  %v7509_v35 = vrot.slane %v7508_v7, 2  ;;  %v7375_v61 = vadd.f32 %v7374_v20, %v7373_v56  ;;  %v7479_v9 = vrot.slane %v7478_v5, 2  ;;  %v11559_v44 = vld [vmem:[%s12500_s19 + $0x38] sm:$0xff]   ;;  %10342 = vmatprep.subr.bf16.mxu1 %v11558_v33 }
 0x76e   : > { %v7370_v46 = vrot.slane %v7369_v27, 1  ;;  %v7474_v13 = vadd.f32 %v7473_v58, %v7472_v4  ;;  %v7411_v22 = vadd.f32 %v7410_v16, %v7409_v18  ;;  %v7515_v51 = vrot.slane %v7514_v10, 2 }
 0x76f   : > { %v7406_v6 = vrot.slane %v7405_v14, 1  ;;  %v7510_v34 = vadd.f32 %v7509_v35, %v7508_v7  ;;  %v7376_v38 = vrot.slane %v7375_v61, 1  ;;  %v7480_v15 = vadd.f32 %v7479_v9, %v7478_v5  ;;  %v11561_v5 = vld [vmem:[%s12500_s19 + $0x140] sm:$0xff]   ;;  %10321 = vmatpush3.bf16.msra.mxu0 %v11559_v44 }
 0x770   : > { %v7371_v56 = vadd.f32 %v7370_v46, %v7369_v27  ;;  %v7475_v29 = vrot.slane %v7474_v13, 1  ;;  %v7412_v28 = vrot.slane %v7411_v22, 1  ;;  %v7516_v45 = vadd.f32 %v7515_v51, %v7514_v10  ;;  %v11562_v27 = vld [vmem:[%s12500_s19 + $0x1c0] sm:$0xff]   ;;  %10343 = vmatpush3.bf16.msra.mxu1 %v11560_v41  ;;  %10350 = vmatprep.subr.bf16.mxu0 %v11561_v5 }
 0x771   : > { %v7407_v17 = vadd.f32 %v7406_v6, %v7405_v14  ;;  %v7511_v31 = vrot.slane %v7510_v34, 1  ;;  %v7377_v4 = vadd.f32 %v7376_v38, %v7375_v61  ;;  %v7481_v18 = vrot.slane %v7480_v15, 1  ;;  %10372 = vmatprep.subr.bf16.mxu1 %v11562_v27 }
 0x772   : > { %v7435_v50 = vmul.f32 0.125, %v7371_v56  ;;  %v7476_v0 = vadd.f32 %v7475_v29, %v7474_v13  ;;  %v7413_v20 = vadd.f32 %v7412_v28, %v7411_v22  ;;  %v7517_v7 = vrot.slane %v7516_v45, 1 }
 0x773   : > { %v7441_v58 = vmul.f32 0.125, %v7407_v17  ;;  %v7512_v16 = vadd.f32 %v7511_v31, %v7510_v34  ;;  %v7436_v10 = vmul.f32 0.125, %v7377_v4  ;;  %v7482_v35 = vadd.f32 %v7481_v18, %v7480_v15 }
 0x774   : > { %v7540_v14 = vmul.f32 0.125, %v7476_v0  ;;  %v7553_v9 = vmul.f32 %v7435_v50, %v7435_v50  ;;  %v7442_v61 = vmul.f32 0.125, %v7413_v20  ;;  %v7518_v46 = vadd.f32 %v7517_v7, %v7516_v45  ;;  %v13404_v45 = vld [vmem:[%s12092_s16 + $0x22] ss:$4 sm:$0x1f] }
 0x775   : > { %v7546_v23 = vmul.f32 0.125, %v7512_v16  ;;  %v7559_v26 = vmul.f32 %v7441_v58, %v7441_v58  ;;  %v7541_v51 = vmul.f32 0.125, %v7482_v35  ;;  %v7554_v6 = vmul.f32 %v7436_v10, %v7436_v10 }
 0x776   : > { %v7566_v13 = vsub.f32 %v7540_v14, %v7553_v9  ;;  %v7547_v22 = vmul.f32 0.125, %v7518_v46  ;;  %v7560_v36 = vmul.f32 %v7442_v61, %v7442_v61  ;;  %v7616_v17 = vrot.slane %v13309_v32, %v12101_v49 }
 0x777   : > { %v7572_v33 = vsub.f32 %v7546_v23, %v7559_v26  ;;  %v7567_v34 = vsub.f32 %v7541_v51, %v7554_v6  ;;  %v7640_v31 = vrot.slane %v13404_v45, %v12098_v48  ;;  %v7620_v4 = vrot.slane %v13309_v32, %v12109_v53 }
 0x778   : > { %v7579_v38 = vadd.f32 1e-05, %v7566_v13  ;;  %v7573_v15 = vsub.f32 %v7547_v22, %v7560_v36  ;;  %v7644_v44 = vrot.slane %v13404_v45, %v12106_v52 }
 0x779   : > { %v7585_v56 = vadd.f32 1e-05, %v7572_v33  ;;  %v7580_v29 = vadd.f32 1e-05, %v7567_v34 }
 0x77a   : > { %11677 = vrsqrt.f32 %v7579_v38  ;;  %v7586_v28 = vadd.f32 1e-05, %v7573_v15 }
 0x77b   : > { %11679 = vrsqrt.f32 %v7585_v56 }
 0x77c   : > { %11681 = vrsqrt.f32 %v7580_v29 }
 0x77d   : > { %11683 = vrsqrt.f32 %v7586_v28 }
 0x784   : > { %v11678_v18 = vpop.eup %11677 }
 0x785   : > { %v11680_v41 = vpop.eup %11679  ;;  %v13414_v0 = vmul.f32 %v11678_v18, %v7616_v17 }
 0x786   : > { %v11682_v20 = vpop.eup %11681  ;;  %v13416_v7 = vmul.f32 %v11680_v41, %v7640_v31  ;;  %v10295_v5 = vpop.f32.mrb[24].mxu1 }
 0x787   : > { %v11684_v27 = vpop.eup %11683  ;;  %v7750_v16 = vmul.f32 %v13414_v0, %v7435_v50  ;;  %v13419_v35 = vmul.f32 %v11682_v20, %v7620_v4  ;;  %v10296_v14 = vpop.f32.mrb[25].mxu1 }
 0x788   : > { %v13422_v9 = vmul.f32 %v13416_v7, %v7441_v58  ;;  %v13424_v46 = vmul.f32 %v11684_v27, %v7644_v44  ;;  %v10297_v23 = vadd.f32 %v10296_v14, %v10295_v5  ;;  %v10298_v26 = vpop.f32.mrb[26].mxu1  ;;  %v13436_v58 = vrot.slane %v7774_v8, %v12235_v60 }
 0x789   : > { %v7751_v51 = vmul.f32 %v13419_v35, %v7436_v10  ;;  %v10299_v6 = vpop.f32.mrb[27].mxu1  ;;  %v7698_v55 = vrot.slane %v13419_v35, %v12098_v48 }
 0x78a   : > { %v13428_v13 = vmul.f32 %v13424_v46, %v7442_v61 }
 0x78b   : > { %v7775_v22 = vcombine.low %v7750_v16, %v7751_v51 }
 0x78d   : > { %v13439_v36 = vrot.slane %v7775_v22, %v12235_v60 }
 0x78f   : > { %v7806_v10 = vcombine.low %v13436_v58, %v13439_v36 }
 0x796   : > { %v7340_v33 = vpop.f32.mrb[28].mxu1 }
 0x797   : > { %v13443_v34 = vadd.f32 %v10297_v23, %v7340_v33  ;;  %v10501_v61 = vpop.f32.mrb[29].mxu1 }
 0x798   : > { %v7343_v38 = vpop.f32.mrb[30].mxu1 }
 0x799   : > { %v10502_v15 = vpop.f32.mrb[31].mxu1 }
 0x7b5   : > { %v13445_v56 = vpop.f32.mrb[60].mxu0 }
 0x7b6   : > { %v7390_v29 = vrot.slane %v13445_v56, 4  ;;  %v7452_v2 = vmul.f32 %v13445_v56, %v13445_v56  ;;  %v13450_v19 = vpop.f32.mrb[61].mxu0 }
 0x7b7   : > { %v7396_v8 = vrot.slane %v13450_v19, 4  ;;  %v7453_v28 = vmul.f32 %v13450_v19, %v13450_v19  ;;  %v7099_v17 = vpop.f32.mrb[62].mxu0 }
 0x7b8   : > { %v7391_v31 = vadd.f32 %v7390_v29, %v13445_v56  ;;  %v7495_v4 = vrot.slane %v7452_v2, 4  ;;  %v7100_v18 = vpop.f32.mrb[63].mxu0 }
 0x7b9   : > { %v7397_v44 = vadd.f32 %v7396_v8, %v13450_v19  ;;  %v7501_v41 = vrot.slane %v7453_v28, 4 }
 0x7ba   : > { %v7392_v20 = vrot.slane %v7391_v31, 2  ;;  %v7496_v5 = vadd.f32 %v7495_v4, %v7452_v2 }
 0x7bb   : > { %v7398_v27 = vrot.slane %v7397_v44, 2  ;;  %v7502_v16 = vadd.f32 %v7501_v41, %v7453_v28 }
 0x7bc   : > { %v7393_v14 = vadd.f32 %v7392_v20, %v7391_v31  ;;  %v7497_v23 = vrot.slane %v7496_v5, 2 }
 0x7bd   : > { %v7399_v26 = vadd.f32 %v7398_v27, %v7397_v44  ;;  %v7503_v51 = vrot.slane %v7502_v16, 2 }
 0x7be   : > { %v7394_v6 = vrot.slane %v7393_v14, 1  ;;  %v7498_v22 = vadd.f32 %v7497_v23, %v7496_v5  ;;  %v7632_v5 = vrot.slane %v13309_v32, %v12192_v43 }
 0x7bf   : > { %v7400_v33 = vrot.slane %v7399_v26, 1  ;;  %v7504_v61 = vadd.f32 %v7503_v51, %v7502_v16  ;;  %v11696_v16 = vld [vmem:[%s11989_s26] ss:$0 sm:$0xff]  ;;  %s13754_s26 = sshll.u32 %s11892_s25, 7 }
 0x7c0   : > { %v7395_v38 = vadd.f32 %v7394_v6, %v7393_v14  ;;  %v7499_v15 = vrot.slane %v7498_v22, 1  ;;  %8798 = vrot.lane.b32.xlu0 %v11696_v16, %s11803_s18  ;;  %v7636_v14 = vrot.slane %v13309_v32, %v12274_v59  ;;  %v7702_v32 = vrot.slane %v13323_v1, %v12098_v48  ;;  %s13664_s3 = scalar_lea.hbm %s13747_s11, %s13754_s26  ;;  %s11697_s18 = scalar_lea.vmem %s9105_s0, 128 }
 0x7c1   : > { %v7401_v29 = vadd.f32 %v7400_v33, %v7399_v26  ;;  %v7505_v17 = vrot.slane %v7504_v61, 1  ;;  %p11698_p11 = scmp.ne.s32.totalorder %s9105_s0, %s11697_s18 }
 0x7c2   : > { %v7439_v18 = vmul.f32 0.125, %v7395_v38  ;;  %v7500_v8 = vadd.f32 %v7499_v15, %v7498_v22  ;;  %v7739_v35 = vmul.f32 %v7702_v32, %v13273_v37  ;;  %v11563_v32 = vld [vmem:[%s12500_s19 + $0x100] sm:$0xff]  }
 0x7c3   : > { %v7440_v54 = vmul.f32 0.125, %v7401_v29  ;;  %v7506_v50 = vadd.f32 %v7505_v17, %v7504_v61  ;;  %v7798_v61 = vrot.slane %v7776_v3, %v12235_v60  ;;  %v7686_v29 = vrot.slane %v13321_v63, %v12098_v48  ;;  %v9982_v3 = vld [vmem:[%s12092_s16 + $0x3] ss:$4 sm:$0xff]  ;;  %p11699_p12 = pnand %p11698_p11, %p11909_p5 }
 0x7c4   : > { %v7544_v2 = vmul.f32 0.125, %v7500_v8  ;;  %v7557_v4 = vmul.f32 %v7439_v18, %v7439_v18  ;;  %v7690_v17 = vrot.slane %v13328_v12, %v12098_v48  ;;  %v7814_v63 = vrot.slane %v7806_v10, %v12235_v60 }
 0x7c5   : > { %v7545_v28 = vmul.f32 0.125, %v7506_v50  ;;  %v7558_v31 = vmul.f32 %v7440_v54, %v7440_v54  ;;  %v7735_v8 = vmul.f32 %v7686_v29, %v13271_v47  ;;  %v7738_v10 = vmul.f32 %v7698_v55, %v13368_v39  ;;  %p11700_p13 = pneg %p11699_p12 }
 0x7c6   : > { %v7570_v41 = vsub.f32 %v7544_v2, %v7557_v4  ;;  %v7736_v2 = vmul.f32 %v7690_v17, %v13281_v30  ;;  %v11564_v17 = vld [vmem:[%s12500_s19 + $0x180] sm:$0xff]  }
 0x7c7   : > { %v7571_v44 = vsub.f32 %v7545_v28, %v7558_v31  ;;  %v7458_v31 = vmul.f32 %v13443_v34, %v13443_v34 }
 0x7c8   : > { %v7583_v20 = vadd.f32 1e-05, %v7570_v41 }
 0x7c9   : > { %v7584_v27 = vadd.f32 1e-05, %v7571_v44 }
 0x7ca   : > { %11685 = vrsqrt.f32 %v7583_v20 }
 0x7cb   : > { %11687 = vrsqrt.f32 %v7584_v27 }
 0x7d4   : > { %v11686_v23 = vpop.eup %11685 }
 0x7d5   : > { %v11688_v26 = vpop.eup %11687  ;;  %v7676_v51 = vmul.f32 %v11686_v23, %v7632_v5 }
 0x7d6   : > { %v7677_v50 = vmul.f32 %v11688_v26, %v7636_v14 }
 0x7d7   : > { %v7754_v6 = vmul.f32 %v7676_v51, %v7439_v18  ;;  %v7694_v18 = vrot.slane %v13414_v0, %v12098_v48  ;;  %v7710_v1 = vrot.slane %v7676_v51, %v12098_v48 }
 0x7d8   : > { %v7755_v22 = vmul.f32 %v7677_v50, %v7440_v54  ;;  %v7706_v54 = vrot.slane %v13333_v24, %v12098_v48  ;;  %v7714_v12 = vrot.slane %v7677_v50, %v12098_v48  ;;  %v13489_v24 = vsel %vm932_vm0, %v13443_v34, 0.0 }
 0x7d9   : > { %v7737_v36 = vmul.f32 %v7694_v18, %v13361_v62  ;;  %v7427_v28 = vrot.slane %v13489_v24, 4  ;;  %v7741_v41 = vmul.f32 %v7710_v1, %v13445_v56 }
 0x7da   : > { %v7777_v33 = vcombine.low %v7754_v6, %v7755_v22  ;;  %v7740_v58 = vmul.f32 %v7706_v54, %v13283_v40  ;;  %v7742_v47 = vmul.f32 %v7714_v12, %v13450_v19 }
 0x7dc   : > { %v7805_v38 = vrot.slane %v7777_v33, %v12235_v60 }
 0x7de   : > { %v7807_v15 = vcombine.low %v7798_v61, %v7805_v38 }
 0x7e0   : > { %v7821_v42 = vrot.slane %v7807_v15, %v12235_v60 }
 0x7e2   : > { %v7822_v0 = vcombine.low %v7814_v63, %v7821_v42  ;;  %v11565_v63 = vld [vmem:[%s12500_s19 + $0x148] sm:$0xff]   ;;  %v7531_v42 = vsel %vm932_vm0, %v7458_v31, 0.0  ;;  %v11571_v31 = vld [vmem:[%s12500_s19 + $0x110] sm:$0xff]  }
 0x7e4   : > { %v7864_v4 = vsub.f32 %v9982_v3, %v7822_v0  ;;  %v11566_v3 = vld [vmem:[%s12500_s19 + $0x1c8] sm:$0xff]  }
 0x7e6   : > { %v7899_v37 = vrot.slane %v7864_v4, %v12274_v59  ;;  %v7875_v30 = vrot.slane %v7864_v4, %v12106_v52  ;;  %v7883_v40 = vrot.slane %v7864_v4, %v12109_v53  ;;  %v7871_v62 = vrot.slane %v7864_v4, %v12098_v48 }
 0x7e7   : > { %v7879_v39 = vrot.slane %v7864_v4, %v12101_v49  ;;  %v7891_v44 = vrot.slane %v7864_v4, %v12248_v11  ;;  %v7887_v20 = vrot.slane %v7864_v4, %v12182_v21  ;;  %v7895_v27 = vrot.slane %v7864_v4, %v12192_v43  ;;  %v11570_v4 = vld [vmem:[%s12500_s19 + $0x1d0] sm:$0xff]  }
 0x7e8   : > { %v7940_v5 = vadd.f32 %v7899_v37, %v7742_v47  ;;  %v7934_v56 = vadd.f32 %v7875_v30, %v7736_v2  ;;  %v7936_v16 = vadd.f32 %v7883_v40, %v7738_v10  ;;  %v7933_v19 = vadd.f32 %v7871_v62, %v7735_v8  ;;  %v11567_v8 = vld [vmem:[%s12500_s19 + $0x108] sm:$0xff]   ;;  %v11569_v10 = vld [vmem:[%s12500_s19 + $0x150] sm:$0xff]   ;;  %v11574_v37 = vld [vmem:[%s12500_s19 + $0x1d8] sm:$0xff]  }
 0x7e9   : > { %v7935_v14 = vadd.f32 %v7879_v39, %v7737_v36  ;;  %v7938_v59 = vadd.f32 %v7891_v44, %v7740_v58  ;;  %v13510_v23 = vadd.f32 %v7887_v20, %v7739_v35  ;;  %v13512_v26 = vadd.f32 %v7895_v27, %v7741_v41  ;;  %v11568_v35 = vld [vmem:[%s12500_s19 + $0x188] sm:$0xff]   ;;  %v11572_v41 = vld [vmem:[%s12500_s19 + $0x190] sm:$0xff]   ;;  %v11575_v30 = vld [vmem:[%s12500_s19 + $0x118] sm:$0xff]  }
 0x7ea   : > { %vm7947_vm11 = vcmp.gt.f32.partialorder %v7934_v56, 0.0  ;;  %v7960_v51 = vmul.f32 0.2, %v7934_v56  ;;  %vm7949_vm12 = vcmp.gt.f32.partialorder %v7936_v16, 0.0  ;;  %v7962_v11 = vmul.f32 0.2, %v7936_v16 }
 0x7eb   : > { %vm7946_vm13 = vcmp.gt.f32.partialorder %v7933_v19, 0.0  ;;  %v7959_v50 = vmul.f32 0.2, %v7933_v19  ;;  %vm7948_vm14 = vcmp.gt.f32.partialorder %v7935_v14, 0.0  ;;  %v7961_v43 = vmul.f32 0.2, %v7935_v14 }
 0x7ec   : > { %v7973_v6 = vsel %vm7947_vm11, %v7934_v56, %v7960_v51  ;;  %v7975_v22 = vsel %vm7949_vm12, %v7936_v16, %v7962_v11  ;;  %vm7951_vm15 = vcmp.gt.f32.partialorder %v7938_v59, 0.0  ;;  %v7964_v33 = vmul.f32 0.2, %v7938_v59  ;;  %v11576_v40 = vld [vmem:[%s12500_s19 + $0x198] sm:$0xff]   ;;  %v11577_v44 = vld [vmem:[%s12500_s19 + $0x160] sm:$0xff]   ;;  %v11584_v51 = vld [vmem:[%s12500_s19 + $0x1a8] sm:$0xff]  }
 0x7ed   : > { %v7986_v61 = vpack.c.bf16 %v7973_v6, %v7973_v6  ;;  %v7988_v38 = vpack.c.bf16 %v7975_v22, %v7975_v22  ;;  %v7972_v15 = vsel %vm7946_vm13, %v7933_v19, %v7959_v50  ;;  %v7974_v29 = vsel %vm7948_vm14, %v7935_v14, %v7961_v43  ;;  %v11578_v20 = vld [vmem:[%s12500_s19 + $0x1e0] sm:$0xff]   ;;  %v11581_v19 = vld [vmem:[%s12500_s19 + $0x168] sm:$0xff]   ;;  %v11585_v43 = vld [vmem:[%s12500_s19 + $0x170] sm:$0xff]  }
 0x7ee   : > { %v7985_v54 = vpack.c.bf16 %v7972_v15, %v7972_v15  ;;  %v7987_v18 = vpack.c.bf16 %v7974_v29, %v7974_v29  ;;  %v7977_v55 = vsel %vm7951_vm15, %v7938_v59, %v7964_v33  ;;  %vm7953_vm2 = vcmp.gt.f32.partialorder %v7940_v5, 0.0  ;;  %v11579_v27 = vld [vmem:[%s12500_s19 + $0x120] sm:$0xff]   ;;  %v11582_v14 = vld [vmem:[%s12500_s19 + $0x1e8] sm:$0xff]   ;;  %v11586_v6 = vld [vmem:[%s12500_s19 + $0x1f0] sm:$0xff]  }
 0x7ef   : > { %8836 = vmatprep.mubr.bf16.mxu0 %v7986_v61  ;;  %8876 = vmatprep.mubr.bf16.mxu1 %v7988_v38  ;;  %v7966_v1 = vmul.f32 0.2, %v7940_v5  ;;  %v7990_v12 = vpack.c.bf16 %v7977_v55, %v7977_v55  ;;  %v7428_v2 = vadd.f32 %v7427_v28, %v13489_v24  ;;  %v7532_v58 = vrot.slane %v7531_v42, 4  ;;  %v11573_v28 = vld [vmem:[%s12500_s19 + $0x158] sm:$0xff]   ;;  %v11583_v59 = vld [vmem:[%s12500_s19 + $0x128] sm:$0xff]   ;;  %v11587_v33 = vld [vmem:[%s12500_s19 + $0x130] sm:$0xff]  }
 0x7f0   : > { %8837 = vmatmul.mubr.bf16.vlgmr.msra.gmra.mrb[68].mxu0 %v7985_v54  ;;  %8877 = vmatmul.mubr.bf16.vlgmr.msra.gmra.mrb[32].mxu1 %v7987_v18  ;;  %v11588_v61 = vld [vmem:[%s12500_s19 + $0x1b0] sm:$0xff]   ;;  %v11589_v54 = vld [vmem:[%s12500_s19 + $0x178] sm:$0xff]   ;;  %vm7950_vm3 = vcmp.gt.f32.partialorder %v13510_v23, 0.0  ;;  %vm7952_vm4 = vcmp.gt.f32.partialorder %v13512_v26, 0.0 }
 0x7f1   : > { %10351 = vmatpush3.bf16.msra.mxu0 %v11563_v32  ;;  %10373 = vmatpush3.bf16.msra.mxu1 %v11564_v17  ;;  %v7979_v0 = vsel %vm7953_vm2, %v7940_v5, %v7966_v1  ;;  %v7429_v47 = vrot.slane %v7428_v2, 2  ;;  %v7533_v24 = vadd.f32 %v7532_v58, %v7531_v42  ;;  %v11580_v5 = vld [vmem:[%s12500_s19 + $0x1a0] sm:$0xff]   ;;  %v11590_v18 = vld [vmem:[%s12500_s19 + $0x1f8] sm:$0xff]   ;;  %v7963_v1 = vmul.f32 0.2, %v13510_v23 }
 0x7f2   : > { %8916 = vmatprep.mubr.bf16.mxu0 %v7990_v12  ;;  %v7992_v36 = vpack.c.bf16 %v7979_v0, %v7979_v0  ;;  %10352 = vmatprep.subr.bf16.mxu0 %v11565_v63  ;;  %v11591_v58 = vld [vmem:[%s12500_s19 + $0x138] sm:$0xff]  }
 0x7f3   : > { %10374 = vmatprep.subr.bf16.mxu1 %v11566_v3  ;;  %v7430_v62 = vadd.f32 %v7429_v47, %v7428_v2  ;;  %v7534_v39 = vrot.slane %v7533_v24, 2  ;;  %v7965_v3 = vmul.f32 0.2, %v13512_v26  ;;  %v11593_v47 = vld [vmem:[%s12500_s19 + $0x240] sm:$0xff]  }
 0x7f4   : > { %8956 = vmatprep.mubr.bf16.mxu1 %v7992_v36  ;;  %v11592_v36 = vld [vmem:[%s12500_s19 + $0x1b8] sm:$0xff]  }
 0x7f5   : > { %10353 = vmatpush3.bf16.msra.mxu0 %v11567_v8  ;;  %10375 = vmatpush3.bf16.msra.mxu1 %v11568_v35  ;;  %v7431_v56 = vrot.slane %v7430_v62, 1  ;;  %v7535_v16 = vadd.f32 %v7534_v39, %v7533_v24  ;;  %v11595_v24 = vld [vmem:[%s12500_s19 + $0x2c0] sm:$0xff]  }
 0x7f6   : > { %10354 = vmatprep.subr.bf16.mxu0 %v11569_v10  ;;  %10376 = vmatprep.subr.bf16.mxu1 %v11570_v4 }
 0x7f7   : > { %v7432_v11 = vadd.f32 %v7431_v56, %v7430_v62  ;;  %v7536_v50 = vrot.slane %v7535_v16, 1 }
 0x7f9   : > { %10355 = vmatpush3.bf16.msra.mxu0 %v11571_v31  ;;  %10377 = vmatpush3.bf16.msra.mxu1 %v11572_v41  ;;  %v13544_v38 = vmul.f32 0.125, %v7432_v11  ;;  %v7537_v15 = vadd.f32 %v7536_v50, %v7535_v16 }
 0x7fa   : > { %10356 = vmatprep.subr.bf16.mxu0 %v11573_v28  ;;  %10378 = vmatprep.subr.bf16.mxu1 %v11574_v37 }
 0x7fb   : > { %v7550_v10 = vmul.f32 0.125, %v7537_v15  ;;  %v7563_v4 = vmul.f32 %v13544_v38, %v13544_v38  ;;  %v11600_v15 = vld [vmem:[%s12500_s19 + $0x288] sm:$0xff]  }
 0x7fd   : > { %10357 = vmatpush3.bf16.msra.mxu0 %v11575_v30  ;;  %10379 = vmatpush3.bf16.msra.mxu1 %v11576_v40  ;;  %v7976_v30 = vsel %vm7950_vm3, %v13510_v23, %v7963_v1  ;;  %v7978_v40 = vsel %vm7952_vm4, %v13512_v26, %v7965_v3  ;;  %v11597_v23 = vld [vmem:[%s12500_s19 + $0x248] sm:$0xff]   ;;  %v7576_v26 = vsub.f32 %v7550_v10, %v7563_v4 }
 0x7fe   : > { %10358 = vmatprep.subr.bf16.mxu0 %v11577_v44  ;;  %10380 = vmatprep.subr.bf16.mxu1 %v11578_v20 }
 0x801   : > { %10359 = vmatpush3.bf16.msra.mxu0 %v11579_v27  ;;  %10381 = vmatpush3.bf16.msra.mxu1 %v11580_v5  ;;  %v11594_v27 = vld [vmem:[%s12500_s19 + $0x200] sm:$0xff]  }
 0x802   : > { %10360 = vmatprep.subr.bf16.mxu0 %v11581_v19  ;;  %10382 = vmatprep.subr.bf16.mxu1 %v11582_v14  ;;  %v11596_v5 = vld [vmem:[%s12500_s19 + $0x280] sm:$0xff]   ;;  %v7989_v19 = vpack.c.bf16 %v7976_v30, %v7976_v30  ;;  %v7991_v14 = vpack.c.bf16 %v7978_v40, %v7978_v40  ;;  %v11613_v40 = vld [vmem:[%s12500_s19 + $0x268] sm:$0xff]  }
 0x803   : > { %v11612_v30 = vld [vmem:[%s12500_s19 + $0x2a0] sm:$0xff]  }
 0x805   : > { %10361 = vmatpush3.bf16.msra.mxu0 %v11583_v59  ;;  %10383 = vmatpush3.bf16.msra.mxu1 %v11584_v51  ;;  %v13540_v22 = vpop.f32.mrb[64].mxu0  ;;  %v11599_v59 = vld [vmem:[%s12500_s19 + $0x2c8] sm:$0xff]  }
 0x806   : > { %v7414_v29 = vrot.slane %v13540_v22, 4  ;;  %v7456_v32 = vmul.f32 %v13540_v22, %v13540_v22  ;;  %v13549_v17 = vpop.f32.mrb[65].mxu0  ;;  %10362 = vmatprep.subr.bf16.mxu0 %v11585_v43  ;;  %10384 = vmatprep.subr.bf16.mxu1 %v11586_v6 }
 0x807   : > { %v7420_v55 = vrot.slane %v13549_v17, 4  ;;  %v7457_v63 = vmul.f32 %v13549_v17, %v13549_v17  ;;  %v7263_v42 = vpop.f32.mrb[66].mxu0 }
 0x808   : > { %v7415_v12 = vadd.f32 %v7414_v29, %v13540_v22  ;;  %v7519_v0 = vrot.slane %v7456_v32, 4  ;;  %v7264_v8 = vpop.f32.mrb[67].mxu0 }
 0x809   : > { %v7421_v35 = vadd.f32 %v7420_v55, %v13549_v17  ;;  %v7525_v2 = vrot.slane %v7457_v63, 4  ;;  %10363 = vmatpush3.bf16.msra.mxu0 %v11587_v33  ;;  %10385 = vmatpush3.bf16.msra.mxu1 %v11588_v61  ;;  %v11598_v61 = vld [vmem:[%s12500_s19 + $0x208] sm:$0xff]   ;;  %v7589_v55 = vadd.f32 1e-05, %v7576_v26  ;;  %v11602_v8 = vld [vmem:[%s12500_s19 + $0x210] sm:$0xff]  }
 0x80a   : > { %v7416_v31 = vrot.slane %v7415_v12, 2  ;;  %v7520_v41 = vadd.f32 %v7519_v0, %v7456_v32  ;;  %10364 = vmatprep.subr.bf16.mxu0 %v11589_v54  ;;  %10386 = vmatprep.subr.bf16.mxu1 %v11590_v18  ;;  %v11601_v54 = vld [vmem:[%s12500_s19 + $0x250] sm:$0xff]  }
 0x80b   : > { %v7422_v28 = vrot.slane %v7421_v35, 2  ;;  %v7526_v37 = vadd.f32 %v7525_v2, %v7457_v63  ;;  %v11603_v18 = vld [vmem:[%s12500_s19 + $0x2d0] sm:$0xff]   ;;  %11689 = vrsqrt.f32 %v7589_v55 }
 0x80c   : > { %v7417_v62 = vadd.f32 %v7416_v31, %v7415_v12  ;;  %v7521_v39 = vrot.slane %v7520_v41, 2 }
 0x80d   : > { %v7423_v44 = vadd.f32 %v7422_v28, %v7421_v35  ;;  %v7527_v20 = vrot.slane %v7526_v37, 2  ;;  %10365 = vmatpush3.bf16.msra.mxu0 %v11591_v58  ;;  %10387 = vmatpush3.bf16.msra.mxu1 %v11592_v36  ;;  %v11604_v35 = vld [vmem:[%s12500_s19 + $0x290] sm:$0xff]   ;;  %v11605_v58 = vld [vmem:[%s12500_s19 + $0x258] sm:$0xff]   ;;  %v11611_v28 = vld [vmem:[%s12500_s19 + $0x2e0] sm:$0xff]  }
 0x80e   : > { %v7418_v56 = vrot.slane %v7417_v62, 1  ;;  %v7522_v16 = vadd.f32 %v7521_v39, %v7520_v41  ;;  %10394 = vmatprep.subr.bf16.mxu0 %v11593_v47  ;;  %10416 = vmatprep.subr.bf16.mxu1 %v11595_v24  ;;  %v11607_v36 = vld [vmem:[%s12500_s19 + $0x2d8] sm:$0xff]   ;;  %v11609_v24 = vld [vmem:[%s12500_s19 + $0x260] sm:$0xff]   ;;  %v7656_v39 = vrot.slane %v13404_v45, %v12182_v21 }
 0x80f   : > { %v7424_v51 = vrot.slane %v7423_v44, 1  ;;  %v7528_v11 = vadd.f32 %v7527_v20, %v7526_v37  ;;  %v11606_v41 = vld [vmem:[%s12500_s19 + $0x218] sm:$0xff]   ;;  %v11610_v37 = vld [vmem:[%s12500_s19 + $0x220] sm:$0xff]   ;;  %v7648_v20 = vrot.slane %v13404_v45, %v12101_v49 }
 0x810   : > { %v7419_v50 = vadd.f32 %v7418_v56, %v7417_v62  ;;  %v7523_v43 = vrot.slane %v7522_v16, 1  ;;  %8917 = vmatmul.mubr.bf16.vlgmr.msra.gmra.mrb[72].mxu0 %v7989_v19  ;;  %8957 = vmatmul.mubr.bf16.vlgmr.msra.gmra.mrb[36].mxu1 %v7991_v14  ;;  %v11608_v47 = vld [vmem:[%s12500_s19 + $0x298] sm:$0xff]   ;;  %v11615_v62 = vld [vmem:[%s12500_s19 + $0x2e8] sm:$0xff]   ;;  %v7652_v56 = vrot.slane %v13404_v45, %v12109_v53  ;;  %v11619_v19 = vld [vmem:[%s12500_s19 + $0x2f0] sm:$0xff]  }
 0x811   : > { %v7425_v6 = vadd.f32 %v7424_v51, %v7423_v44  ;;  %v7529_v33 = vrot.slane %v7528_v11, 1  ;;  %10395 = vmatpush3.bf16.msra.mxu0 %v11594_v27  ;;  %10417 = vmatpush3.bf16.msra.mxu1 %v11596_v5  ;;  %v11614_v27 = vld [vmem:[%s12500_s19 + $0x228] sm:$0xff]   ;;  %v11618_v51 = vld [vmem:[%s12500_s19 + $0x230] sm:$0xff]   ;;  %v11621_v45 = vld [vmem:[%s12500_s19 + $0x278] sm:$0xff]  }
 0x812   : > { %v13580_v29 = vmul.f32 0.125, %v7419_v50  ;;  %v7524_v32 = vadd.f32 %v7523_v43, %v7522_v16  ;;  %10396 = vmatprep.subr.bf16.mxu0 %v11597_v23  ;;  %10418 = vmatprep.subr.bf16.mxu1 %v11599_v59  ;;  %v11616_v5 = vld [vmem:[%s12500_s19 + $0x2a8] sm:$0xff]   ;;  %v11617_v16 = vld [vmem:[%s12500_s19 + $0x270] sm:$0xff]   ;;  %v11623_v43 = vld [vmem:[%s12500_s19 + $0x2f8] sm:$0xff]  }
 0x813   : > { %v13584_v63 = vmul.f32 0.125, %v7425_v6  ;;  %v7530_v42 = vadd.f32 %v7529_v33, %v7528_v11  ;;  %v11620_v11 = vld [vmem:[%s12500_s19 + $0x2b0] sm:$0xff]  }
 0x814   : > { %v7548_v1 = vmul.f32 0.125, %v7524_v32  ;;  %v7561_v3 = vmul.f32 %v13580_v29, %v13580_v29  ;;  %v11624_v32 = vld [vmem:[%s12500_s19 + $0x2b8] sm:$0xff]  }
 0x815   : > { %v7549_v12 = vmul.f32 0.125, %v7530_v42  ;;  %v7562_v0 = vmul.f32 %v13584_v63, %v13584_v63  ;;  %10397 = vmatpush3.bf16.msra.mxu0 %v11598_v61  ;;  %10419 = vmatpush3.bf16.msra.mxu1 %v11600_v15  ;;  %v11690_v44 = vpop.eup %11689  ;;  %v11622_v15 = vld [vmem:[%s12500_s19 + $0x238] sm:$0xff]  }
 0x816   : > { %v7574_v2 = vsub.f32 %v7548_v1, %v7561_v3  ;;  %10398 = vmatprep.subr.bf16.mxu0 %v11601_v54  ;;  %10420 = vmatprep.subr.bf16.mxu1 %v11603_v18  ;;  %v7682_v23 = vmul.f32 %v11690_v44, %v7656_v39  ;;  %v13764_v18 = vcombine.low %v13422_v9, %v13428_v13  ;;  %v11625_v39 = vld [vmem:[%s12500_s19 + $0x300] sm:$0xff]  }
 0x817   : > { %v7575_v10 = vsub.f32 %v7549_v12, %v7562_v0  ;;  %v7718_v12 = vrot.slane %v13416_v7, %v12098_v48  ;;  %v7722_v9 = vrot.slane %v13424_v46, %v12098_v48  ;;  %v9983_v0 = vld [vmem:[%s12092_s16 + $0x23] ss:$4 sm:$0x1f] }
 0x818   : > { %v7587_v4 = vadd.f32 1e-05, %v7574_v2  ;;  %v7760_v33 = vmul.f32 %v7682_v23, %v13544_v38  ;;  %v7831_v55 = vrot.slane %v13764_v18, %v12235_v60  ;;  %v7734_v2 = vrot.slane %v7682_v23, %v12098_v48 }
 0x819   : > { %v7588_v31 = vadd.f32 1e-05, %v7575_v10  ;;  %10399 = vmatpush3.bf16.msra.mxu0 %v11602_v8  ;;  %10421 = vmatpush3.bf16.msra.mxu1 %v11604_v35  ;;  %v7744_v10 = vmul.f32 %v7722_v9, %v13378_v25 }
 0x81a   : > { %11691 = vrsqrt.f32 %v7587_v4  ;;  %10400 = vmatprep.subr.bf16.mxu0 %v11605_v58  ;;  %10422 = vmatprep.subr.bf16.mxu1 %v11607_v36  ;;  %v7845_v42 = vrot.slane %v7760_v33, %v12235_v60  ;;  %v7743_v36 = vmul.f32 %v7718_v12, %v13366_v57 }
 0x81b   : > { %11693 = vrsqrt.f32 %v7588_v31 }
 0x81c   : > { %v7860_v1 = vrot.slane %v7845_v42, %v12235_v60 }
 0x81d   : > { %10401 = vmatpush3.bf16.msra.mxu0 %v11606_v41  ;;  %10423 = vmatpush3.bf16.msra.mxu1 %v11608_v47  ;;  %v7747_v47 = vmul.f32 %v7734_v2, %v13443_v34 }
 0x81e   : > { %10402 = vmatprep.subr.bf16.mxu0 %v11609_v24  ;;  %10424 = vmatprep.subr.bf16.mxu1 %v11611_v28 }
 0x821   : > { %10403 = vmatpush3.bf16.msra.mxu0 %v11610_v37  ;;  %10425 = vmatpush3.bf16.msra.mxu1 %v11612_v30 }
 0x822   : > { %10404 = vmatprep.subr.bf16.mxu0 %v11613_v40  ;;  %10426 = vmatprep.subr.bf16.mxu1 %v11615_v62 }
 0x824   : > { %v11692_v14 = vpop.eup %11691 }
 0x825   : > { %v11694_v59 = vpop.eup %11693  ;;  %v7680_v26 = vmul.f32 %v11692_v14, %v7648_v20  ;;  %10405 = vmatpush3.bf16.msra.mxu0 %v11614_v27  ;;  %10427 = vmatpush3.bf16.msra.mxu1 %v11616_v5  ;;  %v11626_v27 = vld [vmem:[%s12500_s19 + $0x308] sm:$0xff]   ;;  %v11627_v5 = vld [vmem:[%s12500_s19 + $0x310] sm:$0xff]  }
 0x826   : > { %v7681_v50 = vmul.f32 %v11694_v59, %v7652_v56  ;;  %10406 = vmatprep.subr.bf16.mxu0 %v11617_v16  ;;  %10428 = vmatprep.subr.bf16.mxu1 %v11619_v19  ;;  %v11628_v16 = vld [vmem:[%s12500_s19 + $0x318] sm:$0xff]   ;;  %s11804_s19 = smov [#allocation2]  }
 0x827   : > { %v7758_v6 = vmul.f32 %v7680_v26, %v13580_v29  ;;  %v7726_v13 = vrot.slane %v7680_v26, %v12098_v48  ;;  %s11701_s15 = sshll.u32 %s11804_s19, 4  ;;  %s11702_s15 = int_to_ptr.vmem [resolvable:$false] %s11701_s15 }
 0x828   : > { %v7759_v61 = vmul.f32 %v7681_v50, %v13584_v63  ;;  %v13765_v63 = vmov 0.0   ;;  %v7730_v8 = vrot.slane %v7681_v50, %v12098_v48  ;;  %s11703_s1 = scalar_lea.vmem %s11702_s15, 256  ;;  %p11704_p0 = scmp.lt.s32.totalorder %s9105_s0, %s11702_s15 }
 0x829   : > { %10407 = vmatpush3.bf16.msra.mxu0 %v11618_v51  ;;  %10429 = vmatpush3.bf16.msra.mxu1 %v11620_v11  ;;  %p11705_p1 = scmp.lt.s32.totalorder %s11703_s1, %s11697_s18 }
 0x82a   : > { %v7824_v54 = vcombine.low %v7758_v6, %v7759_v61  ;;  %10408 = vmatprep.subr.bf16.mxu0 %v11621_v45  ;;  %10430 = vmatprep.subr.bf16.mxu1 %v11623_v43  ;;  %v7746_v7 = vmul.f32 %v7730_v8, %v13549_v17 }
 0x82b   : > { %p11706_p2 = por %p11705_p1, %p11704_p0 }
 0x82c   : > { %v7838_v29 = vrot.slane %v7824_v54, %v12235_v60 }
 0x82d   : > { %10409 = vmatpush3.bf16.msra.mxu0 %v11622_v15  ;;  %10431 = vmatpush3.bf16.msra.mxu1 %v11624_v32  ;;  %p11707_p3 = pnand %p11706_p2, %p11700_p13 }
 0x82e   : > { %v7846_v38 = vcombine.low %v7831_v55, %v7838_v29  ;;  %10503 = vmatprep.subr.bf16.mxu0 %v13765_v63 }
 0x830   : > { %v7853_v3 = vrot.slane %v7846_v38, %v12235_v60  ;;  %v7745_v60 = vmul.f32 %v7726_v13, %v13540_v22 }
 0x832   : > { %v7861_v35 = vcombine.low %v7853_v3, %v7860_v1 }
 0x834   : > { %v7865_v58 = vsub.f32 %v9983_v0, %v7861_v35 }
 0x836   : > { %v7915_v4 = vrot.slane %v7865_v58, %v12109_v53  ;;  %v7907_v46 = vrot.slane %v7865_v58, %v12106_v52  ;;  %v7903_v31 = vrot.slane %v7865_v58, %v12098_v48  ;;  %v7911_v41 = vrot.slane %v7865_v58, %v12101_v49 }
 0x837   : > { %v7919_v24 = vrot.slane %v7865_v58, %v12182_v21 }
 0x838   : > { %v7944_v28 = vadd.f32 %v7915_v4, %v7746_v7  ;;  %v7942_v57 = vadd.f32 %v7907_v46, %v7744_v10  ;;  %v7941_v37 = vadd.f32 %v7903_v31, %v7743_v36  ;;  %v7943_v25 = vadd.f32 %v7911_v41, %v7745_v60 }
 0x839   : > { %v7945_v22 = vadd.f32 %v7919_v24, %v7747_v47 }
 0x83a   : > { %vm7955_vm5 = vcmp.gt.f32.partialorder %v7942_v57, 0.0  ;;  %v7968_v17 = vmul.f32 0.2, %v7942_v57  ;;  %vm7957_vm6 = vcmp.gt.f32.partialorder %v7944_v28, 0.0  ;;  %v7970_v53 = vmul.f32 0.2, %v7944_v28 }
 0x83b   : > { %vm7954_vm7 = vcmp.gt.f32.partialorder %v7941_v37, 0.0  ;;  %v7967_v52 = vmul.f32 0.2, %v7941_v37  ;;  %vm7956_vm8 = vcmp.gt.f32.partialorder %v7943_v25, 0.0  ;;  %v7969_v48 = vmul.f32 0.2, %v7943_v25 }
 0x83c   : > { %v7981_v49 = vsel %vm7955_vm5, %v7942_v57, %v7968_v17  ;;  %v7983_v30 = vsel %vm7957_vm6, %v7944_v28, %v7970_v53  ;;  %v7971_v56 = vmul.f32 0.2, %v7945_v22  ;;  %vm7958_vm9 = vcmp.gt.f32.partialorder %v7945_v22, 0.0 }
 0x83d   : > { %v7994_v34 = vpack.c.bf16 %v7981_v49, %v7981_v49  ;;  %v7996_v21 = vpack.c.bf16 %v7983_v30, %v7983_v30  ;;  %v7980_v40 = vsel %vm7954_vm7, %v7941_v37, %v7967_v52  ;;  %v7982_v62 = vsel %vm7956_vm8, %v7943_v25, %v7969_v48 }
 0x83e   : > { %v7993_v44 = vpack.c.bf16 %v7980_v40, %v7980_v40  ;;  %v7995_v20 = vpack.c.bf16 %v7982_v62, %v7982_v62  ;;  %v7984_v19 = vsel %vm7958_vm9, %v7945_v22, %v7971_v56 }
 0x83f   : > { %8996 = vmatprep.mubr.bf16.mxu0 %v7994_v34  ;;  %9036 = vmatprep.mubr.bf16.mxu1 %v7996_v21  ;;  %v7997_v14 = vpack.c.bf16 %v7984_v19, %v7984_v19 }
 0x840   : > { %8997 = vmatmul.mubr.bf16.vlgmr.msra.gmra.mrb[76].mxu0 %v7993_v44  ;;  %9037 = vmatmul.mubr.bf16.vlgmr.msra.gmra.mrb[40].mxu1 %v7995_v20 }
 0x841   : > { %10504 = vmatpush3.bf16.msra.mxu0 %v11625_v39  ;;  %10511 = vmatprep.mubr.msk.bf16.mxu0 %vm11796_vm1, %v13765_v63 }
 0x842   : > { %10505 = vmatprep.subr.bf16.mxu0 %v13765_v63 }
 0x845   : > { %10506 = vmatpush3.bf16.msra.mxu0 %v11626_v27 }
 0x846   : > { %10507 = vmatprep.subr.bf16.mxu0 %v13765_v63 }
 0x849   : > { %10508 = vmatpush3.bf16.msra.mxu0 %v11627_v5 }
 0x84a   : > { %10509 = vmatprep.subr.bf16.mxu0 %v13765_v63 }
 0x84d   : > { %10510 = vmatpush3.bf16.msra.mxu0 %v11628_v16 }
 0x850   : > { %10512 = vmatmul.mubr.msk.bf16.vlgmr.msra.gmra.mrb[80].mxu0 %vm932_vm0, %v7997_v14 }
 0x851   : > { %11710 = shalt.err (!%p11707_p3)
}
 0x852   : > { %s11711_s29 = scalar_lea.hbm %s13664_s3, 128  ;;  %s11715_s19 = scalar_lea.hbm %s13747_s11, 256 }
 0x853   : > { %p11712_p4 = scmp.ne.s32.totalorder %s13664_s3, %s11711_s29  ;;  %p11716_p9 = scmp.lt.u32.totalorder %s13664_s3, %s13747_s11 }
 0x854   : > { %p11717_p10 = scmp.lt.u32.totalorder %s11715_s19, %s11711_s29  ;;  %p11719_p12 = scmp.lt.u32.totalorder %s11711_s29, %s13664_s3 }
 0x855   : > { %p11713_p7 = pnand %p11712_p4, %p11909_p5 }
 0x856   : > { %p11718_p11 = por %p11717_p10, %p11716_p9 }
 0x857   : > { %p11714_p8 = pneg %p11713_p7 }
 0x858   : > { %p11720_p13 = por %p11719_p12, %p11718_p11 }
 0x85a   : > { %p11721_p0 = pnand %p11720_p13, %p11714_p8 }
 0x85c   : > { %11724 = shalt.err (!%p11721_p0)
}
 0x85d   : > { %10614 = dma.vmem_to_hbm [thread:$0]  (%p11909_p5), %s9105_s0, 128, %s13664_s3, %s9086_s20   ;;  %v8799_v23 = vpop.permute.xlu0 %8798 }
 0x85e   : > { %s13766_s1 = sshll.u32 %s12946_s17, 3  ;;  %s13767_s0 = sshll.u32 %s11892_s25, 7 }
 0x85f   : > { %s557_s26 = scalar_lea.vmem [#allocation4], %s13766_s1  ;;  %s13692_s29 = scalar_lea.hbm %s13748_s12, %s13767_s0 }
 0x860   : > { %s9117_s3 = sshll.u32 %s557_s26, 4  ;;  %s9091_s16 = scalar_lea.sflag [#allocation5], %s12946_s17  ;;  %s13694_s3 = int_to_ptr.vmem [resolvable:$true] %s9117_s3 }
 0x861   : > { %s11725_s28 = scalar_lea.vmem %s13694_s3, 128  ;;  %s11805_s25 = smov [#allocation4]  }
 0x862   : > { %p11726_p1 = scmp.ne.s32.totalorder %s13694_s3, %s11725_s28  ;;  %s11729_s19 = sshll.u32 %s11805_s25, 4  ;;  %s11730_s19 = int_to_ptr.vmem [resolvable:$false] %s11729_s19 }
 0x863   : > { %s11731_s15 = scalar_lea.vmem %s11730_s19, 256  ;;  %p11732_p4 = scmp.lt.s32.totalorder %s13694_s3, %s11730_s19 }
 0x864   : > { %p11727_p2 = pnand %p11726_p1, %p11909_p5  ;;  %p11733_p7 = scmp.lt.s32.totalorder %s11731_s15, %s11725_s28 }
 0x866   : > { %p11728_p3 = pneg %p11727_p2  ;;  %p11734_p8 = por %p11733_p7, %p11732_p4 }
 0x868   : > { %p11735_p9 = pnand %p11734_p8, %p11728_p3 }
 0x8c3   : > { %v10322_v59 = vpop.f32.mrb[68].mxu0  ;;  %v10344_v26 = vpop.f32.mrb[32].mxu1 }
 0x8c4   : > { %v10323_v51 = vpop.f32.mrb[69].mxu0  ;;  %v10345_v11 = vpop.f32.mrb[33].mxu1 }
 0x8c5   : > { %v10324_v50 = vadd.f32 %v10323_v51, %v10322_v59  ;;  %v10346_v45 = vadd.f32 %v10345_v11, %v10344_v26  ;;  %v10325_v43 = vpop.f32.mrb[70].mxu0  ;;  %v10347_v6 = vpop.f32.mrb[34].mxu1 }
 0x8c6   : > { %v10326_v33 = vpop.f32.mrb[71].mxu0  ;;  %v10348_v61 = vpop.f32.mrb[35].mxu1 }
 0x8c7   : > { %v8839_v15 = vadd.f32 %v10324_v50, %v8799_v23 }
 0x8c9   : > { %v8879_v32 = vadd.f32 %v10346_v45, %v8839_v15 }
 0x8e3   : > { %v10366_v54 = vpop.f32.mrb[72].mxu0  ;;  %v10388_v18 = vpop.f32.mrb[36].mxu1 }
 0x8e4   : > { %v10367_v55 = vpop.f32.mrb[73].mxu0  ;;  %v10389_v42 = vpop.f32.mrb[37].mxu1 }
 0x8e5   : > { %v10368_v29 = vadd.f32 %v10367_v55, %v10366_v54  ;;  %v10390_v38 = vadd.f32 %v10389_v42, %v10388_v18  ;;  %v10369_v63 = vpop.f32.mrb[74].mxu0  ;;  %v10391_v1 = vpop.f32.mrb[38].mxu1 }
 0x8e6   : > { %v10370_v3 = vpop.f32.mrb[75].mxu0  ;;  %v10392_v12 = vpop.f32.mrb[39].mxu1 }
 0x8e7   : > { %v8919_v9 = vadd.f32 %v10368_v29, %v8879_v32 }
 0x8e9   : > { %v8959_v13 = vadd.f32 %v10390_v38, %v8919_v9 }
 0x913   : > { %v10410_v0 = vpop.f32.mrb[76].mxu0  ;;  %v10432_v8 = vpop.f32.mrb[40].mxu1 }
 0x914   : > { %v10411_v35 = vpop.f32.mrb[77].mxu0  ;;  %v10433_v2 = vpop.f32.mrb[41].mxu1 }
 0x915   : > { %v10412_v58 = vadd.f32 %v10411_v35, %v10410_v0  ;;  %v10434_v36 = vadd.f32 %v10433_v2, %v10432_v8  ;;  %v10413_v10 = vpop.f32.mrb[78].mxu0  ;;  %v10435_v60 = vpop.f32.mrb[42].mxu1 }
 0x916   : > { %v10414_v7 = vpop.f32.mrb[79].mxu0  ;;  %v10436_v4 = vpop.f32.mrb[43].mxu1 }
 0x917   : > { %v8999_v46 = vadd.f32 %v10412_v58, %v8959_v13 }
 0x919   : > { %v9039_v31 = vadd.f32 %v10434_v36, %v8999_v46 }
 0x923   : > { %v9078_v41 = vpop.f32.mrb[80].mxu0 }
 0x924   : > { %v9079_v47 = vadd.f32 %v9078_v41, %v9039_v31  ;;  %v10513_v24 = vpop.f32.mrb[81].mxu0 }
 0x925   : > { %v9081_v28 = vpop.f32.mrb[82].mxu0 }
 0x926   : > { %v10514_v57 = vpop.f32.mrb[83].mxu0  ;;  %9084 = vst.msk [vmem:[%s557_s26] sm:$0xff] %vm932_vm0, %v9079_v47 }
 0x927   : > { %11738 = shalt.err (!%p11735_p9)
}
 0x928   : > { %s11739_s17 = scalar_lea.hbm %s13692_s29, 128  ;;  %s11743_s0 = scalar_lea.hbm %s13748_s12, 256 }
 0x929   : > { %p11740_p10 = scmp.ne.s32.totalorder %s13692_s29, %s11739_s17  ;;  %p11744_p13 = scmp.lt.u32.totalorder %s13692_s29, %s13748_s12 }
 0x92a   : > { %p11745_p0 = scmp.lt.u32.totalorder %s11743_s0, %s11739_s17  ;;  %p11747_p2 = scmp.lt.u32.totalorder %s11739_s17, %s13692_s29 }
 0x92b   : > { %p11741_p11 = pnand %p11740_p10, %p11909_p5 }
 0x92c   : > { %p11746_p1 = por %p11745_p0, %p11744_p13 }
 0x92d   : > { %p11742_p12 = pneg %p11741_p11 }
 0x92e   : > { %p11748_p3 = por %p11747_p2, %p11746_p1 }
 0x930   : > { %p11749_p4 = pnand %p11748_p3, %p11742_p12 }
 0x932   : > { %11752 = shalt.err (!%p11749_p4)
}
 0x933   : > { %10615 = dma.vmem_to_hbm [thread:$0]  (%p11909_p5), %s13694_s3, 128, %s13692_s29, %s9091_s16  }
 0x934 PF: > { %p10625_p7 = scmp.ge.s32.totalorder %s11791_s24, 2  ;;  %s9129_s28 = sand.u32 1, %s11779_s21  }
 0x935   : > { %s9130_s25 = scalar_lea.sflag [#allocation3], %s9129_s28 }
 0x936   : > { %p10619_p8 = pnand %p10625_p7, %p11913_p6 }
 0x938   : > { %11770 = dma.done.wait (!%p10619_p8), %s9130_s25, 128  }
 0x939   : > { %11772 = vsyncadd (!%p10619_p8), %s9130_s25, 4294967168  ;;  %s9139_s19 = scalar_lea.sflag [#allocation5], %s9129_s28 }
 0x93a   : > { %11774 = dma.done.wait (!%p10619_p8), %s9139_s19, 128  }
 0x93b   : > { %11776 = vsyncadd (!%p10619_p8), %s9139_s19, 4294967168  ;;  %p26_p5 = scmp.ge.s32.totalorder %s11896_s27, 4   ;;  %s13768_s21 = smov %s11783_s22 }
 0x93c   : > { %s13769_s22 = smov %s11787_s23  ;;  %s13770_s23 = smov %s11907_s30 }
 0x93d   : > { %s13771_s24 = smov %s11896_s27  ;;  %28 = sbr.rel (!%p26_p5) target bundleno = 9 (0x9), region = 157 }
 0x944   :  { %9144 = vsyncpa [#allocation3], 1 }
 0x945   :  { %9146 = vsyncpa [#allocation3 + $0x1], 1 }
 0x946   :  { %9147 = vsyncpa [#allocation5], 1 }
 0x947   :  { %9149 = vsyncpa [#allocation5 + $0x1], 1 }

</bundles_post_ra>
